<compile_context>
chip_gen: v7x
topology: tpu7x:2x2x1
jax: 0.10.0
libtpu: 0.0.40
codegen_flags: <defaults>
</compile_context>

<pallas_src>
import random
import numpy as np
import jax
import jax.numpy as jnp
from jax.experimental import pallas as pl
from jax.experimental.pallas import tpu as pltpu

LEAKY_SLOPE = 0.01
BN_EPS = 1e-5
KSIZE = 5
LANE = 128


def _round_up(n, m):
    return ((n + m - 1) // m) * m


def _pick_m_tile(m):
    """Largest 8-aligned tile dividing m that leaves >=2 grid steps."""
    for t in (2048, 1024, 512, 256, 128, 64, 32, 16, 8):
        if m % t == 0 and m // t >= 2:
            return t
    return m


# ----------------------------------------------------------------------------
# Pallas kernels / wrappers
# ----------------------------------------------------------------------------
def conv5x5_stats(x_pad_bf16, w_packed):
    """5x5 'same' conv (input already replicate-padded by 2) + BN partial stats.

    x_pad_bf16: (B, H+4, W+4, Cin_pad) bf16 -- channel dim zero-padded to 128k.
    w_packed:   (25, Cin_pad, Cout_pad)  bf16.
    Returns: y    (B, H*W, Cout_pad) f32  pre-BN conv output,
             ssum (B, 1, Cout_pad)  f32  per-image per-channel sum,
             ssq  (B, 1, Cout_pad)  f32  per-image per-channel sum of squares.
    """
    B, Hp, Wp, Cin_p = x_pad_bf16.shape
    H, W = Hp - (KSIZE - 1), Wp - (KSIZE - 1)
    Cout_p = w_packed.shape[-1]

    def kernel(x_ref, w_ref, y_ref, sum_ref, sq_ref):
        x = x_ref[0]  # (Hp, Wp, Cin_p) bf16
        acc = jnp.zeros((H * W, Cout_p), jnp.float32)
        # 25 shifted matmuls; only 5 sublane-offset slices (one per kw),
        # the kh slices are along the cheap leading dim.
        for kw in range(KSIZE):
            xw = x[:, kw:kw + W, :]                       # (Hp, W, Cin_p)
            for kh in range(KSIZE):
                xt = xw[kh:kh + H].reshape(H * W, Cin_p)  # (H*W, Cin_p)
                acc = acc + jnp.dot(xt, w_ref[kh * KSIZE + kw],
                                    preferred_element_type=jnp.float32)
        y_ref[0] = acc
        sum_ref[0] = jnp.sum(acc, axis=0, keepdims=True)
        sq_ref[0] = jnp.sum(acc * acc, axis=0, keepdims=True)

    y, ssum, ssq = pl.pallas_call(
        kernel,
        out_shape=(
            jax.ShapeDtypeStruct((B, H * W, Cout_p), jnp.float32),
            jax.ShapeDtypeStruct((B, 1, Cout_p), jnp.float32),
            jax.ShapeDtypeStruct((B, 1, Cout_p), jnp.float32),
        ),
        grid=(B,),
        in_specs=[
            pl.BlockSpec((1, Hp, Wp, Cin_p), lambda b: (b, 0, 0, 0)),
            pl.BlockSpec((KSIZE * KSIZE, Cin_p, Cout_p), lambda b: (0, 0, 0)),
        ],
        out_specs=(
            pl.BlockSpec((1, H * W, Cout_p), lambda b: (b, 0, 0)),
            pl.BlockSpec((1, 1, Cout_p), lambda b: (b, 0, 0)),
            pl.BlockSpec((1, 1, Cout_p), lambda b: (b, 0, 0)),
        ),
        compiler_params=pltpu.CompilerParams(
            dimension_semantics=("parallel",)),
    )(x_pad_bf16, w_packed)
    return y, ssum, ssq


def bn_lrelu_apply(y2d, scale, shift, out_dtype):
    """Elementwise y*scale + shift then LeakyReLU(0.01).  M-tiled, lane-dense."""
    M, C = y2d.shape
    tile = _pick_m_tile(M)

    def kernel(y_ref, sc_ref, sh_ref, o_ref):
        z = y_ref[...] * sc_ref[...] + sh_ref[...]
        o_ref[...] = jnp.where(z >= 0.0, z, LEAKY_SLOPE * z).astype(o_ref.dtype)

    return pl.pallas_call(
        kernel,
        out_shape=jax.ShapeDtypeStruct((M, C), out_dtype),
        grid=(M // tile,),
        in_specs=[
            pl.BlockSpec((tile, C), lambda i: (i, 0)),
            pl.BlockSpec((1, C), lambda i: (0, 0)),
            pl.BlockSpec((1, C), lambda i: (0, 0)),
        ],
        out_specs=pl.BlockSpec((tile, C), lambda i: (i, 0)),
        compiler_params=pltpu.CompilerParams(
            dimension_semantics=("parallel",)),
    )(y2d, scale.reshape(1, C), shift.reshape(1, C))


def patch_recon_mlp(x2d, w1, b1, w2, b2):
    """Linear -> LeakyReLU -> Linear on padded (128-aligned) dims."""
    M, K = x2d.shape
    D = w1.shape[1]

    def kernel(x_ref, w1_ref, b1_ref, w2_ref, b2_ref, o_ref):
        h = jnp.dot(x_ref[...], w1_ref[...],
                    preferred_element_type=jnp.float32) + b1_ref[...]
        h = jnp.where(h >= 0.0, h, LEAKY_SLOPE * h)
        o_ref[...] = jnp.dot(h, w2_ref[...],
                             preferred_element_type=jnp.float32) + b2_ref[...]

    return pl.pallas_call(
        kernel,
        out_shape=jax.ShapeDtypeStruct((M, D), jnp.float32),
        grid=(1,),
        in_specs=[
            pl.BlockSpec((M, K), lambda i: (0, 0)),
            pl.BlockSpec((K, D), lambda i: (0, 0)),
            pl.BlockSpec((1, D), lambda i: (0, 0)),
            pl.BlockSpec((D, D), lambda i: (0, 0)),
            pl.BlockSpec((1, D), lambda i: (0, 0)),
        ],
        out_specs=pl.BlockSpec((M, D), lambda i: (0, 0)),
    )(x2d, w1, b1.reshape(1, D), w2, b2.reshape(1, D))


# ----------------------------------------------------------------------------
# Host-side PatchSampler (python `random` + numpy SSIM), as in the reference.
# ----------------------------------------------------------------------------
def _uniform_window_ssim(p1, p2, data_range):
    # Equivalent to skimage.structural_similarity(gaussian_weights=False,
    # channel_axis=-1, win_size=min(H,W) (odd)).  Patches are 5x5 here, so the
    # single valid uniform-filter window is the whole patch.
    C1 = (0.01 * data_range) ** 2
    C2 = (0.03 * data_range) ** 2
    n = p1.shape[0] * p1.shape[1]
    cov_norm = n / (n - 1.0)
    vals = []
    for c in range(p1.shape[-1]):
        X = p1[..., c].astype(np.float64)
        Y = p2[..., c].astype(np.float64)
        ux, uy = X.mean(), Y.mean()
        uxx, uyy, uxy = (X * X).mean(), (Y * Y).mean(), (X * Y).mean()
        vx = cov_norm * (uxx - ux * ux)
        vy = cov_norm * (uyy - uy * uy)
        vxy = cov_norm * (uxy - ux * uy)
        s = ((2 * ux * uy + C1) * (2 * vxy + C2)) / (
            (ux * ux + uy * uy + C1) * (vx + vy + C2))
        vals.append(s)
    return float(np.mean(vals))


def range_aware_ssim(label_true, label_pred):
    data_range = float(label_true.max() - label_true.min())
    if data_range == 0:
        data_range = 1.0
    return _uniform_window_ssim(label_true, label_pred, data_range)


def compute_ssim(image, h1w1, h2w2, patch_size):
    p = patch_size
    patch1 = image[:, h1w1[0] - p // 2:h1w1[0] - p // 2 + p,
                   h1w1[1] - p // 2:h1w1[1] - p // 2 + p]
    patch2 = image[:, h2w2[0] - p // 2:h2w2[0] - p // 2 + p,
                   h2w2[1] - p // 2:h2w2[1] - p // 2 + p]
    patch1 = np.moveaxis(patch1, 0, -1)
    patch2 = np.moveaxis(patch2, 0, -1)
    return range_aware_ssim(patch1, patch2)


def sample_hw_nearby(hw, H, W, neighborhood=5, patch_size=7):
    h_start = max(hw[0] - neighborhood, patch_size // 2)
    h_stop = min(hw[0] + neighborhood, H - patch_size // 2)
    w_start = max(hw[1] - neighborhood, patch_size // 2)
    w_stop = min(hw[1] + neighborhood, W - patch_size // 2)
    return (random.randrange(start=int(h_start), stop=int(h_stop)),
            random.randrange(start=int(w_start), stop=int(w_stop)))


class PatchSampler:
    def __init__(self, random_seed=None, patch_size=None, sampled_patches_per_image=None):
        self.random_seed = random_seed
        self.patch_size = patch_size
        self.sampled_patches_per_image = sampled_patches_per_image
        self.max_attempts = 20
        self.ssim_thr = 0.5

    def sample(self, image):
        B, _, H, W = image.shape
        anchors_hw = np.zeros((B, self.sampled_patches_per_image, 2), dtype=int)
        positives_hw = np.zeros_like(anchors_hw)
        h_range = (self.patch_size // 2, H - self.patch_size // 2)
        w_range = (self.patch_size // 2, W - self.patch_size // 2)
        random.seed(self.random_seed)
        for bi in range(B):
            for si in range(self.sampled_patches_per_image):
                anchors_hw[bi, si, :] = [
                    random.randrange(start=h_range[0], stop=h_range[1]),
                    random.randrange(start=w_range[0], stop=w_range[1]),
                ]
                best = None
                for _ in range(self.max_attempts):
                    cand = sample_hw_nearby(anchors_hw[bi, si, :], H=H, W=W,
                                            neighborhood=self.patch_size,
                                            patch_size=self.patch_size)
                    curr = compute_ssim(image[bi, ...], h1w1=anchors_hw[bi, si, :],
                                        h2w2=cand, patch_size=self.patch_size)
                    if curr > self.ssim_thr:
                        best = cand
                        break
                if best is None:
                    # NOTE: view mutation also shifts the anchor — matches reference.
                    nb = anchors_hw[bi, si, :]
                    nb[0] = nb[0] - 1 if nb[0] > H // 2 else nb[0] + 1
                    nb[1] = nb[1] - 1 if nb[1] > W // 2 else nb[1] + 1
                    best = nb
                positives_hw[bi, si, :] = best
        assert anchors_hw.shape == positives_hw.shape
        return anchors_hw, positives_hw


# ----------------------------------------------------------------------------
# CUTSModel (Pallas)
# ----------------------------------------------------------------------------
class CUTSModelPallas:
    def __init__(self, input_channels, kernels=16, patch_size=5,
                 sampled_patches_per_image=4, seed=0):
        self.input_channels = input_channels
        self.kernels = kernels
        self.latent_dim = kernels * 8
        self.latent_pad = _round_up(self.latent_dim, LANE)
        self.patch_size = patch_size
        self.patch_sampler = PatchSampler(
            random_seed=42, patch_size=patch_size,
            sampled_patches_per_image=sampled_patches_per_image)

        key = jax.random.PRNGKey(seed)
        chans = [input_channels, kernels, kernels * 2, kernels * 4, kernels * 8]
        self.cpad = [_round_up(c, LANE) for c in chans]

        # Conv weights, packed as (25, Cin_pad, Cout_pad) bf16.  Conv bias is
        # omitted: training-mode BN subtracts the batch mean right after, which
        # cancels a per-channel constant exactly (forward output unchanged).
        self.conv_w_packed, self.bn_gamma, self.bn_beta = [], [], []
        for li in range(4):
            key, k1, k3, k4 = jax.random.split(key, 4)
            cin, cout = chans[li], chans[li + 1]
            cin_p, cout_p = self.cpad[li], self.cpad[li + 1]
            fan_in = cin * KSIZE * KSIZE
            w = jax.random.normal(k1, (KSIZE, KSIZE, cin, cout), jnp.float32) \
                * (1.0 / np.sqrt(fan_in))
            wp = jnp.zeros((KSIZE, KSIZE, cin_p, cout_p), jnp.float32)
            wp = wp.at[:, :, :cin, :cout].set(w)
            self.conv_w_packed.append(
                wp.reshape(KSIZE * KSIZE, cin_p, cout_p).astype(jnp.bfloat16))
            g = jnp.ones((cout,), jnp.float32) \
                + 0.1 * jax.random.normal(k3, (cout,), jnp.float32)
            be = 0.1 * jax.random.normal(k4, (cout,), jnp.float32)
            # Padded channels: gamma/beta = 0 -> stay exactly zero downstream.
            self.bn_gamma.append(jnp.zeros((cout_p,), jnp.float32).at[:cout].set(g))
            self.bn_beta.append(jnp.zeros((cout_p,), jnp.float32).at[:cout].set(be))

        # Patch-reconstruction MLP, dims zero-padded to 128 multiples.
        out_dim = input_channels * patch_size ** 2
        self.out_dim = out_dim
        d_pad = _round_up(out_dim, LANE)
        self.d_pad = d_pad
        key, k1, k2, k3, k4 = jax.random.split(key, 5)
        fc1_w = jax.random.normal(k1, (self.latent_dim, out_dim), jnp.float32) \
            / np.sqrt(self.latent_dim)
        fc1_b = 0.01 * jax.random.normal(k2, (out_dim,), jnp.float32)
        fc2_w = jax.random.normal(k3, (out_dim, out_dim), jnp.float32) \
            / np.sqrt(out_dim)
        fc2_b = 0.01 * jax.random.normal(k4, (out_dim,), jnp.float32)
        self.fc1_w = jnp.zeros((self.latent_pad, d_pad), jnp.float32) \
            .at[:self.latent_dim, :out_dim].set(fc1_w)
        self.fc1_b = jnp.zeros((d_pad,), jnp.float32).at[:out_dim].set(fc1_b)
        self.fc2_w = jnp.zeros((d_pad, d_pad), jnp.float32) \
            .at[:out_dim, :out_dim].set(fc2_w)
        self.fc2_b = jnp.zeros((d_pad,), jnp.float32).at[:out_dim].set(fc2_b)

    def forward(self, x_nchw):
        B, C, H, Wd = x_nchw.shape
        P = self.patch_size
        L = self.latent_dim
        n_px = B * H * Wd

        # -------- Encoder (device; dispatched asynchronously) --------
        act = jnp.transpose(x_nchw, (0, 2, 3, 1))                       # NHWC f32
        act = jnp.pad(act, ((0, 0), (0, 0), (0, 0),
                            (0, self.cpad[0] - C))).astype(jnp.bfloat16)
        for li in range(4):
            cout_p = self.cpad[li + 1]
            # Replicate 'same' padding (elementwise-safe: later per-channel
            # affine + LeakyReLU commute with edge replication).
            xpad = jnp.pad(act, ((0, 0), (2, 2), (2, 2), (0, 0)), mode="edge")
            y, ssum, ssq = conv5x5_stats(xpad, self.conv_w_packed[li])
            # Batch statistics over all B*H*W rows (biased variance, training BN).
            tot_sum = jnp.sum(ssum[:, 0, :], axis=0)
            tot_sq = jnp.sum(ssq[:, 0, :], axis=0)
            mean = tot_sum / n_px
            var = jnp.maximum(tot_sq / n_px - mean * mean, 0.0)
            scale = self.bn_gamma[li] * jax.lax.rsqrt(var + BN_EPS)
            shift = self.bn_beta[li] - mean * scale
            out_dtype = jnp.float32 if li == 3 else jnp.bfloat16
            act2d = bn_lrelu_apply(y.reshape(n_px, cout_p), scale, shift, out_dtype)
            act = act2d.reshape(B, H, Wd, cout_p)

        feat = act                                       # (B, H, W, latent_pad) f32
        W_nchw = jnp.transpose(feat[..., :L], (0, 3, 1, 2))

        # -------- Host-side patch sampling (python RNG + numpy SSIM) --------
        # Only x goes to host; runs while the device crunches the encoder.
        x_np = np.asarray(jax.device_get(x_nchw))
        anchors_hw, positives_hw = self.patch_sampler.sample(x_np)
        S = anchors_hw.shape[1]

        patch_real = np.zeros((B, S, C, P, P), np.float32)
        for b in range(B):
            for s in range(S):
                ah, aw = int(anchors_hw[b, s, 0]), int(anchors_hw[b, s, 1])
                patch_real[b, s] = x_np[b, :, ah - P // 2: ah - P // 2 + P,
                                        aw - P // 2: aw - P // 2 + P]

        # -------- On-device feature gathers --------
        a_hw = jnp.asarray(anchors_hw)
        p_hw = jnp.asarray(positives_hw)
        b_idx = jnp.arange(B)[:, None]
        feat_lat = feat[..., :L]
        W_anchors = feat_lat[b_idx, a_hw[..., 0], a_hw[..., 1]]       # (B, S, L)
        W_positives = feat_lat[b_idx, p_hw[..., 0], p_hw[..., 1]]     # (B, S, L)

        # -------- Patch reconstruction MLP (Pallas, padded dims) --------
        xa = W_anchors.reshape(B * S, L)
        if self.latent_pad > L:
            xa = jnp.pad(xa, ((0, 0), (0, self.latent_pad - L)))
        recon = patch_recon_mlp(xa, self.fc1_w, self.fc1_b, self.fc2_w, self.fc2_b)
        patch_recon_out = recon[:, :self.out_dim].reshape(B, S, C, P, P)

        return (W_nchw, jnp.asarray(patch_real), patch_recon_out,
                W_anchors, W_positives)


if __name__ == "__main__":
    B, C, H, W = 2, 4, 16, 16
    key = jax.random.PRNGKey(0)
    x = jax.random.normal(key, (B, C, H, W), jnp.float32)

    model = CUTSModelPallas(input_channels=C, kernels=16, patch_size=5,
                            sampled_patches_per_image=4)
    W_feat, patch_real, patch_recon, W_anchors, W_positives = model.forward(x)

    for o in (W_feat, patch_real, patch_recon, W_anchors, W_positives):
        jax.block_until_ready(o)

    assert W_feat.shape == (B, 16 * 8, H, W)
    assert patch_real.shape == (B, 4, C, 5, 5)
    assert patch_recon.shape == (B, 4, C, 5, 5)
    assert W_anchors.shape == (B, 4, 16 * 8)
    assert W_positives.shape == (B, 4, 16 * 8)
    print("KERNEL_OK")
</pallas_src>

<mosaic_0001>
module attributes {stable_mosaic.version = 11 : i64} {
  func.func @kernel(%arg0: i32, %arg1: memref<1x20x20x128xbf16, #tpu.memory_space<vmem>>, %arg2: memref<25x128x128xbf16, #tpu.memory_space<vmem>>, %arg3: memref<1x256x128xf32, #tpu.memory_space<vmem>>, %arg4: memref<1x1x128xf32, #tpu.memory_space<vmem>>, %arg5: memref<1x1x128xf32, #tpu.memory_space<vmem>>) attributes {dimension_semantics = [#tpu.dimension_semantics<parallel>], iteration_bounds = array<i64: 2>, scalar_prefetch = 0 : i64, scratch_operands = 0 : i64, tpu.core_type = #tpu.core_type<tc>, window_params = [{transform_indices = @transform_0, window_bounds = array<i64: 1, 20, 20, 128>}, {pipeline_mode = #tpu.pipeline_mode<synchronous>, transform_indices = @transform_1, window_bounds = array<i64: 25, 128, 128>}, {transform_indices = @transform_2, window_bounds = array<i64: 1, 256, 128>}, {transform_indices = @transform_3, window_bounds = array<i64: 1, 1, 128>}, {transform_indices = @transform_4, window_bounds = array<i64: 1, 1, 128>}]} {
    %c0 = arith.constant 0 : index
    %c0_0 = arith.constant 0 : index
    %c0_1 = arith.constant 0 : index
    %c0_2 = arith.constant 0 : index
    %0 = vector.load %arg1[%c0, %c0_0, %c0_1, %c0_2] : memref<1x20x20x128xbf16, #tpu.memory_space<vmem>>, vector<1x20x20x128xbf16>
    %1 = vector.shape_cast %0 : vector<1x20x20x128xbf16> to vector<20x20x128xbf16>
    %cst = arith.constant 0.000000e+00 : f32
    %2 = vector.broadcast %cst : f32 to vector<256x128xf32>
    %3 = vector.extract_strided_slice %1 {offsets = [0, 0, 0], sizes = [20, 16, 128], strides = [1, 1, 1]} : vector<20x20x128xbf16> to vector<20x16x128xbf16>
    %4 = vector.extract_strided_slice %3 {offsets = [0, 0, 0], sizes = [16, 16, 128], strides = [1, 1, 1]} : vector<20x16x128xbf16> to vector<16x16x128xbf16>
    %5 = vector.shape_cast %4 : vector<16x16x128xbf16> to vector<256x128xbf16>
    %c0_3 = arith.constant 0 : index
    %c0_4 = arith.constant 0 : index
    %c0_5 = arith.constant 0 : index
    %6 = vector.load %arg2[%c0_3, %c0_4, %c0_5] : memref<25x128x128xbf16, #tpu.memory_space<vmem>>, vector<1x128x128xbf16>
    %7 = vector.shape_cast %6 : vector<1x128x128xbf16> to vector<128x128xbf16>
    %cst_6 = arith.constant dense<0.000000e+00> : vector<256x128xf32>
    %8 = tpu.matmul %5, %7, %cst_6 {dimension_numbers = #tpu.dot_dimension_numbers<[1], [0], [0], [1], [0, 0, 1, 1], [], []>} : vector<256x128xbf16>, vector<128x128xbf16>, vector<256x128xf32> -> vector<256x128xf32>
    %9 = arith.addf %2, %8 : vector<256x128xf32>
    %10 = vector.extract_strided_slice %3 {offsets = [1, 0, 0], sizes = [16, 16, 128], strides = [1, 1, 1]} : vector<20x16x128xbf16> to vector<16x16x128xbf16>
    %11 = vector.shape_cast %10 : vector<16x16x128xbf16> to vector<256x128xbf16>
    %c5 = arith.constant 5 : index
    %c0_7 = arith.constant 0 : index
    %c0_8 = arith.constant 0 : index
    %12 = vector.load %arg2[%c5, %c0_7, %c0_8] : memref<25x128x128xbf16, #tpu.memory_space<vmem>>, vector<1x128x128xbf16>
    %13 = vector.shape_cast %12 : vector<1x128x128xbf16> to vector<128x128xbf16>
    %cst_9 = arith.constant dense<0.000000e+00> : vector<256x128xf32>
    %14 = tpu.matmul %11, %13, %cst_9 {dimension_numbers = #tpu.dot_dimension_numbers<[1], [0], [0], [1], [0, 0, 1, 1], [], []>} : vector<256x128xbf16>, vector<128x128xbf16>, vector<256x128xf32> -> vector<256x128xf32>
    %15 = arith.addf %9, %14 : vector<256x128xf32>
    %16 = vector.extract_strided_slice %3 {offsets = [2, 0, 0], sizes = [16, 16, 128], strides = [1, 1, 1]} : vector<20x16x128xbf16> to vector<16x16x128xbf16>
    %17 = vector.shape_cast %16 : vector<16x16x128xbf16> to vector<256x128xbf16>
    %c10 = arith.constant 10 : index
    %c0_10 = arith.constant 0 : index
    %c0_11 = arith.constant 0 : index
    %18 = vector.load %arg2[%c10, %c0_10, %c0_11] : memref<25x128x128xbf16, #tpu.memory_space<vmem>>, vector<1x128x128xbf16>
    %19 = vector.shape_cast %18 : vector<1x128x128xbf16> to vector<128x128xbf16>
    %cst_12 = arith.constant dense<0.000000e+00> : vector<256x128xf32>
    %20 = tpu.matmul %17, %19, %cst_12 {dimension_numbers = #tpu.dot_dimension_numbers<[1], [0], [0], [1], [0, 0, 1, 1], [], []>} : vector<256x128xbf16>, vector<128x128xbf16>, vector<256x128xf32> -> vector<256x128xf32>
    %21 = arith.addf %15, %20 : vector<256x128xf32>
    %22 = vector.extract_strided_slice %3 {offsets = [3, 0, 0], sizes = [16, 16, 128], strides = [1, 1, 1]} : vector<20x16x128xbf16> to vector<16x16x128xbf16>
    %23 = vector.shape_cast %22 : vector<16x16x128xbf16> to vector<256x128xbf16>
    %c15 = arith.constant 15 : index
    %c0_13 = arith.constant 0 : index
    %c0_14 = arith.constant 0 : index
    %24 = vector.load %arg2[%c15, %c0_13, %c0_14] : memref<25x128x128xbf16, #tpu.memory_space<vmem>>, vector<1x128x128xbf16>
    %25 = vector.shape_cast %24 : vector<1x128x128xbf16> to vector<128x128xbf16>
    %cst_15 = arith.constant dense<0.000000e+00> : vector<256x128xf32>
    %26 = tpu.matmul %23, %25, %cst_15 {dimension_numbers = #tpu.dot_dimension_numbers<[1], [0], [0], [1], [0, 0, 1, 1], [], []>} : vector<256x128xbf16>, vector<128x128xbf16>, vector<256x128xf32> -> vector<256x128xf32>
    %27 = arith.addf %21, %26 : vector<256x128xf32>
    %28 = vector.extract_strided_slice %3 {offsets = [4, 0, 0], sizes = [16, 16, 128], strides = [1, 1, 1]} : vector<20x16x128xbf16> to vector<16x16x128xbf16>
    %29 = vector.shape_cast %28 : vector<16x16x128xbf16> to vector<256x128xbf16>
    %c20 = arith.constant 20 : index
    %c0_16 = arith.constant 0 : index
    %c0_17 = arith.constant 0 : index
    %30 = vector.load %arg2[%c20, %c0_16, %c0_17] : memref<25x128x128xbf16, #tpu.memory_space<vmem>>, vector<1x128x128xbf16>
    %31 = vector.shape_cast %30 : vector<1x128x128xbf16> to vector<128x128xbf16>
    %cst_18 = arith.constant dense<0.000000e+00> : vector<256x128xf32>
    %32 = tpu.matmul %29, %31, %cst_18 {dimension_numbers = #tpu.dot_dimension_numbers<[1], [0], [0], [1], [0, 0, 1, 1], [], []>} : vector<256x128xbf16>, vector<128x128xbf16>, vector<256x128xf32> -> vector<256x128xf32>
    %33 = arith.addf %27, %32 : vector<256x128xf32>
    %34 = vector.extract_strided_slice %1 {offsets = [0, 1, 0], sizes = [20, 16, 128], strides = [1, 1, 1]} : vector<20x20x128xbf16> to vector<20x16x128xbf16>
    %35 = vector.extract_strided_slice %34 {offsets = [0, 0, 0], sizes = [16, 16, 128], strides = [1, 1, 1]} : vector<20x16x128xbf16> to vector<16x16x128xbf16>
    %36 = vector.shape_cast %35 : vector<16x16x128xbf16> to vector<256x128xbf16>
    %c1 = arith.constant 1 : index
    %c0_19 = arith.constant 0 : index
    %c0_20 = arith.constant 0 : index
    %37 = vector.load %arg2[%c1, %c0_19, %c0_20] : memref<25x128x128xbf16, #tpu.memory_space<vmem>>, vector<1x128x128xbf16>
    %38 = vector.shape_cast %37 : vector<1x128x128xbf16> to vector<128x128xbf16>
    %cst_21 = arith.constant dense<0.000000e+00> : vector<256x128xf32>
    %39 = tpu.matmul %36, %38, %cst_21 {dimension_numbers = #tpu.dot_dimension_numbers<[1], [0], [0], [1], [0, 0, 1, 1], [], []>} : vector<256x128xbf16>, vector<128x128xbf16>, vector<256x128xf32> -> vector<256x128xf32>
    %40 = arith.addf %33, %39 : vector<256x128xf32>
    %41 = vector.extract_strided_slice %34 {offsets = [1, 0, 0], sizes = [16, 16, 128], strides = [1, 1, 1]} : vector<20x16x128xbf16> to vector<16x16x128xbf16>
    %42 = vector.shape_cast %41 : vector<16x16x128xbf16> to vector<256x128xbf16>
    %c6 = arith.constant 6 : index
    %c0_22 = arith.constant 0 : index
    %c0_23 = arith.constant 0 : index
    %43 = vector.load %arg2[%c6, %c0_22, %c0_23] : memref<25x128x128xbf16, #tpu.memory_space<vmem>>, vector<1x128x128xbf16>
    %44 = vector.shape_cast %43 : vector<1x128x128xbf16> to vector<128x128xbf16>
    %cst_24 = arith.constant dense<0.000000e+00> : vector<256x128xf32>
    %45 = tpu.matmul %42, %44, %cst_24 {dimension_numbers = #tpu.dot_dimension_numbers<[1], [0], [0], [1], [0, 0, 1, 1], [], []>} : vector<256x128xbf16>, vector<128x128xbf16>, vector<256x128xf32> -> vector<256x128xf32>
    %46 = arith.addf %40, %45 : vector<256x128xf32>
    %47 = vector.extract_strided_slice %34 {offsets = [2, 0, 0], sizes = [16, 16, 128], strides = [1, 1, 1]} : vector<20x16x128xbf16> to vector<16x16x128xbf16>
    %48 = vector.shape_cast %47 : vector<16x16x128xbf16> to vector<256x128xbf16>
    %c11 = arith.constant 11 : index
    %c0_25 = arith.constant 0 : index
    %c0_26 = arith.constant 0 : index
    %49 = vector.load %arg2[%c11, %c0_25, %c0_26] : memref<25x128x128xbf16, #tpu.memory_space<vmem>>, vector<1x128x128xbf16>
    %50 = vector.shape_cast %49 : vector<1x128x128xbf16> to vector<128x128xbf16>
    %cst_27 = arith.constant dense<0.000000e+00> : vector<256x128xf32>
    %51 = tpu.matmul %48, %50, %cst_27 {dimension_numbers = #tpu.dot_dimension_numbers<[1], [0], [0], [1], [0, 0, 1, 1], [], []>} : vector<256x128xbf16>, vector<128x128xbf16>, vector<256x128xf32> -> vector<256x128xf32>
    %52 = arith.addf %46, %51 : vector<256x128xf32>
    %53 = vector.extract_strided_slice %34 {offsets = [3, 0, 0], sizes = [16, 16, 128], strides = [1, 1, 1]} : vector<20x16x128xbf16> to vector<16x16x128xbf16>
    %54 = vector.shape_cast %53 : vector<16x16x128xbf16> to vector<256x128xbf16>
    %c16 = arith.constant 16 : index
    %c0_28 = arith.constant 0 : index
    %c0_29 = arith.constant 0 : index
    %55 = vector.load %arg2[%c16, %c0_28, %c0_29] : memref<25x128x128xbf16, #tpu.memory_space<vmem>>, vector<1x128x128xbf16>
    %56 = vector.shape_cast %55 : vector<1x128x128xbf16> to vector<128x128xbf16>
    %cst_30 = arith.constant dense<0.000000e+00> : vector<256x128xf32>
    %57 = tpu.matmul %54, %56, %cst_30 {dimension_numbers = #tpu.dot_dimension_numbers<[1], [0], [0], [1], [0, 0, 1, 1], [], []>} : vector<256x128xbf16>, vector<128x128xbf16>, vector<256x128xf32> -> vector<256x128xf32>
    %58 = arith.addf %52, %57 : vector<256x128xf32>
    %59 = vector.extract_strided_slice %34 {offsets = [4, 0, 0], sizes = [16, 16, 128], strides = [1, 1, 1]} : vector<20x16x128xbf16> to vector<16x16x128xbf16>
    %60 = vector.shape_cast %59 : vector<16x16x128xbf16> to vector<256x128xbf16>
    %c21 = arith.constant 21 : index
    %c0_31 = arith.constant 0 : index
    %c0_32 = arith.constant 0 : index
    %61 = vector.load %arg2[%c21, %c0_31, %c0_32] : memref<25x128x128xbf16, #tpu.memory_space<vmem>>, vector<1x128x128xbf16>
    %62 = vector.shape_cast %61 : vector<1x128x128xbf16> to vector<128x128xbf16>
    %cst_33 = arith.constant dense<0.000000e+00> : vector<256x128xf32>
    %63 = tpu.matmul %60, %62, %cst_33 {dimension_numbers = #tpu.dot_dimension_numbers<[1], [0], [0], [1], [0, 0, 1, 1], [], []>} : vector<256x128xbf16>, vector<128x128xbf16>, vector<256x128xf32> -> vector<256x128xf32>
    %64 = arith.addf %58, %63 : vector<256x128xf32>
    %65 = vector.extract_strided_slice %1 {offsets = [0, 2, 0], sizes = [20, 16, 128], strides = [1, 1, 1]} : vector<20x20x128xbf16> to vector<20x16x128xbf16>
    %66 = vector.extract_strided_slice %65 {offsets = [0, 0, 0], sizes = [16, 16, 128], strides = [1, 1, 1]} : vector<20x16x128xbf16> to vector<16x16x128xbf16>
    %67 = vector.shape_cast %66 : vector<16x16x128xbf16> to vector<256x128xbf16>
    %c2 = arith.constant 2 : index
    %c0_34 = arith.constant 0 : index
    %c0_35 = arith.constant 0 : index
    %68 = vector.load %arg2[%c2, %c0_34, %c0_35] : memref<25x128x128xbf16, #tpu.memory_space<vmem>>, vector<1x128x128xbf16>
    %69 = vector.shape_cast %68 : vector<1x128x128xbf16> to vector<128x128xbf16>
    %cst_36 = arith.constant dense<0.000000e+00> : vector<256x128xf32>
    %70 = tpu.matmul %67, %69, %cst_36 {dimension_numbers = #tpu.dot_dimension_numbers<[1], [0], [0], [1], [0, 0, 1, 1], [], []>} : vector<256x128xbf16>, vector<128x128xbf16>, vector<256x128xf32> -> vector<256x128xf32>
    %71 = arith.addf %64, %70 : vector<256x128xf32>
    %72 = vector.extract_strided_slice %65 {offsets = [1, 0, 0], sizes = [16, 16, 128], strides = [1, 1, 1]} : vector<20x16x128xbf16> to vector<16x16x128xbf16>
    %73 = vector.shape_cast %72 : vector<16x16x128xbf16> to vector<256x128xbf16>
    %c7 = arith.constant 7 : index
    %c0_37 = arith.constant 0 : index
    %c0_38 = arith.constant 0 : index
    %74 = vector.load %arg2[%c7, %c0_37, %c0_38] : memref<25x128x128xbf16, #tpu.memory_space<vmem>>, vector<1x128x128xbf16>
    %75 = vector.shape_cast %74 : vector<1x128x128xbf16> to vector<128x128xbf16>
    %cst_39 = arith.constant dense<0.000000e+00> : vector<256x128xf32>
    %76 = tpu.matmul %73, %75, %cst_39 {dimension_numbers = #tpu.dot_dimension_numbers<[1], [0], [0], [1], [0, 0, 1, 1], [], []>} : vector<256x128xbf16>, vector<128x128xbf16>, vector<256x128xf32> -> vector<256x128xf32>
    %77 = arith.addf %71, %76 : vector<256x128xf32>
    %78 = vector.extract_strided_slice %65 {offsets = [2, 0, 0], sizes = [16, 16, 128], strides = [1, 1, 1]} : vector<20x16x128xbf16> to vector<16x16x128xbf16>
    %79 = vector.shape_cast %78 : vector<16x16x128xbf16> to vector<256x128xbf16>
    %c12 = arith.constant 12 : index
    %c0_40 = arith.constant 0 : index
    %c0_41 = arith.constant 0 : index
    %80 = vector.load %arg2[%c12, %c0_40, %c0_41] : memref<25x128x128xbf16, #tpu.memory_space<vmem>>, vector<1x128x128xbf16>
    %81 = vector.shape_cast %80 : vector<1x128x128xbf16> to vector<128x128xbf16>
    %cst_42 = arith.constant dense<0.000000e+00> : vector<256x128xf32>
    %82 = tpu.matmul %79, %81, %cst_42 {dimension_numbers = #tpu.dot_dimension_numbers<[1], [0], [0], [1], [0, 0, 1, 1], [], []>} : vector<256x128xbf16>, vector<128x128xbf16>, vector<256x128xf32> -> vector<256x128xf32>
    %83 = arith.addf %77, %82 : vector<256x128xf32>
    %84 = vector.extract_strided_slice %65 {offsets = [3, 0, 0], sizes = [16, 16, 128], strides = [1, 1, 1]} : vector<20x16x128xbf16> to vector<16x16x128xbf16>
    %85 = vector.shape_cast %84 : vector<16x16x128xbf16> to vector<256x128xbf16>
    %c17 = arith.constant 17 : index
    %c0_43 = arith.constant 0 : index
    %c0_44 = arith.constant 0 : index
    %86 = vector.load %arg2[%c17, %c0_43, %c0_44] : memref<25x128x128xbf16, #tpu.memory_space<vmem>>, vector<1x128x128xbf16>
    %87 = vector.shape_cast %86 : vector<1x128x128xbf16> to vector<128x128xbf16>
    %cst_45 = arith.constant dense<0.000000e+00> : vector<256x128xf32>
    %88 = tpu.matmul %85, %87, %cst_45 {dimension_numbers = #tpu.dot_dimension_numbers<[1], [0], [0], [1], [0, 0, 1, 1], [], []>} : vector<256x128xbf16>, vector<128x128xbf16>, vector<256x128xf32> -> vector<256x128xf32>
    %89 = arith.addf %83, %88 : vector<256x128xf32>
    %90 = vector.extract_strided_slice %65 {offsets = [4, 0, 0], sizes = [16, 16, 128], strides = [1, 1, 1]} : vector<20x16x128xbf16> to vector<16x16x128xbf16>
    %91 = vector.shape_cast %90 : vector<16x16x128xbf16> to vector<256x128xbf16>
    %c22 = arith.constant 22 : index
    %c0_46 = arith.constant 0 : index
    %c0_47 = arith.constant 0 : index
    %92 = vector.load %arg2[%c22, %c0_46, %c0_47] : memref<25x128x128xbf16, #tpu.memory_space<vmem>>, vector<1x128x128xbf16>
    %93 = vector.shape_cast %92 : vector<1x128x128xbf16> to vector<128x128xbf16>
    %cst_48 = arith.constant dense<0.000000e+00> : vector<256x128xf32>
    %94 = tpu.matmul %91, %93, %cst_48 {dimension_numbers = #tpu.dot_dimension_numbers<[1], [0], [0], [1], [0, 0, 1, 1], [], []>} : vector<256x128xbf16>, vector<128x128xbf16>, vector<256x128xf32> -> vector<256x128xf32>
    %95 = arith.addf %89, %94 : vector<256x128xf32>
    %96 = vector.extract_strided_slice %1 {offsets = [0, 3, 0], sizes = [20, 16, 128], strides = [1, 1, 1]} : vector<20x20x128xbf16> to vector<20x16x128xbf16>
    %97 = vector.extract_strided_slice %96 {offsets = [0, 0, 0], sizes = [16, 16, 128], strides = [1, 1, 1]} : vector<20x16x128xbf16> to vector<16x16x128xbf16>
    %98 = vector.shape_cast %97 : vector<16x16x128xbf16> to vector<256x128xbf16>
    %c3 = arith.constant 3 : index
    %c0_49 = arith.constant 0 : index
    %c0_50 = arith.constant 0 : index
    %99 = vector.load %arg2[%c3, %c0_49, %c0_50] : memref<25x128x128xbf16, #tpu.memory_space<vmem>>, vector<1x128x128xbf16>
    %100 = vector.shape_cast %99 : vector<1x128x128xbf16> to vector<128x128xbf16>
    %cst_51 = arith.constant dense<0.000000e+00> : vector<256x128xf32>
    %101 = tpu.matmul %98, %100, %cst_51 {dimension_numbers = #tpu.dot_dimension_numbers<[1], [0], [0], [1], [0, 0, 1, 1], [], []>} : vector<256x128xbf16>, vector<128x128xbf16>, vector<256x128xf32> -> vector<256x128xf32>
    %102 = arith.addf %95, %101 : vector<256x128xf32>
    %103 = vector.extract_strided_slice %96 {offsets = [1, 0, 0], sizes = [16, 16, 128], strides = [1, 1, 1]} : vector<20x16x128xbf16> to vector<16x16x128xbf16>
    %104 = vector.shape_cast %103 : vector<16x16x128xbf16> to vector<256x128xbf16>
    %c8 = arith.constant 8 : index
    %c0_52 = arith.constant 0 : index
    %c0_53 = arith.constant 0 : index
    %105 = vector.load %arg2[%c8, %c0_52, %c0_53] : memref<25x128x128xbf16, #tpu.memory_space<vmem>>, vector<1x128x128xbf16>
    %106 = vector.shape_cast %105 : vector<1x128x128xbf16> to vector<128x128xbf16>
    %cst_54 = arith.constant dense<0.000000e+00> : vector<256x128xf32>
    %107 = tpu.matmul %104, %106, %cst_54 {dimension_numbers = #tpu.dot_dimension_numbers<[1], [0], [0], [1], [0, 0, 1, 1], [], []>} : vector<256x128xbf16>, vector<128x128xbf16>, vector<256x128xf32> -> vector<256x128xf32>
    %108 = arith.addf %102, %107 : vector<256x128xf32>
    %109 = vector.extract_strided_slice %96 {offsets = [2, 0, 0], sizes = [16, 16, 128], strides = [1, 1, 1]} : vector<20x16x128xbf16> to vector<16x16x128xbf16>
    %110 = vector.shape_cast %109 : vector<16x16x128xbf16> to vector<256x128xbf16>
    %c13 = arith.constant 13 : index
    %c0_55 = arith.constant 0 : index
    %c0_56 = arith.constant 0 : index
    %111 = vector.load %arg2[%c13, %c0_55, %c0_56] : memref<25x128x128xbf16, #tpu.memory_space<vmem>>, vector<1x128x128xbf16>
    %112 = vector.shape_cast %111 : vector<1x128x128xbf16> to vector<128x128xbf16>
    %cst_57 = arith.constant dense<0.000000e+00> : vector<256x128xf32>
    %113 = tpu.matmul %110, %112, %cst_57 {dimension_numbers = #tpu.dot_dimension_numbers<[1], [0], [0], [1], [0, 0, 1, 1], [], []>} : vector<256x128xbf16>, vector<128x128xbf16>, vector<256x128xf32> -> vector<256x128xf32>
    %114 = arith.addf %108, %113 : vector<256x128xf32>
    %115 = vector.extract_strided_slice %96 {offsets = [3, 0, 0], sizes = [16, 16, 128], strides = [1, 1, 1]} : vector<20x16x128xbf16> to vector<16x16x128xbf16>
    %116 = vector.shape_cast %115 : vector<16x16x128xbf16> to vector<256x128xbf16>
    %c18 = arith.constant 18 : index
    %c0_58 = arith.constant 0 : index
    %c0_59 = arith.constant 0 : index
    %117 = vector.load %arg2[%c18, %c0_58, %c0_59] : memref<25x128x128xbf16, #tpu.memory_space<vmem>>, vector<1x128x128xbf16>
    %118 = vector.shape_cast %117 : vector<1x128x128xbf16> to vector<128x128xbf16>
    %cst_60 = arith.constant dense<0.000000e+00> : vector<256x128xf32>
    %119 = tpu.matmul %116, %118, %cst_60 {dimension_numbers = #tpu.dot_dimension_numbers<[1], [0], [0], [1], [0, 0, 1, 1], [], []>} : vector<256x128xbf16>, vector<128x128xbf16>, vector<256x128xf32> -> vector<256x128xf32>
    %120 = arith.addf %114, %119 : vector<256x128xf32>
    %121 = vector.extract_strided_slice %96 {offsets = [4, 0, 0], sizes = [16, 16, 128], strides = [1, 1, 1]} : vector<20x16x128xbf16> to vector<16x16x128xbf16>
    %122 = vector.shape_cast %121 : vector<16x16x128xbf16> to vector<256x128xbf16>
    %c23 = arith.constant 23 : index
    %c0_61 = arith.constant 0 : index
    %c0_62 = arith.constant 0 : index
    %123 = vector.load %arg2[%c23, %c0_61, %c0_62] : memref<25x128x128xbf16, #tpu.memory_space<vmem>>, vector<1x128x128xbf16>
    %124 = vector.shape_cast %123 : vector<1x128x128xbf16> to vector<128x128xbf16>
    %cst_63 = arith.constant dense<0.000000e+00> : vector<256x128xf32>
    %125 = tpu.matmul %122, %124, %cst_63 {dimension_numbers = #tpu.dot_dimension_numbers<[1], [0], [0], [1], [0, 0, 1, 1], [], []>} : vector<256x128xbf16>, vector<128x128xbf16>, vector<256x128xf32> -> vector<256x128xf32>
    %126 = arith.addf %120, %125 : vector<256x128xf32>
    %127 = vector.extract_strided_slice %1 {offsets = [0, 4, 0], sizes = [20, 16, 128], strides = [1, 1, 1]} : vector<20x20x128xbf16> to vector<20x16x128xbf16>
    %128 = vector.extract_strided_slice %127 {offsets = [0, 0, 0], sizes = [16, 16, 128], strides = [1, 1, 1]} : vector<20x16x128xbf16> to vector<16x16x128xbf16>
    %129 = vector.shape_cast %128 : vector<16x16x128xbf16> to vector<256x128xbf16>
    %c4 = arith.constant 4 : index
    %c0_64 = arith.constant 0 : index
    %c0_65 = arith.constant 0 : index
    %130 = vector.load %arg2[%c4, %c0_64, %c0_65] : memref<25x128x128xbf16, #tpu.memory_space<vmem>>, vector<1x128x128xbf16>
    %131 = vector.shape_cast %130 : vector<1x128x128xbf16> to vector<128x128xbf16>
    %cst_66 = arith.constant dense<0.000000e+00> : vector<256x128xf32>
    %132 = tpu.matmul %129, %131, %cst_66 {dimension_numbers = #tpu.dot_dimension_numbers<[1], [0], [0], [1], [0, 0, 1, 1], [], []>} : vector<256x128xbf16>, vector<128x128xbf16>, vector<256x128xf32> -> vector<256x128xf32>
    %133 = arith.addf %126, %132 : vector<256x128xf32>
    %134 = vector.extract_strided_slice %127 {offsets = [1, 0, 0], sizes = [16, 16, 128], strides = [1, 1, 1]} : vector<20x16x128xbf16> to vector<16x16x128xbf16>
    %135 = vector.shape_cast %134 : vector<16x16x128xbf16> to vector<256x128xbf16>
    %c9 = arith.constant 9 : index
    %c0_67 = arith.constant 0 : index
    %c0_68 = arith.constant 0 : index
    %136 = vector.load %arg2[%c9, %c0_67, %c0_68] : memref<25x128x128xbf16, #tpu.memory_space<vmem>>, vector<1x128x128xbf16>
    %137 = vector.shape_cast %136 : vector<1x128x128xbf16> to vector<128x128xbf16>
    %cst_69 = arith.constant dense<0.000000e+00> : vector<256x128xf32>
    %138 = tpu.matmul %135, %137, %cst_69 {dimension_numbers = #tpu.dot_dimension_numbers<[1], [0], [0], [1], [0, 0, 1, 1], [], []>} : vector<256x128xbf16>, vector<128x128xbf16>, vector<256x128xf32> -> vector<256x128xf32>
    %139 = arith.addf %133, %138 : vector<256x128xf32>
    %140 = vector.extract_strided_slice %127 {offsets = [2, 0, 0], sizes = [16, 16, 128], strides = [1, 1, 1]} : vector<20x16x128xbf16> to vector<16x16x128xbf16>
    %141 = vector.shape_cast %140 : vector<16x16x128xbf16> to vector<256x128xbf16>
    %c14 = arith.constant 14 : index
    %c0_70 = arith.constant 0 : index
    %c0_71 = arith.constant 0 : index
    %142 = vector.load %arg2[%c14, %c0_70, %c0_71] : memref<25x128x128xbf16, #tpu.memory_space<vmem>>, vector<1x128x128xbf16>
    %143 = vector.shape_cast %142 : vector<1x128x128xbf16> to vector<128x128xbf16>
    %cst_72 = arith.constant dense<0.000000e+00> : vector<256x128xf32>
    %144 = tpu.matmul %141, %143, %cst_72 {dimension_numbers = #tpu.dot_dimension_numbers<[1], [0], [0], [1], [0, 0, 1, 1], [], []>} : vector<256x128xbf16>, vector<128x128xbf16>, vector<256x128xf32> -> vector<256x128xf32>
    %145 = arith.addf %139, %144 : vector<256x128xf32>
    %146 = vector.extract_strided_slice %127 {offsets = [3, 0, 0], sizes = [16, 16, 128], strides = [1, 1, 1]} : vector<20x16x128xbf16> to vector<16x16x128xbf16>
    %147 = vector.shape_cast %146 : vector<16x16x128xbf16> to vector<256x128xbf16>
    %c19 = arith.constant 19 : index
    %c0_73 = arith.constant 0 : index
    %c0_74 = arith.constant 0 : index
    %148 = vector.load %arg2[%c19, %c0_73, %c0_74] : memref<25x128x128xbf16, #tpu.memory_space<vmem>>, vector<1x128x128xbf16>
    %149 = vector.shape_cast %148 : vector<1x128x128xbf16> to vector<128x128xbf16>
    %cst_75 = arith.constant dense<0.000000e+00> : vector<256x128xf32>
    %150 = tpu.matmul %147, %149, %cst_75 {dimension_numbers = #tpu.dot_dimension_numbers<[1], [0], [0], [1], [0, 0, 1, 1], [], []>} : vector<256x128xbf16>, vector<128x128xbf16>, vector<256x128xf32> -> vector<256x128xf32>
    %151 = arith.addf %145, %150 : vector<256x128xf32>
    %152 = vector.extract_strided_slice %127 {offsets = [4, 0, 0], sizes = [16, 16, 128], strides = [1, 1, 1]} : vector<20x16x128xbf16> to vector<16x16x128xbf16>
    %153 = vector.shape_cast %152 : vector<16x16x128xbf16> to vector<256x128xbf16>
    %c24 = arith.constant 24 : index
    %c0_76 = arith.constant 0 : index
    %c0_77 = arith.constant 0 : index
    %154 = vector.load %arg2[%c24, %c0_76, %c0_77] : memref<25x128x128xbf16, #tpu.memory_space<vmem>>, vector<1x128x128xbf16>
    %155 = vector.shape_cast %154 : vector<1x128x128xbf16> to vector<128x128xbf16>
    %cst_78 = arith.constant dense<0.000000e+00> : vector<256x128xf32>
    %156 = tpu.matmul %153, %155, %cst_78 {dimension_numbers = #tpu.dot_dimension_numbers<[1], [0], [0], [1], [0, 0, 1, 1], [], []>} : vector<256x128xbf16>, vector<128x128xbf16>, vector<256x128xf32> -> vector<256x128xf32>
    %157 = arith.addf %151, %156 : vector<256x128xf32>
    %c0_79 = arith.constant 0 : index
    %c0_80 = arith.constant 0 : index
    %c0_81 = arith.constant 0 : index
    %158 = vector.load %arg3[%c0_79, %c0_80, %c0_81] : memref<1x256x128xf32, #tpu.memory_space<vmem>>, vector<1x256x128xf32>
    %159 = vector.shape_cast %158 : vector<1x256x128xf32> to vector<256x128xf32>
    %160 = vector.shape_cast %157 : vector<256x128xf32> to vector<1x256x128xf32>
    tpu.vector_store %arg3[%c0_79, %c0_80, %c0_81], %160 {strides = array<i32>} : memref<1x256x128xf32, #tpu.memory_space<vmem>>, vector<1x256x128xf32>,
    %cst_82 = arith.constant dense<0.000000e+00> : vector<128xf32>
    %161 = vector.multi_reduction <add>, %157, %cst_82 [0] : vector<256x128xf32> to vector<128xf32>
    %162 = vector.shape_cast %161 : vector<128xf32> to vector<1x128xf32>
    %c0_83 = arith.constant 0 : index
    %c0_84 = arith.constant 0 : index
    %c0_85 = arith.constant 0 : index
    %163 = vector.load %arg4[%c0_83, %c0_84, %c0_85] : memref<1x1x128xf32, #tpu.memory_space<vmem>>, vector<1x1x128xf32>
    %164 = vector.shape_cast %163 : vector<1x1x128xf32> to vector<1x128xf32>
    %165 = vector.shape_cast %162 : vector<1x128xf32> to vector<1x1x128xf32>
    tpu.vector_store %arg4[%c0_83, %c0_84, %c0_85], %165 {strides = array<i32>} : memref<1x1x128xf32, #tpu.memory_space<vmem>>, vector<1x1x128xf32>,
    %166 = arith.mulf %157, %157 : vector<256x128xf32>
    %cst_86 = arith.constant dense<0.000000e+00> : vector<128xf32>
    %167 = vector.multi_reduction <add>, %166, %cst_86 [0] : vector<256x128xf32> to vector<128xf32>
    %168 = vector.shape_cast %167 : vector<128xf32> to vector<1x128xf32>
    %c0_87 = arith.constant 0 : index
    %c0_88 = arith.constant 0 : index
    %c0_89 = arith.constant 0 : index
    %169 = vector.load %arg5[%c0_87, %c0_88, %c0_89] : memref<1x1x128xf32, #tpu.memory_space<vmem>>, vector<1x1x128xf32>
    %170 = vector.shape_cast %169 : vector<1x1x128xf32> to vector<1x128xf32>
    %171 = vector.shape_cast %168 : vector<1x128xf32> to vector<1x1x128xf32>
    tpu.vector_store %arg5[%c0_87, %c0_88, %c0_89], %171 {strides = array<i32>} : memref<1x1x128xf32, #tpu.memory_space<vmem>>, vector<1x1x128xf32>,
    return
  }
  func.func @transform_0(%arg0: i32) -> (i32, i32, i32, i32) {
    %c0_i32 = arith.constant 0 : i32
    %c0_i32_0 = arith.constant 0 : i32
    %c0_i32_1 = arith.constant 0 : i32
    %c0_i32_2 = arith.constant 0 : i32
    return %arg0, %c0_i32, %c0_i32_0, %c0_i32_1 : i32, i32, i32, i32
  }
  func.func @transform_1(%arg0: i32) -> (i32, i32, i32) {
    %c0_i32 = arith.constant 0 : i32
    %c0_i32_0 = arith.constant 0 : i32
    %c0_i32_1 = arith.constant 0 : i32
    %c0_i32_2 = arith.constant 0 : i32
    return %c0_i32, %c0_i32_0, %c0_i32_1 : i32, i32, i32
  }
  func.func @transform_2(%arg0: i32) -> (i32, i32, i32) {
    %c0_i32 = arith.constant 0 : i32
    %c0_i32_0 = arith.constant 0 : i32
    %c0_i32_1 = arith.constant 0 : i32
    return %arg0, %c0_i32, %c0_i32_0 : i32, i32, i32
  }
  func.func @transform_3(%arg0: i32) -> (i32, i32, i32) {
    %c0_i32 = arith.constant 0 : i32
    %c0_i32_0 = arith.constant 0 : i32
    %c0_i32_1 = arith.constant 0 : i32
    return %arg0, %c0_i32, %c0_i32_0 : i32, i32, i32
  }
  func.func @transform_4(%arg0: i32) -> (i32, i32, i32) {
    %c0_i32 = arith.constant 0 : i32
    %c0_i32_0 = arith.constant 0 : i32
    %c0_i32_1 = arith.constant 0 : i32
    return %arg0, %c0_i32, %c0_i32_0 : i32, i32, i32
  }
}

</mosaic_0001>

<bundles_post_ra>
// kernel: tpu_custom_call.1
= control target key start
LH: loop header
LB: loop body
LE: loop exit
PB: predicated region body
PF: predicated region fallthrough
CT: control target
= control target key end

     0   :  { %10 = vsyncpa [#allocation3], 0  ;;  %s14465_s0 = inlined_call_operand.vmem [shape: bf16[2,20,20,128], index: 0, kind: input, shape index: {}]   ;;  %s14466_s1 = inlined_call_operand.hbm [shape: bf16[25,128,128], index: 1, kind: input, shape index: {}]   ;;  %s14467_s2 = inlined_call_operand.hbm [shape: f32[2,256,128], index: 2, kind: output, shape index: {0}]   ;;  %s14468_s3 = inlined_call_operand.hbm [shape: f32[2,1,128], index: 3, kind: output, shape index: {1}]   ;;  %s14469_s4 = inlined_call_operand.hbm [shape: f32[2,1,128], index: 4, kind: output, shape index: {2}]  }
   0x1   :  { %11 = vsyncpa [#allocation4], 0 }
   0x2   :  { %13 = vsyncpa [#allocation4 + $0x1], 0 }
   0x3   :  { %14 = vsyncpa [#allocation7], 0 }
   0x4   :  { %16 = vsyncpa [#allocation7 + $0x1], 0  ;;  %s12055_s15 = smov 0   ;;  %s12057_s16 = smov 0  }
   0x5   :  { %s12059_s17 = smov 0   ;;  %s12061_s18 = smov 0  }
   0x6 LB: > { %s12076_s19 = sadd.s32 4294967295, %s12020_s18   ;;  %s8520_s20 = sadd.s32 4294967294, %s12020_s18   ;;  %s12020_s18 = sphi %s12061_s18, %s15050_s18   ;;  %s12016_s17 = sphi %s12059_s17, %s15049_s17   ;;  %s12012_s16 = sphi %s12057_s16, %s15048_s16   ;;  %s12008_s15 = sphi %s12055_s15, %s15047_s15  }
   0x7   : > { %s12080_s21 = sadd.s32 1, %s12020_s18   ;;  %s76_s22 = sadd.s32 1, %s12016_s17 }
   0x8   : > { %s73_s23 = ssub.s32 %s12020_s18, %s12080_s21  ;;  %p86_p0 = scmp.ne.s32.totalorder %s12016_s17, %s12012_s16 }
   0x9   : > { %p74_p1 = scmp.eq.s32.totalorder %s73_s23, 0  ;;  %p87_p2 = scmp.eq.s32.totalorder %s12076_s19, 1 }
   0xa   : > { %p92_p3 = scmp.ne.s32.totalorder %s12012_s16, %s12008_s15  ;;  %p93_p4 = scmp.eq.s32.totalorder %s8520_s20, 1 }
   0xb   : > { %s12093_s24 = scalar_select %p74_p1, %s12016_s17, %s76_s22  }
   0xc   : > { %p12095_p5 = por %p87_p2, %p86_p0  ;;  %p12099_p6 = por %p93_p4, %p92_p3 }
   0xd   : > { %p8521_p7 = scmp.ge.s32.totalorder %s12020_s18, 1  ;;  %p152_p8 = scmp.lt.s32.totalorder %s12020_s18, 3 }
   0xe   : > { %s14662_s25 = scalar_select %p12095_p5, 1, 0 }
   0xf   : > { %s14663_s26 = scalar_select %p12099_p6, 1, 0 }
  0x10   : > { %p14470_p9 = scmp.eq.s32.totalorder %s12076_s19, 0  ;;  %p12106_p10 = pnand %p8521_p7, %p152_p8 }
  0x11   : > { %s12022_s28 = smov [#allocation2]   ;;  %s11866_s7 = scalar_lea.hbm %s14466_s1, 25600 }
  0x12   : > { %s14664_s27 = scalar_select %p12106_p10, 1, 0 }
  0x13   : > { %s164_s29 = sshll.u32 %s12022_s28, 4  ;;  %p11471_p11 = pneg %p12106_p10  ;;  %s165_s29 = int_to_ptr.vmem [resolvable:$true] %s164_s29 }
  0x14   : > { %p11867_p13 = scmp.ne.s32.totalorder %s14466_s1, %s11866_s7  ;;  %p11873_p3 = scmp.lt.u32.totalorder %s11866_s7, %s14466_s1 }
  0x15   : > { %p12114_p12 = pnand %p14470_p9, %p11471_p11 }
  0x17   : > { %p11868_p0 = pneg %p12114_p12 }
  0x19   : > { %p11869_p1 = pnand %p11868_p0, %p11867_p13 }
  0x1b   : > { %p11870_p2 = pneg %p11869_p1 }
  0x1d   : > { %p11875_p4 = pnand %p11873_p3, %p11870_p2 }
  0x1f   : > { %11878 = shalt.err (!%p11875_p4)
}
  0x20   : > { %s11879_s12 = scalar_lea.vmem %s165_s29, 25600  ;;  %p11887_p9 = scmp.lt.s32.totalorder %s165_s29, %s165_s29 }
  0x21   : > { %p11880_p7 = scmp.ne.s32.totalorder %s165_s29, %s11879_s12  ;;  %p11888_p6 = scmp.lt.s32.totalorder %s11879_s12, %s11879_s12 }
  0x23   : > { %p11882_p8 = pnand %p11880_p7, %p11868_p0  ;;  %p11889_p5 = por %p11888_p6, %p11887_p9 }
  0x25   : > { %p11883_p11 = pneg %p11882_p8 }
  0x27   : > { %p11890_p10 = pnand %p11889_p5, %p11883_p11 }
  0x29   : > { %11893 = shalt.err (!%p11890_p10)
}
  0x2a   : > { %s12023_s13 = smov 64   ;;  %s12024_s14 = smov 4  }
  0x2b   : > { %11474 = dma.hbm_to_vmem [thread:$0]  (!%p12114_p12), %s14466_s1, 25600, %s165_s29, [#allocation3], %s12023_s13, %s12023_s13, %s12024_s14  }
  0x2c   : > { %p14666_p13 = scmp.ne.s32.totalorder %s14664_s27, 0 }
  0x2e   : > { %188 = sbr.rel (%p14666_p13) target bundleno = 1164 (0x48c), region = 28 }
  0x35   : > { %p14667_p1 = scmp.eq.s32.totalorder %s12076_s19, 0 }
  0x37   : > { %11995 = dma.done.wait (%p14667_p1), [#allocation3], 25600   ;;  %p14668_p0 = pmov %p14667_p1 }
  0x38   : > { %v11525_v0 = vld [vmem:[#allocation2 + $0x140] sm:$0xff]   ;;  %v11527_v2 = vld [vmem:[#allocation2 + $0x148] sm:$0xff]   ;;  %p222_p5 = scmp.lt.s32.totalorder %s12076_s19, 1  ;;  %v11529_v4 = vld [vmem:[#allocation2 + $0x150] sm:$0xff]   ;;  %vm3502_vm0 = vcmask 1042432   ;;  %vm3503_vm1 = vcmask 1046532  }
  0x39   : > { %11997 = vsyncadd (%p14668_p0), [#allocation3], 4294941696  ;;  %v11526_v1 = vld [vmem:[#allocation2 + $0x300] sm:$0xff]   ;;  %9476 = vmatprep.subr.bf16.mxu1 %v11525_v0  ;;  %v11528_v3 = vld [vmem:[#allocation2 + $0x308] sm:$0xff]   ;;  %v14670_v19 = vmov 0  ;;  %vm6692_vm9 = vcmask 1041408  }
  0x3a   : > { %10052 = vmatprep.subr.bf16.mxu0 %v11526_v1  ;;  %9477 = vmatpush3.bf16.msra.mxu1 %v11525_v0  ;;  %v11530_v5 = vld [vmem:[#allocation2 + $0x310] sm:$0xff]   ;;  %s223_s27 = scalar_select %p222_p5, %s12076_s19, 1  ;;  %v11531_v6 = vld [vmem:[#allocation2 + $0x158] sm:$0xff]   ;;  %v11533_v8 = vld [vmem:[#allocation2 + $0x160] sm:$0xff]   ;;  %vm5019_vm3 = vsmask.f32 2304 }
  0x3b   : > { %10053 = vmatpush3.bf16.msra.mxu0 %v11526_v1  ;;  %9478 = vmatprep.subr.bf16.mxu1 %v11527_v2  ;;  %v11532_v7 = vld [vmem:[#allocation2 + $0x318] sm:$0xff]   ;;  %v11534_v9 = vld [vmem:[#allocation2 + $0x320] sm:$0xff]   ;;  %v11535_v10 = vld [vmem:[#allocation2 + $0x168] sm:$0xff]   ;;  %vm5020_vm4 = vsmask.f32 6416  ;;  %vm6693_vm10 = vcmask 1045508  }
  0x3c   : > { %10054 = vmatprep.subr.bf16.mxu0 %v11528_v3  ;;  %s11460_s28 = smul.u32 240, %s223_s27  ;;  %v11536_v13 = vld [vmem:[#allocation2 + $0x328] sm:$0xff]   ;;  %v11537_v18 = vld [vmem:[#allocation2 + $0x170] sm:$0xff]   ;;  %vm12163_vm2 = vmor %vm3502_vm0, %vm3503_vm1  ;;  %vm1633_vm6 = vsmask.f32 3328  ;;  %s14303_s6 = sand.u32 1, %s12012_s16  }
  0x3d   : > { %v14671_v19 = vsel %vm12163_vm2, 4294967295, %v14670_v19  ;;  %v11538_v20 = vld [vmem:[#allocation2 + $0x330] sm:$0xff]   ;;  %v11539_v27 = vld [vmem:[#allocation2 + $0x178] sm:$0xff]   ;;  %v11543_v38 = vld [vmem:[#allocation2] sm:$0xff]   ;;  %vm1634_vm7 = vsmask.f32 7440 }
  0x3e   : > { %9479 = vmatpush3.bf16.msra.mxu1 %v11527_v2  ;;  %s12145_s5 = scalar_lea.vmem %s14465_s0, %s11460_s28  ;;  %14672 = vst [vmem:[#allocation13_spill] sm:$0xff] %v14671_v19  ;;  %v11540_v33 = vld [vmem:[#allocation2 + $0x338] sm:$0xff]   ;;  %v11544_v49 = vld [vmem:[#allocation2 + $0x440] sm:$0xff]   ;;  %v11545_v55 = vld [vmem:[#allocation2 + $0x448] sm:$0xff]   ;;  %s8526_s7 = sshll.u32 %s14303_s6, 8 }
  0x3f   : > { %10055 = vmatpush3.bf16.msra.mxu0 %v11528_v3  ;;  %9480 = vmatprep.subr.bf16.mxu1 %v11529_v4  ;;  %v12148_v11 = vld [vmem:[%s12145_s5 + $0xc] sm:$0xf]  ;;  %v12151_v12 = vld [vmem:[%s12145_s5 + $0x10] sm:$0xf]  ;;  %v12158_v15 = vld [vmem:[%s12145_s5 + $0x18] sm:$0xf] }
  0x40   : > { %10056 = vmatprep.subr.bf16.mxu0 %v11530_v5  ;;  %v12155_v14 = vcombine.low %v12148_v11, %v12151_v12  ;;  %14669 = vst [vmem:[#allocation12_spill] sm:$0xff] %v12158_v15  ;;  %v235_v16 = vld [vmem:[%s12145_s5 + $0x1c] sm:$0xf]  ;;  %v236_v17 = vld [vmem:[%s12145_s5 + $0x20] sm:$0x3]  ;;  %v8650_v21 = vrot.slane %v12158_v15, 9  ;;  %vm12419_vm5 = vmor %vm5019_vm3, %vm5020_vm4 }
  0x41   : > { %v3521_v22 = vrot.slane %v235_v16, 5  ;;  %v237_v23 = vld [vmem:[%s12145_s5 + $0x24] sm:$0xf]  ;;  %v3524_v24 = vrot.slane %v236_v17, 5  ;;  %v238_v25 = vld [vmem:[%s12145_s5 + $0x28] sm:$0xf]  ;;  %v12189_v52 = vcombine.low %v12158_v15, %v235_v16  ;;  %vm13187_vm8 = vmor %vm1633_vm6, %vm1634_vm7 }
  0x42   : > { %9481 = vmatpush3.bf16.msra.mxu1 %v11529_v4  ;;  %9492 = vmatprep.mubr.bf16.mxu1 %v12155_v14  ;;  %v239_v26 = vld [vmem:[%s12145_s5 + $0x2c] sm:$0x3]  ;;  %v3528_v30 = vrot.slane %v238_v25, 5  ;;  %v8651_v31 = vrot.slane %v237_v23, 9  ;;  %v240_v36 = vld [vmem:[%s12145_s5 + $0x30] sm:$0xf]  ;;  %v12200_v60 = vcombine.low %v237_v23, %v238_v25  ;;  %vm13676_vm11 = vmor %vm6692_vm9, %vm6693_vm10 }
  0x43   : > { %10057 = vmatpush3.bf16.msra.mxu0 %v11530_v5  ;;  %9482 = vmatprep.subr.bf16.mxu1 %v11531_v6  ;;  %v3522_v28 = vsel %vm12163_vm2, %v8650_v21, %v3521_v22  ;;  %v3523_v29 = vrot.slane %v3521_v22, 4  ;;  %v3531_v32 = vrot.slane %v239_v26, 5  ;;  %v241_v39 = vld [vmem:[%s12145_s5 + $0x34] sm:$0xf]  ;;  %v242_v40 = vld [vmem:[%s12145_s5 + $0x38] sm:$0x3] }
  0x44   : > { %10058 = vmatprep.subr.bf16.mxu0 %v11532_v7  ;;  %v3530_v35 = vrot.slane %v3528_v30, 4  ;;  %v8652_v41 = vrot.slane %v240_v36, 9  ;;  %v3535_v42 = vrot.slane %v241_v39, 5  ;;  %v3538_v43 = vrot.slane %v242_v40, 5  ;;  %v243_v46 = vld [vmem:[%s12145_s5 + $0x3c] sm:$0xf] }
  0x45   : > { %v3525_v34 = vsel %vm12163_vm2, %v3523_v29, %v3524_v24  ;;  %v3529_v44 = vsel %vm12163_vm2, %v8651_v31, %v3528_v30  ;;  %v244_v47 = vld [vmem:[%s12145_s5 + $0x40] sm:$0xf]  ;;  %v245_v48 = vld [vmem:[%s12145_s5 + $0x44] sm:$0x3]  ;;  %v8653_v57 = vrot.slane %v243_v46, 9  ;;  %14675 = vst [vmem:[#allocation16_spill] sm:$0xff] %v12200_v60  ;;  %v12226_v22 = vcombine.low %v240_v36, %v241_v39 }
  0x46   : > { %9483 = vmatpush3.bf16.msra.mxu1 %v11531_v6  ;;  %v12176_v37 = vcombine.low %v3522_v28, %v3525_v34  ;;  %v3532_v45 = vsel %vm12163_vm2, %v3530_v35, %v3531_v32  ;;  %v3537_v50 = vrot.slane %v3535_v42, 4  ;;  %v3542_v51 = vrot.slane %v244_v47, 5  ;;  %v12198_v59 = vld [vmem:[%s12145_s5 + $0x48] sm:$0xf]  ;;  %v12203_v62 = vld [vmem:[%s12145_s5 + $0x4c] sm:$0xf] }
  0x47   : > { %10059 = vmatpush3.bf16.msra.mxu0 %v11532_v7  ;;  %9484 = vmatprep.subr.bf16.mxu1 %v11533_v8  ;;  %v3536_v53 = vsel %vm12163_vm2, %v8652_v41, %v3535_v42  ;;  %v12193_v54 = vcombine.low %v3529_v44, %v3532_v45  ;;  %v3545_v58 = vrot.slane %v245_v48, 5  ;;  %v248_v63 = vld [vmem:[%s12145_s5 + $0x50] sm:$0x3]  ;;  %v8654_v0 = vrot.slane %v12198_v59, 9  ;;  %v11548_v4 = vld [vmem:[#allocation2 + $0x8] sm:$0xff]   ;;  %14677 = vst [vmem:[#allocation18_spill] sm:$0xff] %v12226_v22 }
  0x48   : > { %10060 = vmatprep.subr.bf16.mxu0 %v11534_v9  ;;  %14673 = vst [vmem:[#allocation14_spill] sm:$0xff] %v12176_v37  ;;  %10068 = vmatprep.mubr.bf16.mxu0 %v12176_v37  ;;  %v3539_v56 = vsel %vm12163_vm2, %v3537_v50, %v3538_v43  ;;  %v3544_v61 = vrot.slane %v3542_v51, 4  ;;  %v3549_v2 = vrot.slane %v12203_v62, 5  ;;  %v3552_v3 = vrot.slane %v248_v63, 5  ;;  %v250_v5 = vld [vmem:[%s12145_s5 + $0x58] sm:$0xf] }
  0x49   : > { %14674 = vst [vmem:[#allocation15_spill] sm:$0xff] %v12193_v54  ;;  %v12207_v1 = vcombine.low %v3536_v53, %v3539_v56  ;;  %v11549_v6 = vld [vmem:[#allocation2 + $0x450] sm:$0xff]   ;;  %v3556_v16 = vrot.slane %v250_v5, 5  ;;  %v252_v21 = vld [vmem:[%s12145_s5 + $0x60] sm:$0xf]  ;;  %v12232_v26 = vcombine.low %v243_v46, %v244_v47  ;;  %v11550_v29 = vld [vmem:[#allocation2 + $0x458] sm:$0xff]   ;;  %v12253_v47 = vcombine.low %v12198_v59, %v12203_v62 }
  0x4a   : > { %9485 = vmatpush3.bf16.msra.mxu1 %v11533_v8  ;;  %v3551_v7 = vrot.slane %v3549_v2, 4  ;;  %v249_v8 = vld [vmem:[%s12145_s5 + $0x54] sm:$0xf]  ;;  %v3550_v17 = vsel %vm12163_vm2, %v8654_v0, %v3549_v2  ;;  %v253_v23 = vld [vmem:[%s12145_s5 + $0x64] sm:$0xf]  ;;  %s14306_s8 = scalar_lea.vmem [#allocation5], %s8526_s7 }
  0x4b   : > { %10061 = vmatpush3.bf16.msra.mxu0 %v11534_v9  ;;  %9486 = vmatprep.subr.bf16.mxu1 %v11535_v10  ;;  %14676 = vst [vmem:[#allocation17_spill] sm:$0xff] %v12207_v1  ;;  %v3543_v9 = vsel %vm12163_vm2, %v8653_v57, %v3542_v51  ;;  %v254_v24 = vld [vmem:[%s12145_s5 + $0x68] sm:$0x3]  ;;  %14679 = vst [vmem:[#allocation20_spill] sm:$0xff] %v12232_v26  ;;  %v3563_v28 = vrot.slane %v253_v23, 5  ;;  %v3558_v31 = vrot.slane %v3556_v16, 4 }
  0x4c   : > { %10062 = vmatprep.subr.bf16.mxu0 %v11536_v13  ;;  %v3566_v35 = vrot.slane %v254_v24, 5  ;;  %v256_v36 = vld [vmem:[%s12145_s5 + $0x70] sm:$0xf]  ;;  %v255_v39 = vld [vmem:[%s12145_s5 + $0x6c] sm:$0xf]  ;;  %v11554_v42 = vld [vmem:[#allocation2 + $0x460] sm:$0xff]   ;;  %v12257_v50 = vcombine.low %v249_v8, %v250_v5  ;;  %v12269_v63 = vcombine.low %v252_v21, %v253_v23 }
  0x4d   : > { %v3565_v34 = vrot.slane %v3563_v28, 4  ;;  %v3570_v43 = vrot.slane %v256_v36, 5  ;;  %v257_v46 = vld [vmem:[%s12145_s5 + $0x74] sm:$0x3]  ;;  %14681 = vst [vmem:[#allocation22_spill] sm:$0xff] %v12253_v47  ;;  %v11563_v48 = vld [vmem:[#allocation2 + $0x20] sm:$0xff]  }
  0x4e   : > { %9487 = vmatpush3.bf16.msra.mxu1 %v11535_v10  ;;  %v3546_v10 = vsel %vm12163_vm2, %v3544_v61, %v3545_v58  ;;  %v8657_v53 = vrot.slane %v255_v39, 9  ;;  %v3573_v56 = vrot.slane %v257_v46, 5  ;;  %v11555_v57 = vld [vmem:[#allocation2 + $0x468] sm:$0xff]   ;;  %v11559_v62 = vld [vmem:[#allocation2 + $0x470] sm:$0xff]   ;;  %v11575_v5 = vld [vmem:[#allocation2 + $0x38] sm:$0xff]   ;;  %v14473_v23 = vshrl.u32 %v12151_v12, 16 }
  0x4f   : > { %10063 = vmatpush3.bf16.msra.mxu0 %v11536_v13  ;;  %9488 = vmatprep.subr.bf16.mxu1 %v11537_v18  ;;  %v11553_v13 = vld [vmem:[#allocation2 + $0x10] sm:$0xff]   ;;  %v12230_v25 = vcombine.low %v3543_v9, %v3546_v10  ;;  %v3567_v45 = vsel %vm12163_vm2, %v3565_v34, %v3566_v35  ;;  %v11567_v58 = vld [vmem:[#allocation2 + $0x28] sm:$0xff]   ;;  %v11564_v10 = vld [vmem:[#allocation2 + $0x580] sm:$0xff]   ;;  %s8875_s9 = sshll.u32 %s12076_s19, 12  ;;  %s8367_s10 = sshll.u32 %s14306_s8, 4  ;;  %s14349_s10 = int_to_ptr.vmem [resolvable:$true] %s8367_s10 }
  0x50   : > { %10064 = vmatprep.subr.bf16.mxu0 %v11538_v20  ;;  %v3571_v59 = vsel %vm12163_vm2, %v8657_v53, %v3570_v43  ;;  %v11571_v0 = vld [vmem:[#allocation2 + $0x30] sm:$0xff]   ;;  %v12289_v9 = vld [vmem:[%s12145_s5 + $0x88] sm:$0xf]  ;;  %v12359_v46 = vld [vmem:[%s12145_s5 + $0x8c] sm:$0x3]  ;;  %s14347_s13 = scalar_lea.hbm %s14467_s2, %s8875_s9  ;;  %s8346_s14 = scalar_lea.sflag [#allocation4], %s14303_s6 }
  0x51   : > { %14678 = vst [vmem:[#allocation19_spill] sm:$0xff] %v12230_v25  ;;  %v12309_v24 = vld [vmem:[%s12145_s5 + $0x90] sm:$0xf]  ;;  %14689 = vst [vmem:[#allocation30_spill] sm:$0xff] %v12359_v46  ;;  %v11579_v53 = vld [vmem:[#allocation2 + $0x5a0] sm:$0xff]   ;;  %s11894_s22 = scalar_lea.vmem %s14349_s10, 4096 }
  0x52   : > { %9489 = vmatpush3.bf16.msra.mxu1 %v11537_v18  ;;  %v3553_v18 = vsel %vm12163_vm2, %v3551_v7, %v3552_v3  ;;  %v12273_v3 = vcombine.low %v255_v39, %v256_v36  ;;  %v12282_v7 = vld [vmem:[%s12145_s5 + $0x7c] sm:$0xf]  ;;  %v12332_v36 = vrot.slane %v14473_v23, 5  ;;  %p11895_p6 = scmp.ne.s32.totalorder %s14349_s10, %s11894_s22  ;;  %p15045_p9 = scmp.ne.s32.totalorder %s14662_s25, 0 }
  0x53   : > { %10065 = vmatpush3.bf16.msra.mxu0 %v11538_v20  ;;  %9490 = vmatprep.subr.bf16.mxu1 %v11539_v27  ;;  %v251_v20 = vld [vmem:[%s12145_s5 + $0x5c] sm:$0x3]  ;;  %v12234_v30 = vcombine.low %v3550_v17, %v3553_v18  ;;  %v11568_v18 = vld [vmem:[#allocation2 + $0x588] sm:$0xff]   ;;  %v3577_v39 = vrot.slane %v12282_v7, 5  ;;  %s12025_s23 = smov [#allocation5]  }
  0x54   : > { %10066 = vmatprep.subr.bf16.mxu0 %v11540_v33  ;;  %v3559_v32 = vrot.slane %v251_v20, 5  ;;  %v14476_v20 = vshrl.u32 %v12148_v11, 16  ;;  %p11896_p10 = pnand %p11895_p6, %p15045_p9  ;;  %s11898_s27 = sshll.u32 %s12025_s23, 4  ;;  %s11899_s27 = int_to_ptr.vmem [resolvable:$false] %s11898_s27 }
  0x55   : > { %14680 = vst [vmem:[#allocation21_spill] sm:$0xff] %v12234_v30  ;;  %s11900_s28 = scalar_lea.vmem %s11899_s27, 8192  ;;  %p11901_p2 = scmp.lt.s32.totalorder %s14349_s10, %s11899_s27 }
  0x56   : > { %9491 = vmatpush3.bf16.msra.mxu1 %v11539_v27  ;;  %v8655_v27 = vrot.slane %v249_v8, 9  ;;  %v3560_v41 = vsel %vm12163_vm2, %v3558_v31, %v3559_v32  ;;  %v12285_v8 = vld [vmem:[%s12145_s5 + $0x84] sm:$0xf]  ;;  %v11572_v31 = vld [vmem:[#allocation2 + $0x590] sm:$0xff]   ;;  %v14474_v32 = vshll.u32 %v12151_v12, 16  ;;  %v5037_v34 = vrot.slane %v14476_v20, 5  ;;  %p11897_p12 = pneg %p11896_p10  ;;  %p11902_p3 = scmp.lt.s32.totalorder %s11900_s28, %s11894_s22 }
  0x57   : > { %10067 = vmatpush3.bf16.msra.mxu0 %v11540_v33  ;;  %9524 = vmatprep.subr.bf16.mxu1 %v11543_v38  ;;  %v8656_v33 = vrot.slane %v252_v21, 9  ;;  %v12299_v17 = vcombine.low %v12285_v8, %v12289_v9  ;;  %v14475_v21 = vshll.u32 %v12148_v11, 16 }
  0x58   : > { %10100 = vmatprep.subr.bf16.mxu0 %v11544_v49  ;;  %v3557_v40 = vsel %vm12163_vm2, %v8655_v27, %v3556_v16  ;;  %v12295_v16 = vld [vmem:[#allocation2 + $0x280] sm:$0xff]   ;;  %v12312_v27 = vld [vmem:[%s12145_s5 + $0x94] sm:$0xf]  ;;  %p11903_p4 = por %p11902_p3, %p11901_p2 }
  0x59   : > { %9493 = vmatmul.mubr.bf16.vlgmr.msra.gmra.mrb[0].mxu1 %v12189_v52  ;;  %v3564_v44 = vsel %vm12163_vm2, %v8656_v33, %v3563_v28  ;;  %14686 = vst [vmem:[#allocation27_spill] sm:$0xff] %v12299_v17  ;;  %v12315_v28 = vld [vmem:[%s12145_s5 + $0x9c] sm:$0xf]  ;;  %v12324_v33 = vcombine.low %v12309_v24, %v12312_v27  ;;  %v5038_v35 = vrot.slane %v14475_v21, 6 }
  0x5a   : > { %10069 = vmatmul.mubr.bf16.vlgmr.msra.gmra.mrb[0].mxu0 %v12193_v54  ;;  %9525 = vmatpush3.bf16.msra.mxu1 %v11543_v38  ;;  %v11558_v38 = vld [vmem:[#allocation2 + $0x18] sm:$0xff]   ;;  %v12259_v51 = vcombine.low %v3564_v44, %v3567_v45  ;;  %v12355_v45 = vld [vmem:[%s12145_s5 + $0x80] sm:$0x3]  ;;  %p11904_p7 = pnand %p11903_p4, %p11897_p12 }
  0x5b   : > { %10101 = vmatpush3.bf16.msra.mxu0 %v11544_v49  ;;  %9496 = vmatprep.mubr.bf16.mxu1 %v12200_v60  ;;  %v12255_v49 = vcombine.low %v3557_v40, %v3560_v41  ;;  %14687 = vst [vmem:[#allocation28_spill] sm:$0xff] %v12324_v33  ;;  %v11576_v40 = vld [vmem:[#allocation2 + $0x598] sm:$0xff]   ;;  %v12340_v41 = vld [vmem:[%s12145_s5 + $0xa8] sm:$0xf]  ;;  %v5039_v23 = vor.u32 %v5038_v35, %v5037_v34  ;;  %v8660_v35 = vrot.slane %v12309_v24, 9 }
  0x5c   : > { %10102 = vmatprep.subr.bf16.mxu0 %v11545_v55  ;;  %10072 = vmatprep.mubr.bf16.mxu0 %v12207_v1  ;;  %14683 = vst [vmem:[#allocation24_spill] sm:$0xff] %v12259_v51  ;;  %v12350_v44 = vld [vmem:[%s12145_s5 + $0xb8] sm:$0xf]  ;;  %v272_v24 = vld [vmem:[%s12145_s5 + $0xb0] sm:$0x3] }
  0x5d   : > { %9526 = vmatprep.subr.bf16.mxu1 %v11548_v4  ;;  %14682 = vst [vmem:[#allocation23_spill] sm:$0xff] %v12255_v49 }
  0x5e   : > { %9527 = vmatpush3.bf16.msra.mxu1 %v11548_v4  ;;  %v11560_v4 = vld [vmem:[#allocation2 + $0x478] sm:$0xff]  }
  0x5f   : > { %10103 = vmatpush3.bf16.msra.mxu0 %v11545_v55  ;;  %9528 = vmatprep.subr.bf16.mxu1 %v11553_v13  ;;  %v3572_v55 = vrot.slane %v3570_v43, 4  ;;  %v12347_v43 = vld [vmem:[%s12145_s5 + $0xb4] sm:$0xf] }
  0x60   : > { %10104 = vmatprep.subr.bf16.mxu0 %v11549_v6 }
  0x61   : > { %9497 = vmatmul.mubr.bf16.gmra.mrb[4].mxu1 %v12226_v22  ;;  %v3574_v61 = vsel %vm12163_vm2, %v3572_v55, %v3573_v56  ;;  %v5042_v55 = vrot.slane %v14474_v32, 6  ;;  %v269_v32 = vld [vmem:[%s12145_s5 + $0xa4] sm:$0x3] }
  0x62   : > { %10073 = vmatmul.mubr.bf16.gmra.mrb[4].mxu0 %v12230_v25  ;;  %9500 = vmatprep.mubr.bf16.mxu1 %v12232_v26  ;;  %v12271_v2 = vcombine.low %v3571_v59, %v3574_v61  ;;  %v3579_v59 = vrot.slane %v3577_v39, 4  ;;  %v3580_v61 = vrot.slane %v12355_v45, 5 }
  0x63   : > { %10105 = vmatpush3.bf16.msra.mxu0 %v11549_v6  ;;  %10076 = vmatprep.mubr.bf16.mxu0 %v12234_v30  ;;  %v12279_v6 = vld [vmem:[%s12145_s5 + $0x78] sm:$0xf] }
  0x64   : > { %10106 = vmatprep.subr.bf16.mxu0 %v11550_v29  ;;  %9529 = vmatpush3.bf16.msra.mxu1 %v11553_v13  ;;  %14684 = vst [vmem:[#allocation25_spill] sm:$0xff] %v12271_v2  ;;  %v12293_v13 = vcombine.low %v12279_v6, %v12282_v7  ;;  %v12383_v7 = vld [vmem:[%s12145_s5] sm:$0xf] }
  0x65   : > { %9530 = vmatprep.subr.bf16.mxu1 %v11558_v38  ;;  %14691 = vst [vmem:[#allocation32_spill] sm:$0xff] %v12383_v7 }
  0x66   : > { %14685 = vst [vmem:[#allocation26_spill] sm:$0xff] %v12293_v13 }
  0x67   : > { %10107 = vmatpush3.bf16.msra.mxu0 %v11550_v29  ;;  %v12319_v29 = vld [vmem:[%s12145_s5 + $0xa0] sm:$0xf] }
  0x68   : > { %10108 = vmatprep.subr.bf16.mxu0 %v11554_v42  ;;  %9531 = vmatpush3.bf16.msra.mxu1 %v11558_v38  ;;  %v12336_v38 = vcombine.low %v12315_v28, %v12319_v29 }
  0x69   : > { %9501 = vmatmul.mubr.bf16.gmra.mrb[8].mxu1 %v12253_v47  ;;  %9532 = vmatprep.subr.bf16.mxu1 %v11563_v48 }
  0x6a   : > { %10077 = vmatmul.mubr.bf16.gmra.mrb[8].mxu0 %v12255_v49  ;;  %9504 = vmatprep.mubr.bf16.mxu1 %v12257_v50  ;;  %14688 = vst [vmem:[#allocation29_spill] sm:$0xff] %v12336_v38 }
  0x6b   : > { %10109 = vmatpush3.bf16.msra.mxu0 %v11554_v42  ;;  %10080 = vmatprep.mubr.bf16.mxu0 %v12259_v51  ;;  %v12343_v42 = vld [vmem:[%s12145_s5 + $0xac] sm:$0xf] }
  0x6c   : > { %10110 = vmatprep.subr.bf16.mxu0 %v11555_v57  ;;  %9533 = vmatpush3.bf16.msra.mxu1 %v11563_v48  ;;  %v3584_v48 = vrot.slane %v12289_v9, 5  ;;  %v12366_v56 = vcombine.low %v12340_v41, %v12343_v42 }
  0x6d   : > { %9534 = vmatprep.subr.bf16.mxu1 %v11567_v58 }
  0x6e   : > { %14690 = vst [vmem:[#allocation31_spill] sm:$0xff] %v12366_v56  ;;  %v3586_v9 = vrot.slane %v3584_v48, 4 }
  0x6f   : > { %10111 = vmatpush3.bf16.msra.mxu0 %v11555_v57  ;;  %v8658_v57 = vrot.slane %v12279_v6, 9  ;;  %v12386_v6 = vld [vmem:[%s12145_s5 + $0x4] sm:$0xf] }
  0x70   : > { %10112 = vmatprep.subr.bf16.mxu0 %v11559_v62  ;;  %9535 = vmatpush3.bf16.msra.mxu1 %v11567_v58  ;;  %v12371_v58 = vcombine.low %v12347_v43, %v12350_v44  ;;  %14692 = vst [vmem:[#allocation33_spill] sm:$0xff] %v12386_v6  ;;  %v8552_v34 = vcombine.low %v12383_v7, %v12386_v6 }
  0x71   : > { %9505 = vmatmul.mubr.bf16.gmra.mrb[12].mxu1 %v12269_v63  ;;  %9536 = vmatprep.subr.bf16.mxu1 %v11571_v0 }
  0x72   : > { %10081 = vmatmul.mubr.bf16.gmra.mrb[12].mxu0 %v12271_v2  ;;  %9508 = vmatprep.mubr.bf16.mxu1 %v12273_v3 }
  0x73   : > { %10113 = vmatpush3.bf16.msra.mxu0 %v11559_v62  ;;  %10116 = vmatprep.mubr.bf16.mxu0 %v12193_v54  ;;  %v8659_v62 = vrot.slane %v12285_v8, 9  ;;  %v3578_v8 = vsel %vm12163_vm2, %v8658_v57, %v3577_v39  ;;  %v3598_v54 = vrot.slane %v12319_v29, 5  ;;  %v11583_v39 = vld [vmem:[#allocation2 + $0x5b0] sm:$0xff]  }
  0x74   : > { %10114 = vmatprep.subr.bf16.mxu0 %v11560_v4  ;;  %9537 = vmatpush3.bf16.msra.mxu1 %v11571_v0  ;;  %v3587_v0 = vrot.slane %v12359_v46, 5 }
  0x75   : > { %9538 = vmatprep.subr.bf16.mxu1 %v11575_v5  ;;  %v3585_v21 = vsel %vm12163_vm2, %v8659_v62, %v3584_v48  ;;  %v3601_v62 = vrot.slane %v269_v32, 5 }
  0x76   : > { %v3588_v20 = vsel %vm12163_vm2, %v3586_v9, %v3587_v0  ;;  %v3600_v0 = vrot.slane %v3598_v54, 4  ;;  %v11585_v9 = vld [vmem:[#allocation2 + $0x5b8] sm:$0xff]  }
  0x77   : > { %10115 = vmatpush3.bf16.msra.mxu0 %v11560_v4  ;;  %v12377_v4 = vld [vmem:[%s12145_s5 + $0xc0] sm:$0xf] }
  0x78   : > { %10148 = vmatprep.subr.bf16.mxu0 %v11564_v10  ;;  %9539 = vmatpush3.bf16.msra.mxu1 %v11575_v5  ;;  %v12380_v5 = vld [vmem:[%s12145_s5 + $0xc4] sm:$0xf] }
  0x79   : > { %9509 = vmatmul.mubr.bf16.gmra.mrb[16].mxu1 %v12293_v13  ;;  %9572 = vmatprep.subr.bf16.mxu1 %v12295_v16  ;;  %v12406_v57 = vcombine.low %v12377_v4, %v12380_v5 }
  0x7a   : > { %10117 = vmatmul.mubr.bf16.vlgmr.msra.gmra.mrb[0].mxu0 %v12207_v1  ;;  %9512 = vmatprep.mubr.bf16.mxu1 %v12299_v17 }
  0x7b   : > { %10149 = vmatpush3.bf16.msra.mxu0 %v11564_v10  ;;  %10120 = vmatprep.mubr.bf16.mxu0 %v12230_v25  ;;  %v11581_v10 = vld [vmem:[#allocation2 + $0x5a8] sm:$0xff]   ;;  %14693 = vst [vmem:[#allocation34_spill] sm:$0xff] %v12406_v57 }
  0x7c   : > { %10150 = vmatprep.subr.bf16.mxu0 %v11568_v18 }
  0x7f   : > { %10151 = vmatpush3.bf16.msra.mxu0 %v11568_v18  ;;  %v266_v18 = vld [vmem:[%s12145_s5 + $0x98] sm:$0x3] }
  0x80   : > { %10152 = vmatprep.subr.bf16.mxu0 %v11572_v31  ;;  %v3594_v48 = vrot.slane %v266_v18, 5 }
  0x81   : > { %9513 = vmatmul.mubr.bf16.gmra.mrb[20].mxu1 %v12324_v33 }
  0x82   : > { %10121 = vmatmul.mubr.bf16.gmra.mrb[4].mxu0 %v12234_v30  ;;  %9516 = vmatprep.mubr.bf16.mxu1 %v12336_v38 }
  0x83   : > { %10124 = vmatprep.mubr.bf16.mxu0 %v12255_v49  ;;  %10153 = vmatpush3.bf16.msra.mxu0 %v11572_v31  ;;  %v3581_v31 = vsel %vm12163_vm2, %v3579_v59, %v3580_v61  ;;  %v5040_v59 = vrot.slane %v5039_v23, 4  ;;  %v12414_v61 = vcombine.low %v3585_v21, %v3588_v20  ;;  %v12427_v21 = vld [vmem:[%s12145_s5 + $0x14] sm:$0x3] }
  0x84   : > { %10154 = vmatprep.subr.bf16.mxu0 %v11576_v40  ;;  %14699 = vst [vmem:[#allocation38_spill] sm:$0xff] %v12427_v21 }
  0x85   : > { %14695 = vst [vmem:[#allocation36_spill] sm:$0xff] %v12414_v61 }
  0x87   : > { %10155 = vmatpush3.bf16.msra.mxu0 %v11576_v40  ;;  %v3591_v40 = vrot.slane %v12312_v27, 5  ;;  %v12408_v27 = vcombine.low %v3578_v8, %v3581_v31  ;;  %v5043_v8 = vor.u32 %v5042_v55, %v12332_v36  ;;  %v3605_v36 = vrot.slane %v12343_v42, 5 }
  0x88   : > { %10156 = vmatprep.subr.bf16.mxu0 %v11579_v53  ;;  %v3612_v55 = vrot.slane %v12350_v44, 5  ;;  %v3602_v31 = vsel %vm12163_vm2, %v3600_v0, %v3601_v62  ;;  %v8662_v42 = vrot.slane %v12340_v41, 9  ;;  %v11580_v62 = vld [vmem:[#allocation2 + $0x288] sm:$0xff]   ;;  %v280_v41 = vld [vmem:[%s12145_s5 + $0xd0] sm:$0xf] }
  0x89   : > { %9517 = vmatmul.mubr.bf16.gmra.mrb[24].mxu1 %v12366_v56  ;;  %14694 = vst [vmem:[#allocation35_spill] sm:$0xff] %v12408_v27  ;;  %v3593_v29 = vrot.slane %v3591_v40, 4  ;;  %v3592_v20 = vsel %vm12163_vm2, %v8660_v35, %v3591_v40  ;;  %v5044_v23 = vsel %vm12419_vm5, %v5040_v59, %v5043_v8  ;;  %v275_v40 = vld [vmem:[%s12145_s5 + $0xbc] sm:$0x3]  ;;  %v5046_v35 = vshrl.u32 %v12427_v21, 16 }
  0x8a   : > { %10125 = vmatmul.mubr.bf16.gmra.mrb[8].mxu0 %v12259_v51  ;;  %9520 = vmatprep.mubr.bf16.mxu1 %v12371_v58  ;;  %v3607_v0 = vrot.slane %v3605_v36, 4  ;;  %v3614_v37 = vrot.slane %v3612_v55, 4 }
  0x8b   : > { %10128 = vmatprep.mubr.bf16.mxu0 %v12271_v2  ;;  %10157 = vmatpush3.bf16.msra.mxu0 %v11579_v53  ;;  %v8661_v53 = vrot.slane %v12315_v28, 9  ;;  %v14696_v28 = vmov 0  ;;  %v3595_v32 = vsel %vm12163_vm2, %v3593_v29, %v3594_v48  ;;  %v3608_v48 = vrot.slane %v272_v24, 5 }
  0x8c   : > { %10158 = vmatprep.subr.bf16.mxu0 %v11581_v10  ;;  %v14697_v28 = vsel %vm12419_vm5, 4294967295, %v14696_v28  ;;  %v5048_v59 = vrot.slane %v5046_v35, 5  ;;  %v281_v35 = vld [vmem:[%s12145_s5 + $0xd4] sm:$0x3] }
  0x8d   : > { %14698 = vst [vmem:[#allocation37_spill] sm:$0xff] %v14697_v28  ;;  %v3599_v18 = vsel %vm12163_vm2, %v8661_v53, %v3598_v54  ;;  %v8663_v54 = vrot.slane %v12347_v43, 9  ;;  %v5045_v53 = vrot.slane %v5043_v8, 4  ;;  %v3942_v43 = vrot.slane %v12380_v5, 5  ;;  %v279_v8 = vld [vmem:[%s12145_s5 + $0xcc] sm:$0xf] }
  0x8e   : > { %v12451_v29 = vcombine.low %v3599_v18, %v3602_v31  ;;  %v11582_v18 = vld [vmem:[#allocation2 + $0x290] sm:$0xff]   ;;  %v4212_v31 = vrot.slane %v280_v41, 5 }
  0x8f   : > { %10159 = vmatpush3.bf16.msra.mxu0 %v11581_v10  ;;  %v14487_v10 = vshll.u32 %v12427_v21, 16  ;;  %v3613_v5 = vsel %vm12163_vm2, %v8663_v54, %v3612_v55  ;;  %v283_v55 = vld [vmem:[%s12145_s5 + $0xdc] sm:$0xf] }
  0x90   : > { %10160 = vmatprep.subr.bf16.mxu0 %v11583_v39  ;;  %14701 = vst [vmem:[#allocation40_spill] sm:$0xff] %v12451_v29  ;;  %v11584_v54 = vld [vmem:[#allocation2 + $0x298] sm:$0xff]  }
  0x91   : > { %9521 = vmatmul.mubr.bf16.gmra.mrb[28].mxu1 %v12406_v57  ;;  %v5049_v44 = vrot.slane %v14487_v10, 6  ;;  %v3615_v57 = vrot.slane %v275_v40, 5  ;;  %v12591_v10 = vld [vmem:[%s12145_s5 + $0x20] sm:$0x3] }
  0x92   : > { %10129 = vmatmul.mubr.bf16.gmra.mrb[12].mxu0 %v12408_v27  ;;  %9540 = vmatprep.mubr.bf16.mxu1 %v8552_v34  ;;  %v12442_v34 = vld [vmem:[#allocation2 + $0xc0] sm:$0xff]   ;;  %14720 = vst [vmem:[#allocation55_spill] sm:$0xff] %v12591_v10 }
  0x93   : > { %10132 = vmatprep.mubr.bf16.mxu0 %v12414_v61  ;;  %10161 = vmatpush3.bf16.msra.mxu0 %v11583_v39  ;;  %v12448_v39 = vcombine.low %v3592_v20, %v3595_v32  ;;  %v5050_v24 = vor.u32 %v5049_v44, %v5048_v59  ;;  %v278_v20 = vld [vmem:[%s12145_s5 + $0xc8] sm:$0x3]  ;;  %v3616_v40 = vsel %vm12163_vm2, %v3614_v37, %v3615_v57  ;;  %v8688_v44 = vrot.slane %v12377_v4, 9  ;;  %v282_v37 = vld [vmem:[%s12145_s5 + $0xd8] sm:$0xf] }
  0x94   : > { %10162 = vmatprep.subr.bf16.mxu0 %v11585_v9  ;;  %v12479_v59 = vcombine.low %v3613_v5, %v3616_v40  ;;  %v4482_v57 = vrot.slane %v283_v55, 5  ;;  %v14486_v40 = vshrl.u32 %v12383_v7, 16 }
  0x95   : > { %14700 = vst [vmem:[#allocation39_spill] sm:$0xff] %v12448_v39  ;;  %v5051_v32 = vsel %vm12419_vm5, %v5045_v53, %v5050_v24  ;;  %v8698_v53 = vrot.slane %v279_v8, 9  ;;  %v3943_v4 = vsel %vm12163_vm2, %v8688_v44, %v3942_v43  ;;  %v11586_v8 = vld [vmem:[#allocation2 + $0x2a0] sm:$0xff]   ;;  %v11588_v44 = vld [vmem:[#allocation2 + $0x2a8] sm:$0xff]  }
  0x96   : > { %14704 = vst [vmem:[#allocation43_spill] sm:$0xff] %v12479_v59 }
  0x97   : > { %10163 = vmatpush3.bf16.msra.mxu0 %v11585_v9  ;;  %v3606_v9 = vsel %vm12163_vm2, %v8662_v42, %v3605_v36  ;;  %v3945_v36 = vrot.slane %v278_v20, 5  ;;  %v4213_v41 = vsel %vm12163_vm2, %v8698_v53, %v4212_v31  ;;  %v284_v20 = vld [vmem:[%s12145_s5 + $0xe0] sm:$0x3]  ;;  %v5022_v53 = vrot.slane %v14486_v40, 5 }
  0x98   : > { %10196 = vmatprep.subr.bf16.mxu0 %v12442_v34  ;;  %v4485_v5 = vrot.slane %v284_v20, 5  ;;  %v12531_v20 = vld [vmem:[%s12145_s5 + $0xe4] sm:$0xf] }
  0x99   : > { %9541 = vmatmul.mubr.bf16.vlgmr.msra.gmra.mrb[0].mxu1 %v12155_v14  ;;  %v3609_v14 = vsel %vm12163_vm2, %v3607_v0, %v3608_v48  ;;  %v3944_v48 = vrot.slane %v3942_v43, 4  ;;  %v4215_v0 = vrot.slane %v281_v35, 5  ;;  %v14483_v35 = vshrl.u32 %v12386_v6, 16 }
  0x9a   : > { %10133 = vmatmul.mubr.bf16.gmra.mrb[16].mxu0 %v12448_v39  ;;  %9573 = vmatpush3.bf16.msra.mxu1 %v12295_v16  ;;  %v12469_v16 = vcombine.low %v5044_v23, %v5051_v32  ;;  %v12477_v42 = vcombine.low %v3606_v9, %v3609_v14  ;;  %v4214_v23 = vrot.slane %v4212_v31, 4  ;;  %v8708_v32 = vrot.slane %v282_v37, 9 }
  0x9b   : > { %9544 = vmatprep.mubr.bf16.mxu1 %v12189_v52  ;;  %10136 = vmatprep.mubr.bf16.mxu0 %v12451_v29  ;;  %v4484_v14 = vrot.slane %v4482_v57, 4  ;;  %v14484_v31 = vshll.u32 %v12386_v6, 16  ;;  %v14707_v37 = vshrl.u32 %v12148_v11, 16  ;;  %v5061_v6 = vshrl.u32 %v12591_v10, 16 }
  0x9c   : > { %14702 = vst [vmem:[#allocation41_spill] sm:$0xff] %v12469_v16  ;;  %9574 = vmatprep.subr.bf16.mxu1 %v11580_v62  ;;  %14703 = vst [vmem:[#allocation42_spill] sm:$0xff] %v12477_v42  ;;  %v4216_v24 = vsel %vm12163_vm2, %v4214_v23, %v4215_v0  ;;  %v5026_v0 = vrot.slane %v14483_v35, 5  ;;  %v12569_v35 = vld [vmem:[%s12145_s5 + $0x1c] sm:$0xf] }
  0x9d   : > { %v12498_v43 = vcombine.low %v4213_v41, %v4216_v24  ;;  %v5027_v55 = vrot.slane %v14484_v31, 6  ;;  %v11592_v24 = vld [vmem:[#allocation2 + $0x2b8] sm:$0xff]   ;;  %14717 = vst [vmem:[#allocation52_spill] sm:$0xff] %v12569_v35  ;;  %v12585_v31 = vld [vmem:[%s12145_s5 + $0x28] sm:$0xf] }
  0x9e   : > { %9575 = vmatpush3.bf16.msra.mxu1 %v11580_v62  ;;  %v3946_v62 = vsel %vm12163_vm2, %v3944_v48, %v3945_v36  ;;  %v4483_v36 = vsel %vm12163_vm2, %v8708_v32, %v4482_v57  ;;  %v4486_v48 = vsel %vm12163_vm2, %v4484_v14, %v4485_v5  ;;  %v12536_v14 = vld [vmem:[%s12145_s5 + $0xe8] sm:$0xf]  ;;  %v14488_v5 = vshrl.u32 %v12158_v15, 16  ;;  %14719 = vst [vmem:[#allocation54_spill] sm:$0xff] %v12585_v31 }
  0x9f   : > { %9576 = vmatprep.subr.bf16.mxu1 %v11582_v18  ;;  %v12496_v9 = vcombine.low %v3943_v4, %v3946_v62  ;;  %14706 = vst [vmem:[#allocation45_spill] sm:$0xff] %v12498_v43  ;;  %v12522_v4 = vrot.slane %v14707_v37, 4  ;;  %v12524_v57 = vcombine.low %v4483_v36, %v4486_v48  ;;  %v14709_v62 = vshll.u32 %v12148_v11, 16  ;;  %v12540_v37 = vld [vmem:[%s12145_s5 + $0x18] sm:$0xf] }
  0xa0   : > { %v12533_v32 = vor.u32 %v5027_v55, %v5026_v0  ;;  %14711 = vst [vmem:[#allocation48_spill] sm:$0xff] %v12540_v37  ;;  %v14489_v36 = vshll.u32 %v12540_v37, 16  ;;  %v14712_v11 = vshll.u32 %v12151_v12, 16  ;;  %v14714_v48 = vshrl.u32 %v12151_v12, 16  ;;  %v12560_v0 = vld [vmem:[%s12145_s5 + $0x8] sm:$0x3] }
  0xa1   : > { %9545 = vmatmul.mubr.bf16.gmra.mrb[4].mxu1 %v12200_v60  ;;  %14705 = vst [vmem:[#allocation44_spill] sm:$0xff] %v12496_v9  ;;  %14708 = vst [vmem:[#allocation46_spill] sm:$0xff] %v12522_v4  ;;  %v12528_v41 = vrot.slane %v14709_v62, 5  ;;  %v12580_v12 = vld [vmem:[%s12145_s5 + $0x24] sm:$0xf]  ;;  %v14721_v55 = vshrl.u32 %v12569_v35, 16 }
  0xa2   : > { %10137 = vmatmul.mubr.bf16.gmra.mrb[20].mxu0 %v12477_v42  ;;  %9548 = vmatprep.mubr.bf16.mxu1 %v12226_v22  ;;  %v12549_v62 = vrot.slane %v14714_v48, 4  ;;  %14716 = vst [vmem:[#allocation51_spill] sm:$0xff] %v12560_v0  ;;  %v5053_v40 = vrot.slane %v14489_v36, 6  ;;  %14718 = vst [vmem:[#allocation53_spill] sm:$0xff] %v12580_v12  ;;  %v5031_v36 = vshrl.u32 %v12560_v0, 16  ;;  %v14722_v15 = vshll.u32 %v12569_v35, 16 }
  0xa3   : > { %10140 = vmatprep.mubr.bf16.mxu0 %v12479_v59  ;;  %9577 = vmatpush3.bf16.msra.mxu1 %v11582_v18  ;;  %v14485_v18 = vshll.u32 %v12383_v7, 16  ;;  %14710 = vst [vmem:[#allocation47_spill] sm:$0xff] %v12528_v41  ;;  %v5056_v37 = vrot.slane %v14721_v55, 5  ;;  %v12607_v7 = vld [vmem:[%s12145_s5 + $0x34] sm:$0xf]  ;;  %v14725_v55 = vshrl.u32 %v12580_v12, 16 }
  0xa4   : > { %9578 = vmatprep.subr.bf16.mxu1 %v11584_v54  ;;  %14715 = vst [vmem:[#allocation50_spill] sm:$0xff] %v12549_v62  ;;  %14724 = vst [vmem:[#allocation57_spill] sm:$0xff] %v12607_v7  ;;  %v14726_v21 = vshll.u32 %v12580_v12, 16  ;;  %v12627_v41 = vrot.slane %v5031_v36, 5  ;;  %v14736_v4 = vshll.u32 %v12607_v7, 16 }
  0xa5   : > { %v5023_v23 = vrot.slane %v14485_v18, 6  ;;  %v5057_v18 = vrot.slane %v14722_v15, 6  ;;  %v11591_v15 = vld [vmem:[#allocation2 + $0xd0] sm:$0xff]   ;;  %v5067_v35 = vrot.slane %v14725_v55, 5  ;;  %v14730_v55 = vshll.u32 %v12560_v0, 16 }
  0xa7   : > { %9579 = vmatpush3.bf16.msra.mxu1 %v11584_v54  ;;  %v11590_v54 = vld [vmem:[#allocation2 + $0x2b0] sm:$0xff]   ;;  %v12631_v12 = vrot.slane %v14730_v55, 6 }
  0xa8   : > { %9580 = vmatprep.subr.bf16.mxu1 %v11586_v8 }
  0xa9   : > { %9549 = vmatmul.mubr.bf16.gmra.mrb[8].mxu1 %v12232_v26 }
  0xaa   : > { %10141 = vmatmul.mubr.bf16.gmra.mrb[24].mxu0 %v12496_v9  ;;  %9552 = vmatprep.mubr.bf16.mxu1 %v12253_v47 }
  0xab   : > { %10144 = vmatprep.mubr.bf16.mxu0 %v12498_v43  ;;  %9581 = vmatpush3.bf16.msra.mxu1 %v11586_v8  ;;  %v5024_v8 = vor.u32 %v5023_v23, %v5022_v53  ;;  %v12553_v53 = vld [vmem:[%s12145_s5 + $0xec] sm:$0x3]  ;;  %v12557_v23 = vld [vmem:[#allocation2 + $0x3c0] sm:$0xff]   ;;  %v14852_v19 = vld [vmem:[#allocation50_spill] sm:$0xff] }
  0xac   : > { %9582 = vmatprep.subr.bf16.mxu1 %v11588_v44 }
  0xaf   : > { %9583 = vmatpush3.bf16.msra.mxu1 %v11588_v44  ;;  %v12545_v44 = vrot.slane %v14712_v11, 5  ;;  %v12565_v11 = vrot.slane %v5024_v8, 4  ;;  %v14727_v8 = vshrl.u32 %v12585_v31, 16 }
  0xb0   : > { %9584 = vmatprep.subr.bf16.mxu1 %v11590_v54 }
  0xb1   : > { %14713 = vst [vmem:[#allocation49_spill] sm:$0xff] %v12545_v44  ;;  %9553 = vmatmul.mubr.bf16.gmra.mrb[12].mxu1 %v12257_v50  ;;  %v5071_v62 = vrot.slane %v14727_v8, 5  ;;  %v14728_v44 = vshll.u32 %v12585_v31, 16 }
  0xb2   : > { %10145 = vmatmul.mubr.bf16.gmra.mrb[28].mxu0 %v12524_v57  ;;  %9556 = vmatprep.mubr.bf16.mxu1 %v12269_v63 }
  0xb3   : > { %10164 = vmatprep.mubr.bf16.mxu0 %v12207_v1  ;;  %9585 = vmatpush3.bf16.msra.mxu1 %v11590_v54  ;;  %v5052_v54 = vrot.slane %v14488_v5, 5  ;;  %v11589_v1 = vld [vmem:[#allocation2 + $0xc8] sm:$0xff]   ;;  %v5068_v5 = vrot.slane %v14726_v21, 6  ;;  %v14731_v21 = vshll.u32 %v12591_v10, 16 }
  0xb4   : > { %9586 = vmatprep.subr.bf16.mxu1 %v11592_v24 }
  0xb5   : > { %v5054_v48 = vor.u32 %v5053_v40, %v5052_v54  ;;  %v5072_v40 = vrot.slane %v14728_v44, 6  ;;  %v14729_v54 = vrot.slane %v12536_v14, 5  ;;  %v12635_v8 = vrot.slane %v14731_v21, 6 }
  0xb6   : > { %v12637_v44 = vor.u32 %v5057_v18, %v5056_v37  ;;  %v14735_v21 = vshrl.u32 %v12607_v7, 16  ;;  %v5087_v18 = vrot.slane %v14736_v4, 6  ;;  %v11593_v37 = vld [vmem:[#allocation2 + $0xd8] sm:$0xff]   ;;  %v5069_v16 = vor.u32 %v5068_v5, %v5067_v35  ;;  %v11595_v35 = vld [vmem:[#allocation2 + $0xe0] sm:$0xff]  }
  0xb7   : > { %9587 = vmatpush3.bf16.msra.mxu1 %v11592_v24  ;;  %v12602_v24 = vld [vmem:[%s12145_s5 + $0x30] sm:$0xf] }
  0xb8   : > { %9620 = vmatprep.subr.bf16.mxu1 %v12557_v23  ;;  %14723 = vst [vmem:[#allocation56_spill] sm:$0xff] %v12602_v24  ;;  %v14734_v55 = vshll.u32 %v12602_v24, 16  ;;  %v5086_v10 = vrot.slane %v14735_v21, 5  ;;  %v12664_v21 = vld [vmem:[%s12145_s5 + $0x40] sm:$0xf] }
  0xb9   : > { %9557 = vmatmul.mubr.bf16.gmra.mrb[16].mxu1 %v12273_v3  ;;  %14739 = vst [vmem:[#allocation61_spill] sm:$0xff] %v12664_v21 }
  0xba   : > { %10165 = vmatmul.mubr.bf16.vlgmr.msra.gmra.mrb[0].mxu0 %v12230_v25  ;;  %9560 = vmatprep.mubr.bf16.mxu1 %v12293_v13  ;;  %v12625_v25 = vrot.slane %v14729_v54, 4  ;;  %v14733_v54 = vshrl.u32 %v12602_v24, 16  ;;  %v5083_v0 = vrot.slane %v14734_v55, 6  ;;  %v12655_v13 = vor.u32 %v5072_v40, %v5071_v62 }
  0xbb   : > { %10197 = vmatpush3.bf16.msra.mxu0 %v12442_v34  ;;  %10168 = vmatprep.mubr.bf16.mxu0 %v12234_v30  ;;  %v12639_v34 = vrot.slane %v5061_v6, 5  ;;  %v12642_v30 = vld [vmem:[%s12145_s5 + $0x2c] sm:$0x3]  ;;  %v12653_v6 = vrot.slane %v5054_v48, 4  ;;  %v12678_v24 = vor.u32 %v5087_v18, %v5086_v10  ;;  %v12721_v10 = vld [vmem:[%s12145_s5 + $0x54] sm:$0xf] }
  0xbc   : > { %10198 = vmatprep.subr.bf16.mxu0 %v11589_v1  ;;  %14732 = vst [vmem:[#allocation58_spill] sm:$0xff] %v12642_v30  ;;  %v5082_v31 = vrot.slane %v14733_v54, 5  ;;  %14737 = vst [vmem:[#allocation59_spill] sm:$0xff] %v12655_v13  ;;  %v5076_v36 = vshrl.u32 %v12642_v30, 16  ;;  %v12659_v54 = vld [vmem:[%s12145_s5 + $0x3c] sm:$0xf] }
  0xbd   : > { %14738 = vst [vmem:[#allocation60_spill] sm:$0xff] %v12659_v54  ;;  %v14740_v5 = vshll.u32 %v12642_v30, 16  ;;  %14742 = vst [vmem:[#allocation63_spill] sm:$0xff] %v12678_v24  ;;  %v12689_v30 = vld [vmem:[%s12145_s5 + $0x44] sm:$0x3]  ;;  %v14746_v18 = vshll.u32 %v12659_v54, 16 }
  0xbe   : > { %v5084_v40 = vor.u32 %v5083_v0, %v5082_v31  ;;  %v12686_v55 = vrot.slane %v5076_v36, 5  ;;  %14744 = vst [vmem:[#allocation65_spill] sm:$0xff] %v12689_v30  ;;  %v14745_v31 = vshrl.u32 %v12659_v54, 16  ;;  %v14748_v36 = vshll.u32 %v12664_v21, 16  ;;  %14755 = vst [vmem:[#allocation71_spill] sm:$0xff] %v12721_v10 }
  0xbf   : > { %10199 = vmatpush3.bf16.msra.mxu0 %v11589_v1  ;;  %v12671_v62 = vrot.slane %v14740_v5, 6  ;;  %v12675_v1 = vld [vmem:[%s12145_s5 + $0x38] sm:$0x3]  ;;  %v12683_v5 = vrot.slane %v5069_v16, 4  ;;  %v5098_v48 = vrot.slane %v14746_v18, 6  ;;  %v14747_v16 = vshrl.u32 %v12664_v21, 16 }
  0xc0   : > { %10200 = vmatprep.subr.bf16.mxu0 %v11591_v15  ;;  %14741 = vst [vmem:[#allocation62_spill] sm:$0xff] %v12675_v1  ;;  %v5091_v4 = vshrl.u32 %v12675_v1, 16  ;;  %v5097_v0 = vrot.slane %v14745_v31, 5  ;;  %v5102_v7 = vrot.slane %v14748_v36, 6  ;;  %v12711_v18 = vrot.slane %v5084_v40, 4  ;;  %v11597_v31 = vld [vmem:[#allocation2 + $0xe8] sm:$0xff]  }
  0xc1   : > { %9561 = vmatmul.mubr.bf16.gmra.mrb[20].mxu1 %v12299_v17  ;;  %14743 = vst [vmem:[#allocation64_spill] sm:$0xff] %v12683_v5  ;;  %v12702_v5 = vld [vmem:[%s12145_s5 + $0x48] sm:$0xf]  ;;  %v14753_v36 = vshll.u32 %v12675_v1, 16 }
  0xc2   : > { %10169 = vmatmul.mubr.bf16.gmra.mrb[4].mxu0 %v12255_v49  ;;  %9564 = vmatprep.mubr.bf16.mxu1 %v12324_v33  ;;  %v5101_v49 = vrot.slane %v14747_v16, 5  ;;  %14749 = vst [vmem:[#allocation66_spill] sm:$0xff] %v12702_v5  ;;  %14751 = vst [vmem:[#allocation68_spill] sm:$0xff] %v12711_v18  ;;  %v12714_v13 = vrot.slane %v5091_v4, 5  ;;  %v5099_v40 = vor.u32 %v5098_v48, %v5097_v0  ;;  %v5106_v4 = vshrl.u32 %v12689_v30, 16 }
  0xc3   : > { %10172 = vmatprep.mubr.bf16.mxu0 %v12259_v51  ;;  %10201 = vmatpush3.bf16.msra.mxu0 %v11591_v15  ;;  %v12707_v51 = vld [vmem:[%s12145_s5 + $0x4c] sm:$0xf]  ;;  %v12718_v21 = vrot.slane %v14753_v36, 6  ;;  %v14756_v16 = vshll.u32 %v12689_v30, 16  ;;  %v14758_v36 = vshrl.u32 %v12702_v5, 16  ;;  %v14759_v15 = vshll.u32 %v12702_v5, 16 }
  0xc4   : > { %10202 = vmatprep.subr.bf16.mxu0 %v11593_v37  ;;  %14750 = vst [vmem:[#allocation67_spill] sm:$0xff] %v12707_v51  ;;  %14752 = vst [vmem:[#allocation69_spill] sm:$0xff] %v12714_v13  ;;  %v12725_v54 = vor.u32 %v5102_v7, %v5101_v49  ;;  %v14761_v49 = vshll.u32 %v12707_v51, 16  ;;  %v12742_v48 = vld [vmem:[%s12145_s5 + $0x50] sm:$0x3]  ;;  %v11601_v13 = vld [vmem:[#allocation2 + $0xf8] sm:$0xff]  }
  0xc5   : > { %14754 = vst [vmem:[#allocation70_spill] sm:$0xff] %v12718_v21  ;;  %v12730_v1 = vrot.slane %v14756_v16, 6  ;;  %v5112_v18 = vrot.slane %v14758_v36, 5  ;;  %v5113_v33 = vrot.slane %v14759_v15, 6  ;;  %14762 = vst [vmem:[#allocation73_spill] sm:$0xff] %v12742_v48  ;;  %v5121_v16 = vshrl.u32 %v12742_v48, 16 }
  0xc6   : > { %v5117_v7 = vrot.slane %v14761_v49, 6  ;;  %v12747_v30 = vld [vmem:[%s12145_s5 + $0x58] sm:$0xf]  ;;  %v12758_v0 = vld [vmem:[%s12145_s5 + $0x60] sm:$0xf] }
  0xc7   : > { %10203 = vmatpush3.bf16.msra.mxu0 %v11593_v37  ;;  %14757 = vst [vmem:[#allocation72_spill] sm:$0xff] %v12730_v1  ;;  %v14760_v37 = vshrl.u32 %v12707_v51, 16  ;;  %14763 = vst [vmem:[#allocation74_spill] sm:$0xff] %v12747_v30  ;;  %v14765_v51 = vshll.u32 %v12721_v10, 16  ;;  %v12764_v36 = vld [vmem:[%s12145_s5 + $0x64] sm:$0xf] }
  0xc8   : > { %10204 = vmatprep.subr.bf16.mxu0 %v11595_v35  ;;  %14766 = vst [vmem:[#allocation75_spill] sm:$0xff] %v12758_v0  ;;  %14767 = vst [vmem:[#allocation76_spill] sm:$0xff] %v12764_v36  ;;  %v14771_v15 = vshll.u32 %v12747_v30, 16  ;;  %v12788_v1 = vrot.slane %v5121_v16, 5 }
  0xc9   : > { %v5116_v24 = vrot.slane %v14760_v37, 5  ;;  %9565 = vmatmul.mubr.bf16.gmra.mrb[24].mxu1 %v12336_v38  ;;  %v14764_v37 = vshrl.u32 %v12721_v10, 16  ;;  %v5128_v5 = vrot.slane %v14765_v51, 6  ;;  %v12768_v10 = vrot.slane %v5099_v40, 4  ;;  %v12775_v38 = vld [vmem:[%s12145_s5 + $0x5c] sm:$0x3] }
  0xca   : > { %10173 = vmatmul.mubr.bf16.gmra.mrb[8].mxu0 %v12271_v2  ;;  %9568 = vmatprep.mubr.bf16.mxu1 %v12366_v56  ;;  %v12770_v51 = vrot.slane %v5106_v4, 5  ;;  %v5114_v56 = vor.u32 %v5113_v33, %v5112_v18  ;;  %14769 = vst [vmem:[#allocation78_spill] sm:$0xff] %v12775_v38  ;;  %v5132_v21 = vrot.slane %v14771_v15, 6  ;;  %v5136_v2 = vshrl.u32 %v12775_v38, 16 }
  0xcb   : > { %v5127_v49 = vrot.slane %v14764_v37, 5  ;;  %10176 = vmatprep.mubr.bf16.mxu0 %v12408_v27  ;;  %10205 = vmatpush3.bf16.msra.mxu0 %v11595_v35  ;;  %v11599_v37 = vld [vmem:[#allocation2 + $0xf0] sm:$0xff]   ;;  %14768 = vst [vmem:[#allocation77_spill] sm:$0xff] %v12768_v10  ;;  %v12772_v17 = vor.u32 %v5117_v7, %v5116_v24  ;;  %v14770_v35 = vshrl.u32 %v12747_v30, 16  ;;  %v14772_v33 = vshrl.u32 %v12758_v0, 16 }
  0xcc   : > { %10206 = vmatprep.subr.bf16.mxu0 %v11597_v31  ;;  %v14773_v18 = vshll.u32 %v12758_v0, 16  ;;  %v14775_v15 = vshrl.u32 %v12764_v36, 16  ;;  %v14776_v40 = vshll.u32 %v12764_v36, 16  ;;  %v12804_v16 = vrot.slane %v5136_v2, 5 }
  0xcd   : > { %v5131_v27 = vrot.slane %v14770_v35, 5  ;;  %v5129_v4 = vor.u32 %v5128_v5, %v5127_v49  ;;  %v5142_v24 = vrot.slane %v14772_v33, 5  ;;  %v14774_v35 = vshll.u32 %v12742_v48, 16  ;;  %v12824_v33 = vld [vmem:[#allocation2 + $0x200] sm:$0xff]  }
  0xce   : > { %v5143_v7 = vrot.slane %v14773_v18, 6  ;;  %v5146_v10 = vrot.slane %v14775_v15, 5  ;;  %v5147_v5 = vrot.slane %v14776_v40, 6  ;;  %v12798_v49 = vrot.slane %v5114_v56, 4  ;;  %v12811_v15 = vld [vmem:[%s12145_s5 + $0x68] sm:$0x3] }
  0xcf   : > { %10207 = vmatpush3.bf16.msra.mxu0 %v11597_v31  ;;  %v12792_v30 = vrot.slane %v14774_v35, 6  ;;  %v12802_v31 = vor.u32 %v5132_v21, %v5131_v27  ;;  %v14778_v18 = vshll.u32 %v12775_v38, 16  ;;  %14779 = vst [vmem:[#allocation80_spill] sm:$0xff] %v12811_v15  ;;  %v12816_v56 = vrot.slane %v5129_v4, 4  ;;  %v12820_v21 = vld [vmem:[%s12145_s5 + $0x6c] sm:$0xf] }
  0xd0   : > { %10208 = vmatprep.subr.bf16.mxu0 %v11599_v37  ;;  %v5144_v27 = vor.u32 %v5143_v7, %v5142_v24  ;;  %v5151_v2 = vshrl.u32 %v12811_v15, 16  ;;  %14781 = vst [vmem:[#allocation82_spill] sm:$0xff] %v12820_v21  ;;  %v12826_v40 = vor.u32 %v5147_v5, %v5146_v10  ;;  %v12835_v7 = vld [vmem:[%s12145_s5 + $0x78] sm:$0xf]  ;;  %v14787_v24 = vshll.u32 %v12811_v15, 16 }
  0xd1   : > { %9569 = vmatmul.mubr.bf16.gmra.mrb[28].mxu1 %v12371_v58  ;;  %14777 = vst [vmem:[#allocation79_spill] sm:$0xff] %v12802_v31  ;;  %v12808_v35 = vrot.slane %v14778_v18, 6  ;;  %14780 = vst [vmem:[#allocation81_spill] sm:$0xff] %v12816_v56  ;;  %v12855_v18 = vld [vmem:[%s12145_s5 + $0x74] sm:$0x3]  ;;  %v14788_v5 = vshrl.u32 %v12820_v21, 16 }
  0xd2   : > { %10177 = vmatmul.mubr.bf16.gmra.mrb[12].mxu0 %v12414_v61  ;;  %9588 = vmatprep.mubr.bf16.mxu1 %v12189_v52  ;;  %14782 = vst [vmem:[#allocation83_spill] sm:$0xff] %v12826_v40  ;;  %v12830_v52 = vld [vmem:[%s12145_s5 + $0x70] sm:$0xf]  ;;  %14784 = vst [vmem:[#allocation85_spill] sm:$0xff] %v12835_v7  ;;  %v11596_v61 = vld [vmem:[#allocation2 + $0x3c8] sm:$0xff]   ;;  %v12845_v4 = vrot.slane %v5144_v27, 4 }
  0xd3   : > { %10180 = vmatprep.mubr.bf16.mxu0 %v12448_v39  ;;  %10209 = vmatpush3.bf16.msra.mxu0 %v11599_v37  ;;  %14783 = vst [vmem:[#allocation84_spill] sm:$0xff] %v12830_v52  ;;  %v12840_v39 = vld [vmem:[%s12145_s5 + $0x7c] sm:$0xf]  ;;  %v12847_v36 = vrot.slane %v5151_v2, 5  ;;  %v12851_v0 = vrot.slane %v14787_v24, 6  ;;  %v5157_v48 = vrot.slane %v14788_v5, 5 }
  0xd4   : > { %10210 = vmatprep.subr.bf16.mxu0 %v11601_v13  ;;  %14785 = vst [vmem:[#allocation86_spill] sm:$0xff] %v12840_v39  ;;  %14786 = vst [vmem:[#allocation87_spill] sm:$0xff] %v12845_v4  ;;  %v14789_v38 = vshll.u32 %v12820_v21, 16  ;;  %v14790_v2 = vshrl.u32 %v12830_v52, 16  ;;  %v5166_v37 = vshrl.u32 %v12855_v18, 16  ;;  %v11598_v5 = vld [vmem:[#allocation2 + $0x3d0] sm:$0xff]  }
  0xd5   : > { %v14792_v21 = vshrl.u32 %v12835_v7, 16  ;;  %v14794_v56 = vshrl.u32 %v12840_v39, 16  ;;  %v5181_v10 = vshrl.u32 %v12355_v45, 16 }
  0xd6   : > { %v5158_v27 = vrot.slane %v14789_v38, 6  ;;  %v5161_v24 = vrot.slane %v14790_v2, 5  ;;  %v14793_v38 = vshll.u32 %v12835_v7, 16 }
  0xd7   : > { %10211 = vmatpush3.bf16.msra.mxu0 %v11601_v13  ;;  %v14791_v13 = vshll.u32 %v12830_v52, 16  ;;  %v5172_v4 = vrot.slane %v14792_v21, 5  ;;  %v5176_v2 = vrot.slane %v14794_v56, 5  ;;  %v14795_v52 = vshll.u32 %v12840_v39, 16  ;;  %v12889_v56 = vld [vmem:[%s12145_s5 + $0x88] sm:$0xf] }
  0xd8   : > { %10244 = vmatprep.subr.bf16.mxu0 %v12824_v33  ;;  %v5173_v40 = vrot.slane %v14793_v38, 6  ;;  %14797 = vst [vmem:[#allocation89_spill] sm:$0xff] %v12889_v56  ;;  %v14594_v38 = vshrl.u32 %v12889_v56, 16 }
  0xd9   : > { %v5162_v15 = vrot.slane %v14791_v13, 6  ;;  %9589 = vmatmul.mubr.bf16.vlgmr.msra.gmra.mrb[0].mxu1 %v12200_v60  ;;  %v5177_v13 = vrot.slane %v14795_v52, 6  ;;  %v12882_v60 = vld [vmem:[%s12145_s5 + $0x84] sm:$0xf] }
  0xda   : > { %10181 = vmatmul.mubr.bf16.gmra.mrb[16].mxu0 %v12451_v29  ;;  %9621 = vmatpush3.bf16.msra.mxu1 %v12557_v23  ;;  %14796 = vst [vmem:[#allocation88_spill] sm:$0xff] %v12882_v60  ;;  %v14584_v31 = vshrl.u32 %v12882_v60, 16  ;;  %v14585_v21 = vshll.u32 %v12882_v60, 16  ;;  %v11600_v29 = vld [vmem:[#allocation2 + $0x3d8] sm:$0xff]   ;;  %v11602_v52 = vld [vmem:[#allocation2 + $0x3e0] sm:$0xff]   ;;  %v5191_v23 = vrot.slane %v14594_v38, 5 }
  0xdb   : > { %9592 = vmatprep.mubr.bf16.mxu1 %v12226_v22  ;;  %10184 = vmatprep.mubr.bf16.mxu0 %v12477_v42  ;;  %v11604_v60 = vld [vmem:[#allocation2 + $0x3e8] sm:$0xff]   ;;  %v12912_v22 = vrot.slane %v5166_v37, 5  ;;  %v14799_v38 = vshll.u32 %v12855_v18, 16  ;;  %v11606_v37 = vld [vmem:[#allocation2 + $0x3f0] sm:$0xff]  }
  0xdc   : > { %9622 = vmatprep.subr.bf16.mxu1 %v11596_v61  ;;  %v5187_v39 = vrot.slane %v14584_v31, 5  ;;  %v5188_v42 = vrot.slane %v14585_v21, 6  ;;  %v12906_v31 = vor.u32 %v5162_v15, %v5161_v24  ;;  %v5174_v21 = vor.u32 %v5173_v40, %v5172_v4 }
  0xdd   : > { %v14800_v40 = vshll.u32 %v12355_v45, 16  ;;  %v14801_v24 = vshll.u32 %v12359_v46, 16 }
  0xde   : > { %9623 = vmatpush3.bf16.msra.mxu1 %v11596_v61  ;;  %v14798_v61 = vshll.u32 %v12889_v56, 16  ;;  %v12916_v56 = vrot.slane %v14799_v38, 6 }
  0xdf   : > { %9624 = vmatprep.subr.bf16.mxu1 %v11598_v5  ;;  %v12929_v4 = vrot.slane %v14800_v40, 6 }
  0xe0   : > { %v5192_v7 = vrot.slane %v14798_v61, 6  ;;  %v11773_v61 = vld [vmem:[%s12145_s5 + $0x8c] sm:$0x3] }
  0xe1   : > { %9593 = vmatmul.mubr.bf16.gmra.mrb[4].mxu1 %v12232_v26  ;;  %v5159_v26 = vor.u32 %v5158_v27, %v5157_v48  ;;  %v5035_v48 = vor.u32 %v12631_v12, %v12627_v41  ;;  %v5189_v12 = vor.u32 %v5188_v42, %v5187_v39  ;;  %v12953_v42 = vld [vmem:[%s12145_s5 + $0x90] sm:$0xf] }
  0xe2   : > { %10185 = vmatmul.mubr.bf16.gmra.mrb[20].mxu0 %v12479_v59  ;;  %9596 = vmatprep.mubr.bf16.mxu1 %v12253_v47  ;;  %v12908_v59 = vor.u32 %v5177_v13, %v5176_v2  ;;  %v12934_v27 = vor.u32 %v5192_v7, %v5191_v23  ;;  %v14803_v2 = vrot.slane %v12531_v20, 9  ;;  %14805 = vst [vmem:[#allocation90_spill] sm:$0xff] %v12953_v42  ;;  %v14603_v7 = vshrl.u32 %v12953_v42, 16 }
  0xe3   : > { %10188 = vmatprep.mubr.bf16.mxu0 %v12496_v9  ;;  %9625 = vmatpush3.bf16.msra.mxu1 %v11598_v5  ;;  %v12910_v47 = vrot.slane %v5159_v26, 4  ;;  %v5196_v9 = vshrl.u32 %v11773_v61, 16  ;;  %v12925_v26 = vrot.slane %v5181_v10, 5  ;;  %v12938_v10 = vrot.slane %v14801_v24, 6  ;;  %v12973_v61 = vld [vmem:[%s12145_s5 + $0x98] sm:$0x3] }
  0xe4   : > { %9626 = vmatprep.subr.bf16.mxu1 %v11600_v29  ;;  %v14802_v5 = vrot.slane %v12536_v14, 5  ;;  %v5029_v20 = vsel %vm12419_vm5, %v12565_v11, %v12533_v32  ;;  %v14806_v14 = vrot.slane %v12533_v32, 4  ;;  %14808 = vst [vmem:[#allocation92_spill] sm:$0xff] %v12973_v61  ;;  %v14600_v40 = vshll.u32 %v12973_v61, 16  ;;  %v11609_v11 = vld [vmem:[#allocation2 + $0x3f8] sm:$0xff]  }
  0xe5   : > { %v12965_v38 = vrot.slane %v5196_v9, 5  ;;  %v5065_v9 = vor.u32 %v12635_v8, %v12639_v34  ;;  %v5059_v8 = vsel %vm12419_vm5, %v12653_v6, %v12637_v44  ;;  %v14810_v34 = vrot.slane %v12637_v44, 4  ;;  %v14813_v6 = vld [vmem:[#allocation27_spill] sm:$0xff] }
  0xe6   : > { %v4753_v13 = vsel %vm12163_vm2, %v14803_v2, %v14802_v5  ;;  %v12976_v5 = vrot.slane %v5189_v12, 4  ;;  %v5202_v2 = vrot.slane %v14603_v7, 5  ;;  %v12987_v12 = vld [vmem:[#allocation2 + $0x500] sm:$0xff]  }
  0xe7   : > { %9627 = vmatpush3.bf16.msra.mxu1 %v11600_v29  ;;  %v12923_v29 = vrot.slane %v5174_v21, 4  ;;  %v14804_v21 = vrot.slane %v12553_v53, 5  ;;  %v5036_v53 = vsel %vm12419_vm5, %v14806_v14, %v5035_v48  ;;  %v11605_v14 = vld [vmem:[#allocation2 + $0x208] sm:$0xff]  }
  0xe8   : > { %9628 = vmatprep.subr.bf16.mxu1 %v11602_v52  ;;  %v8728_v48 = vcombine.low %v5029_v20, %v5036_v53  ;;  %v5066_v20 = vsel %vm12419_vm5, %v14810_v34, %v5065_v9  ;;  %v13012_v9 = vrot.slane %v14600_v40, 6  ;;  %v14815_v34 = vld [vmem:[#allocation28_spill] sm:$0xff] }
  0xe9   : > { %9597 = vmatmul.mubr.bf16.gmra.mrb[8].mxu1 %v12257_v50  ;;  %v4756_v39 = vsel %vm12163_vm2, %v12625_v25, %v14804_v21  ;;  %v12968_v25 = vld [vmem:[%s12145_s5 + $0x94] sm:$0xf]  ;;  %v13000_v53 = vcombine.low %v5059_v8, %v5066_v20  ;;  %v14814_v8 = vld [vmem:[#allocation41_spill] sm:$0xff]  ;;  %v14821_v7 = vld [vmem:[#allocation68_spill] sm:$0xff] }
  0xea   : > { %10189 = vmatmul.mubr.bf16.gmra.mrb[24].mxu0 %v12498_v43  ;;  %9600 = vmatprep.mubr.bf16.mxu1 %v12269_v63  ;;  %14807 = vst [vmem:[#allocation91_spill] sm:$0xff] %v12968_v25  ;;  %v14599_v23 = vshrl.u32 %v12968_v25, 16  ;;  %v8719_v24 = vcombine.low %v4753_v13, %v4756_v39  ;;  %v14809_v13 = vld [vmem:[#allocation26_spill] sm:$0xff]  ;;  %v5211_v39 = vshrl.u32 %v12973_v61, 16  ;;  %v14824_v43 = vld [vmem:[#allocation29_spill] sm:$0xff] }
  0xeb   : > { %10192 = vmatprep.mubr.bf16.mxu0 %v12524_v57  ;;  %9629 = vmatpush3.bf16.msra.mxu1 %v11602_v52  ;;  %v14602_v57 = vshll.u32 %v12953_v42, 16  ;;  %v14601_v52 = vshll.u32 %v12968_v25, 16 }
  0xec   : > { %9630 = vmatprep.subr.bf16.mxu1 %v11604_v60 }
  0xed   : > { %v5203_v21 = vrot.slane %v14602_v57, 6  ;;  %v5207_v44 = vrot.slane %v14601_v52, 6 }
  0xef   : > { %9631 = vmatpush3.bf16.msra.mxu1 %v11604_v60  ;;  %v5206_v60 = vrot.slane %v14599_v23, 5  ;;  %v5204_v15 = vor.u32 %v5203_v21, %v5202_v2  ;;  %v5119_v21 = vsel %vm12419_vm5, %v12798_v49, %v12772_v17  ;;  %v5155_v49 = vor.u32 %v12851_v0, %v12847_v36  ;;  %v11616_v0 = vld [vmem:[#allocation2 + $0x230] sm:$0xff]   ;;  %v13099_v36 = vld [vmem:[%s12145_s5 + $0xa8] sm:$0xf] }
  0xf0   : > { %9632 = vmatprep.subr.bf16.mxu1 %v11606_v37  ;;  %14833 = vst [vmem:[#allocation27_spill] sm:$0xff] %v13099_v36 }
  0xf1   : > { %9601 = vmatmul.mubr.bf16.gmra.mrb[12].mxu1 %v12273_v3 }
  0xf2   : > { %10193 = vmatmul.mubr.bf16.gmra.mrb[28].mxu0 %v8719_v24  ;;  %9604 = vmatprep.mubr.bf16.mxu1 %v14809_v13  ;;  %v5080_v24 = vor.u32 %v12671_v62, %v12686_v55  ;;  %v11607_v55 = vld [vmem:[#allocation2 + $0x210] sm:$0xff]   ;;  %v13016_v62 = vrot.slane %v5211_v39, 5  ;;  %v14820_v39 = vld [vmem:[#allocation63_spill] sm:$0xff] }
  0xf3   : > { %10212 = vmatprep.mubr.bf16.mxu0 %v8728_v48  ;;  %9633 = vmatpush3.bf16.msra.mxu1 %v11606_v37  ;;  %v14811_v37 = vld [vmem:[#allocation69_spill] sm:$0xff]  ;;  %v14812_v48 = vld [vmem:[#allocation70_spill] sm:$0xff]  ;;  %v5089_v32 = vsel %vm12419_vm5, %v14821_v7, %v14820_v39  ;;  %v5125_v7 = vor.u32 %v12792_v30, %v12788_v1 }
  0xf4   : > { %9634 = vmatprep.subr.bf16.mxu1 %v11609_v11  ;;  %v5095_v23 = vor.u32 %v14812_v48, %v14811_v37  ;;  %v14817_v37 = vld [vmem:[#allocation59_spill] sm:$0xff]  ;;  %v14818_v48 = vld [vmem:[#allocation64_spill] sm:$0xff]  ;;  %v14827_v30 = vld [vmem:[#allocation77_spill] sm:$0xff]  ;;  %v5215_v42 = vor.u32 %v13012_v9, %v13016_v62 }
  0xf5   : > { %v5074_v40 = vsel %vm12419_vm5, %v14818_v48, %v14817_v37  ;;  %v14819_v52 = vrot.slane %v14817_v37, 4  ;;  %v11610_v48 = vld [vmem:[#allocation2 + $0x218] sm:$0xff]   ;;  %v5104_v1 = vsel %vm12419_vm5, %v14827_v30, %v12725_v54  ;;  %v11614_v30 = vld [vmem:[#allocation2 + $0x228] sm:$0xff]  }
  0xf7   : > { %9635 = vmatpush3.bf16.msra.mxu1 %v11609_v11  ;;  %v13019_v11 = vld [vmem:[%s12145_s5 + $0x9c] sm:$0xf]  ;;  %v5081_v57 = vsel %vm12419_vm5, %v14819_v52, %v5080_v24  ;;  %v14823_v52 = vld [vmem:[#allocation72_spill] sm:$0xff] }
  0xf8   : > { %9668 = vmatprep.subr.bf16.mxu1 %v12987_v12  ;;  %14816 = vst [vmem:[#allocation26_spill] sm:$0xff] %v13019_v11  ;;  %v13040_v20 = vcombine.low %v5074_v40, %v5081_v57  ;;  %v5110_v24 = vor.u32 %v14823_v52, %v12770_v51  ;;  %v14825_v57 = vld [vmem:[#allocation31_spill] sm:$0xff]  ;;  %v13076_v52 = vor.u32 %v5207_v44, %v5206_v60  ;;  %v13089_v60 = vld [vmem:[%s12145_s5 + $0xa4] sm:$0x3] }
  0xf9   : > { %9605 = vmatmul.mubr.bf16.gmra.mrb[16].mxu1 %v14813_v6  ;;  %v11612_v40 = vld [vmem:[#allocation2 + $0x220] sm:$0xff]   ;;  %14830 = vst [vmem:[#allocation70_spill] sm:$0xff] %v13089_v60 }
  0xfa   : > { %10213 = vmatmul.mubr.bf16.vlgmr.msra.gmra.mrb[0].mxu0 %v14814_v8  ;;  %9608 = vmatprep.mubr.bf16.mxu1 %v14815_v34 }
  0xfb   : > { %10245 = vmatpush3.bf16.msra.mxu0 %v12824_v33  ;;  %10216 = vmatprep.mubr.bf16.mxu0 %v13000_v53  ;;  %v14822_v33 = vrot.slane %v14820_v39, 4  ;;  %v13049_v39 = vrot.slane %v5204_v15, 4  ;;  %v14828_v15 = vrot.slane %v12725_v54, 4 }
  0xfc   : > { %10246 = vmatprep.subr.bf16.mxu0 %v11605_v14 }
  0xfd   : > { %v5096_v41 = vsel %vm12419_vm5, %v14822_v33, %v5095_v23  ;;  %v14606_v23 = vshll.u32 %v13019_v11, 16  ;;  %v5111_v2 = vsel %vm12419_vm5, %v14828_v15, %v5110_v24  ;;  %v14831_v24 = vld [vmem:[#allocation34_spill] sm:$0xff] }
  0xfe   : > { %v13042_v37 = vcombine.low %v5089_v32, %v5096_v41  ;;  %v13055_v41 = vld [vmem:[%s12145_s5 + $0xa0] sm:$0xf]  ;;  %v13078_v54 = vcombine.low %v5104_v1, %v5111_v2  ;;  %v14835_v1 = vld [vmem:[#allocation81_spill] sm:$0xff] }
  0xff   : > { %10247 = vmatpush3.bf16.msra.mxu0 %v11605_v14  ;;  %14826 = vst [vmem:[#allocation69_spill] sm:$0xff] %v13055_v41  ;;  %v14605_v51 = vshrl.u32 %v13055_v41, 16  ;;  %v14829_v14 = vrot.slane %v12772_v17, 4 }
 0x100   : > { %10248 = vmatprep.subr.bf16.mxu0 %v11607_v55 }
 0x101   : > { %9609 = vmatmul.mubr.bf16.gmra.mrb[20].mxu1 %v14824_v43  ;;  %v5126_v33 = vsel %vm12419_vm5, %v14829_v14, %v5125_v7  ;;  %v14834_v7 = vld [vmem:[#allocation79_spill] sm:$0xff]  ;;  %v5170_v14 = vor.u32 %v12916_v56, %v12912_v22  ;;  %v5185_v22 = vor.u32 %v12929_v4, %v12925_v26  ;;  %v5218_v26 = vrot.slane %v14606_v23, 6  ;;  %v14849_v23 = vld [vmem:[#allocation46_spill] sm:$0xff] }
 0x102   : > { %10217 = vmatmul.mubr.bf16.gmra.mrb[4].mxu0 %v13040_v20  ;;  %9612 = vmatprep.mubr.bf16.mxu1 %v14825_v57  ;;  %v13080_v32 = vcombine.low %v5119_v21, %v5126_v33  ;;  %v5134_v15 = vsel %vm12419_vm5, %v14835_v1, %v14834_v7  ;;  %v14836_v2 = vrot.slane %v14834_v7, 4  ;;  %v14837_v33 = vld [vmem:[#allocation83_spill] sm:$0xff]  ;;  %v13122_v1 = vld [vmem:[%s12145_s5 + $0xd0] sm:$0xf]  ;;  %v13125_v7 = vld [vmem:[%s12145_s5 + $0xcc] sm:$0xf] }
 0x103   : > { %10220 = vmatprep.mubr.bf16.mxu0 %v13042_v37  ;;  %10249 = vmatpush3.bf16.msra.mxu0 %v11607_v55  ;;  %v5140_v55 = vor.u32 %v12808_v35, %v12804_v16  ;;  %v14832_v16 = vshrl.u32 %v13019_v11, 16  ;;  %v14839_v44 = vrot.slane %v14837_v33, 4  ;;  %14840 = vst [vmem:[#allocation41_spill] sm:$0xff] %v13122_v1  ;;  %14841 = vst [vmem:[#allocation28_spill] sm:$0xff] %v13125_v7  ;;  %v5221_v4 = vrot.slane %v14605_v51, 5 }
 0x104   : > { %10250 = vmatprep.subr.bf16.mxu0 %v11610_v48  ;;  %v13170_v51 = vld [vmem:[%s12145_s5 + $0xb0] sm:$0x3] }
 0x105   : > { %v13096_v35 = vrot.slane %v14832_v16, 5  ;;  %v5141_v21 = vsel %vm12419_vm5, %v14836_v2, %v5140_v55  ;;  %v14838_v16 = vld [vmem:[#allocation87_spill] sm:$0xff]  ;;  %v13129_v55 = vcombine.low %v13125_v7, %v13122_v1  ;;  %14847 = vst [vmem:[#allocation64_spill] sm:$0xff] %v13170_v51  ;;  %v5241_v25 = vshrl.u32 %v13170_v51, 16 }
 0x106   : > { %v5149_v17 = vsel %vm12419_vm5, %v14838_v16, %v14837_v33  ;;  %v13133_v56 = vcombine.low %v5134_v15, %v5141_v21  ;;  %v5226_v21 = vshrl.u32 %v13089_v60, 16  ;;  %v14850_v16 = vld [vmem:[#allocation47_spill] sm:$0xff] }
 0x107   : > { %10251 = vmatpush3.bf16.msra.mxu0 %v11610_v48  ;;  %v5156_v48 = vsel %vm12419_vm5, %v14839_v44, %v5155_v49  ;;  %v5164_v49 = vsel %vm12419_vm5, %v12910_v47, %v12906_v31  ;;  %v14842_v44 = vrot.slane %v12906_v31, 4  ;;  %v5179_v47 = vsel %vm12419_vm5, %v12923_v29, %v12908_v59 }
 0x108   : > { %10252 = vmatprep.subr.bf16.mxu0 %v11612_v40  ;;  %v13135_v2 = vcombine.low %v5149_v17, %v5156_v48  ;;  %v14843_v17 = vshll.u32 %v13055_v41, 16  ;;  %v14844_v31 = vrot.slane %v12908_v59, 4  ;;  %v13173_v59 = vld [vmem:[#allocation2 + $0x340] sm:$0xff]   ;;  %v1667_v15 = vor.u32 %v14850_v16, %v14849_v23  ;;  %v14853_v41 = vld [vmem:[#allocation38_spill] sm:$0xff] }
 0x109   : > { %9613 = vmatmul.mubr.bf16.gmra.mrb[24].mxu1 %v12371_v58  ;;  %v5171_v33 = vsel %vm12419_vm5, %v14842_v44, %v5170_v14  ;;  %v13163_v14 = vld [vmem:[%s12145_s5 + $0xac] sm:$0xf]  ;;  %v14846_v44 = vld [vmem:[#allocation16_spill] sm:$0xff]  ;;  %v14854_v11 = vshll.u32 %v14853_v41, 16  ;;  %v14855_v29 = vshll.u32 %v13099_v36, 16  ;;  %v5200_v23 = vor.u32 %v12938_v10, %v12965_v38 }
 0x10a   : > { %10221 = vmatmul.mubr.bf16.gmra.mrb[8].mxu0 %v13078_v54  ;;  %9616 = vmatprep.mubr.bf16.mxu1 %v14831_v24  ;;  %v5222_v48 = vrot.slane %v14843_v17, 6  ;;  %14845 = vst [vmem:[#allocation59_spill] sm:$0xff] %v13163_v14  ;;  %v1668_v16 = vrot.slane %v1667_v15, 4  ;;  %v11615_v15 = vld [vmem:[#allocation2 + $0x510] sm:$0xff]  }
 0x10b   : > { %10224 = vmatprep.mubr.bf16.mxu0 %v13080_v32  ;;  %10253 = vmatpush3.bf16.msra.mxu0 %v11612_v40  ;;  %v11618_v40 = vld [vmem:[#allocation2 + $0x238] sm:$0xff]   ;;  %v1682_v61 = vrot.slane %v14854_v11, 5  ;;  %v5233_v46 = vrot.slane %v14855_v29, 6  ;;  %v5219_v11 = vor.u32 %v5218_v26, %v13096_v35  ;;  %v11613_v35 = vld [vmem:[#allocation2 + $0x508] sm:$0xff]   ;;  %v14859_v26 = vshll.u32 %v13163_v14, 16 }
 0x10c   : > { %10254 = vmatprep.subr.bf16.mxu0 %v11614_v30  ;;  %v13198_v29 = vor.u32 %v5222_v48, %v5221_v4  ;;  %v14861_v48 = vrot.slane %v12934_v27, 4 }
 0x10d   : > { %v5237_v4 = vrot.slane %v14859_v26, 6  ;;  %v14864_v26 = vrot.slane %v13076_v52, 4 }
 0x10f   : > { %10255 = vmatpush3.bf16.msra.mxu0 %v11614_v30  ;;  %v5186_v30 = vsel %vm12419_vm5, %v14844_v31, %v5185_v22  ;;  %v14848_v22 = vshrl.u32 %v13099_v36, 16  ;;  %v5194_v36 = vsel %vm12419_vm5, %v12976_v5, %v12934_v27  ;;  %v13216_v5 = vld [vmem:[%s12145_s5 + $0xb4] sm:$0xf]  ;;  %v5225_v27 = vrot.slane %v13198_v29, 4 }
 0x110   : > { %10256 = vmatprep.subr.bf16.mxu0 %v11616_v0  ;;  %v13195_v41 = vcombine.low %v5179_v47, %v5186_v30  ;;  %v14624_v9 = vshrl.u32 %v13216_v5, 16  ;;  %v14862_v47 = vshll.u32 %v13089_v60, 16 }
 0x111   : > { %9617 = vmatmul.mubr.bf16.gmra.mrb[28].mxu1 %v13129_v55  ;;  %v5232_v31 = vrot.slane %v14848_v22, 5 }
 0x112   : > { %10225 = vmatmul.mubr.bf16.gmra.mrb[12].mxu0 %v13133_v56  ;;  %9636 = vmatprep.mubr.bf16.mxu1 %v14846_v44  ;;  %v14851_v44 = vld [vmem:[#allocation49_spill] sm:$0xff]  ;;  %v5229_v30 = vrot.slane %v14862_v47, 6  ;;  %v5247_v60 = vrot.slane %v14624_v9, 5 }
 0x113   : > { %10228 = vmatprep.mubr.bf16.mxu0 %v13135_v2  ;;  %10257 = vmatpush3.bf16.msra.mxu0 %v11616_v0  ;;  %v1677_v17 = vor.u32 %v14852_v19, %v14851_v44  ;;  %v13193_v19 = vcombine.low %v5164_v49, %v5171_v33  ;;  %v1673_v10 = vsel %vm13187_vm8, %v1668_v16, %v14851_v44  ;;  %v14858_v49 = vshrl.u32 %v13163_v14, 16  ;;  %v13231_v44 = vld [vmem:[%s12145_s5 + $0xb8] sm:$0xf]  ;;  %v13251_v16 = vld [vmem:[%s12145_s5 + $0xbc] sm:$0x3]  ;;  %v11734_v0 = vld [vmem:[#allocation2 + $0x600] sm:$0xff]  }
 0x114   : > { %10258 = vmatprep.subr.bf16.mxu0 %v11618_v40  ;;  %v5234_v47 = vor.u32 %v5233_v46, %v5232_v31  ;;  %v14867_v14 = vshrl.u32 %v13231_v44, 16  ;;  %v14868_v46 = vshll.u32 %v13231_v44, 16 }
 0x115   : > { %v1678_v22 = vrot.slane %v1677_v17, 4  ;;  %v5236_v33 = vrot.slane %v14858_v49, 5  ;;  %v5209_v49 = vsel %vm12419_vm5, %v13049_v39, %v13076_v52  ;;  %v14866_v39 = vshll.u32 %v13216_v5, 16 }
 0x116   : > { %v5252_v31 = vrot.slane %v14868_v46, 6  ;;  %v5235_v9 = vrot.slane %v5234_v47, 4  ;;  %v11621_v47 = vld [vmem:[#allocation2 + $0x528] sm:$0xff]  }
 0x117   : > { %10259 = vmatpush3.bf16.msra.mxu0 %v11618_v40  ;;  %v1683_v38 = vsel %vm13187_vm8, %v1678_v22, %v1682_v61  ;;  %v14860_v40 = vld [vmem:[#allocation18_spill] sm:$0xff]  ;;  %v5201_v61 = vsel %vm12419_vm5, %v14861_v48, %v5200_v23  ;;  %v5220_v22 = vrot.slane %v5219_v11, 4  ;;  %v5243_v11 = vrot.slane %v5241_v25, 5  ;;  %v11631_v46 = vld [vmem:[#allocation2 + $0x368] sm:$0xff]  }
 0x118   : > { %10292 = vmatprep.subr.bf16.mxu0 %v13173_v59  ;;  %v13220_v62 = vcombine.low %v1673_v10, %v1683_v38  ;;  %v5228_v10 = vrot.slane %v5226_v21, 5  ;;  %v14863_v38 = vld [vmem:[#allocation20_spill] sm:$0xff]  ;;  %v14865_v48 = vshll.u32 %v13170_v51, 16  ;;  %v5238_v23 = vor.u32 %v5237_v4, %v5236_v33 }
 0x119   : > { %9637 = vmatmul.mubr.bf16.vlgmr.msra.gmra.mrb[0].mxu1 %v14860_v40  ;;  %v5248_v52 = vrot.slane %v14866_v39, 6  ;;  %v13260_v25 = vcombine.low %v5194_v36, %v5201_v61  ;;  %v5256_v33 = vshrl.u32 %v13251_v16, 16  ;;  %v14869_v39 = vld [vmem:[#allocation22_spill] sm:$0xff]  ;;  %v5224_v36 = vsel %vm12419_vm5, %v5220_v22, %v13198_v29  ;;  %v11619_v29 = vld [vmem:[#allocation2 + $0x520] sm:$0xff]  }
 0x11a   : > { %10229 = vmatmul.mubr.bf16.gmra.mrb[16].mxu0 %v13193_v19  ;;  %9669 = vmatpush3.bf16.msra.mxu1 %v12987_v12  ;;  %v5216_v12 = vsel %vm12419_vm5, %v14864_v26, %v5215_v42  ;;  %v5244_v21 = vrot.slane %v14865_v48, 6  ;;  %v5251_v42 = vrot.slane %v14867_v14, 5  ;;  %v5230_v26 = vor.u32 %v5229_v30, %v5228_v10  ;;  %v11617_v48 = vld [vmem:[#allocation2 + $0x518] sm:$0xff]  }
 0x11b   : > { %9640 = vmatprep.mubr.bf16.mxu1 %v14863_v38  ;;  %10232 = vmatprep.mubr.bf16.mxu0 %v13195_v41  ;;  %v13265_v4 = vcombine.low %v5209_v49, %v5216_v12  ;;  %v5240_v17 = vrot.slane %v5238_v23, 4  ;;  %v5258_v30 = vrot.slane %v5256_v33, 5  ;;  %v14870_v10 = vshll.u32 %v13251_v16, 16  ;;  %v13314_v33 = vld [vmem:[%s12145_s5 + $0xdc] sm:$0xf] }
 0x11c   : > { %9670 = vmatprep.subr.bf16.mxu1 %v11613_v35  ;;  %v5245_v51 = vor.u32 %v5244_v21, %v5243_v11  ;;  %v5231_v14 = vsel %vm12419_vm5, %v5225_v27, %v5230_v26  ;;  %v5253_v61 = vor.u32 %v5252_v31, %v5251_v42  ;;  %v5239_v12 = vsel %vm12419_vm5, %v5235_v9, %v5238_v23  ;;  %v11628_v42 = vld [vmem:[#allocation2 + $0x40] sm:$0xff]   ;;  %v11622_v26 = vld [vmem:[#allocation2 + $0x348] sm:$0xff]   ;;  %v11633_v31 = vld [vmem:[#allocation2 + $0x370] sm:$0xff]  }
 0x11d   : > { %v5259_v49 = vrot.slane %v14870_v10, 6  ;;  %v13282_v22 = vcombine.low %v5224_v36, %v5231_v14  ;;  %v13317_v36 = vld [vmem:[%s12145_s5 + $0xd8] sm:$0xf]  ;;  %v13333_v10 = vld [vmem:[%s12145_s5 + $0xc0] sm:$0xf] }
 0x11e   : > { %9671 = vmatpush3.bf16.msra.mxu1 %v11613_v35  ;;  %v5249_v35 = vor.u32 %v5248_v52, %v5247_v60  ;;  %v5246_v11 = vsel %vm12419_vm5, %v5240_v17, %v5245_v51  ;;  %v11623_v17 = vld [vmem:[#allocation2 + $0x530] sm:$0xff]   ;;  %v11626_v52 = vld [vmem:[#allocation2 + $0x538] sm:$0xff]   ;;  %v13321_v14 = vcombine.low %v13317_v36, %v13314_v33  ;;  %14871 = vst [vmem:[#allocation63_spill] sm:$0xff] %v13333_v10 }
 0x11f   : > { %9672 = vmatprep.subr.bf16.mxu1 %v11615_v15  ;;  %v13284_v27 = vcombine.low %v5239_v12, %v5246_v11  ;;  %v5260_v60 = vor.u32 %v5259_v49, %v5258_v30  ;;  %v11630_v30 = vld [vmem:[#allocation2 + $0x48] sm:$0xff]   ;;  %v11632_v49 = vld [vmem:[#allocation2 + $0x50] sm:$0xff]   ;;  %v14629_v12 = vshll.u32 %v13333_v10, 16  ;;  %v13340_v11 = vld [vmem:[%s12145_s5 + $0xc4] sm:$0xf] }
 0x120   : > { %v5250_v21 = vrot.slane %v5249_v35, 4  ;;  %v11635_v35 = vld [vmem:[#allocation2 + $0x378] sm:$0xff]   ;;  %14872 = vst [vmem:[#allocation68_spill] sm:$0xff] %v13340_v11 }
 0x121   : > { %9641 = vmatmul.mubr.bf16.gmra.mrb[4].mxu1 %v14869_v39 }
 0x122   : > { %10233 = vmatmul.mubr.bf16.gmra.mrb[20].mxu0 %v13260_v25  ;;  %9644 = vmatprep.mubr.bf16.mxu1 %v12257_v50  ;;  %v5254_v51 = vsel %vm12419_vm5, %v5250_v21, %v5253_v61  ;;  %v13345_v21 = vld [vmem:[%s12145_s5 + $0xc8] sm:$0x3] }
 0x123   : > { %10236 = vmatprep.mubr.bf16.mxu0 %v13265_v4  ;;  %9673 = vmatpush3.bf16.msra.mxu1 %v11615_v15  ;;  %v5255_v15 = vrot.slane %v5253_v61, 4  ;;  %v13327_v61 = vld [vmem:[#allocation2 + $0x480] sm:$0xff]   ;;  %14873 = vst [vmem:[#allocation72_spill] sm:$0xff] %v13345_v21 }
 0x124   : > { %9674 = vmatprep.subr.bf16.mxu1 %v11617_v48 }
 0x125   : > { %v5261_v9 = vsel %vm12419_vm5, %v5255_v15, %v5260_v60  ;;  %v14626_v15 = vshll.u32 %v13345_v21, 16  ;;  %v5585_v60 = vrot.slane %v14629_v12, 6 }
 0x126   : > { %v13294_v23 = vcombine.low %v5254_v51, %v5261_v9  ;;  %v5593_v9 = vshrl.u32 %v13345_v21, 16  ;;  %v14935_v21 = vld [vmem:[#allocation76_spill] sm:$0xff] }
 0x127   : > { %9675 = vmatpush3.bf16.msra.mxu1 %v11617_v48  ;;  %v11624_v48 = vld [vmem:[#allocation2 + $0x350] sm:$0xff]  }
 0x128   : > { %9676 = vmatprep.subr.bf16.mxu1 %v11619_v29 }
 0x129   : > { %9645 = vmatmul.mubr.bf16.gmra.mrb[8].mxu1 %v12269_v63 }
 0x12a   : > { %10237 = vmatmul.mubr.bf16.gmra.mrb[24].mxu0 %v13282_v22  ;;  %9648 = vmatprep.mubr.bf16.mxu1 %v12273_v3 }
 0x12b   : > { %10240 = vmatprep.mubr.bf16.mxu0 %v13284_v27  ;;  %9677 = vmatpush3.bf16.msra.mxu1 %v11619_v29  ;;  %v14628_v29 = vshll.u32 %v13340_v11, 16 }
 0x12c   : > { %9678 = vmatprep.subr.bf16.mxu1 %v11621_v47 }
 0x12d   : > { %v5589_v51 = vrot.slane %v14628_v29, 6 }
 0x12f   : > { %9679 = vmatpush3.bf16.msra.mxu1 %v11621_v47 }
 0x130   : > { %9680 = vmatprep.subr.bf16.mxu1 %v11623_v17 }
 0x131   : > { %9649 = vmatmul.mubr.bf16.gmra.mrb[12].mxu1 %v14809_v13 }
 0x132   : > { %10241 = vmatmul.mubr.bf16.gmra.mrb[28].mxu0 %v13294_v23  ;;  %9652 = vmatprep.mubr.bf16.mxu1 %v14813_v6 }
 0x133   : > { %10260 = vmatprep.mubr.bf16.mxu0 %v14814_v8  ;;  %9681 = vmatpush3.bf16.msra.mxu1 %v11623_v17  ;;  %v11627_v8 = vld [vmem:[#allocation2 + $0x358] sm:$0xff]  }
 0x134   : > { %9682 = vmatprep.subr.bf16.mxu1 %v11626_v52  ;;  %v11634_v17 = vld [vmem:[#allocation2 + $0x58] sm:$0xff]  }
 0x137   : > { %9683 = vmatpush3.bf16.msra.mxu1 %v11626_v52 }
 0x138   : > { %9716 = vmatprep.subr.bf16.mxu1 %v11628_v42 }
 0x139   : > { %9653 = vmatmul.mubr.bf16.gmra.mrb[16].mxu1 %v14815_v34 }
 0x13a   : > { %10261 = vmatmul.mubr.bf16.vlgmr.msra.gmra.mrb[0].mxu0 %v13000_v53  ;;  %9656 = vmatprep.mubr.bf16.mxu1 %v14824_v43 }
 0x13b   : > { %10293 = vmatpush3.bf16.msra.mxu0 %v13173_v59  ;;  %10264 = vmatprep.mubr.bf16.mxu0 %v13040_v20  ;;  %v11629_v59 = vld [vmem:[#allocation2 + $0x360] sm:$0xff]  }
 0x13c   : > { %10294 = vmatprep.subr.bf16.mxu0 %v11622_v26 }
 0x13f   : > { %10295 = vmatpush3.bf16.msra.mxu0 %v11622_v26  ;;  %v5595_v26 = vrot.slane %v5593_v9, 5  ;;  %v14877_v9 = vld [vmem:[#allocation33_spill] sm:$0xff] }
 0x140   : > { %10296 = vmatprep.subr.bf16.mxu0 %v11624_v48 }
 0x141   : > { %9657 = vmatmul.mubr.bf16.gmra.mrb[20].mxu1 %v14825_v57 }
 0x142   : > { %10265 = vmatmul.mubr.bf16.gmra.mrb[4].mxu0 %v13042_v37  ;;  %9660 = vmatprep.mubr.bf16.mxu1 %v12371_v58 }
 0x143   : > { %10268 = vmatprep.mubr.bf16.mxu0 %v13078_v54  ;;  %10297 = vmatpush3.bf16.msra.mxu0 %v11624_v48  ;;  %v5596_v48 = vrot.slane %v14626_v15, 6 }
 0x144   : > { %10298 = vmatprep.subr.bf16.mxu0 %v11627_v8 }
 0x147   : > { %10299 = vmatpush3.bf16.msra.mxu0 %v11627_v8  ;;  %v11636_v8 = vld [vmem:[#allocation2 + $0x60] sm:$0xff]  }
 0x148   : > { %10300 = vmatprep.subr.bf16.mxu0 %v11629_v59 }
 0x149   : > { %9661 = vmatmul.mubr.bf16.gmra.mrb[24].mxu1 %v14831_v24 }
 0x14a   : > { %10269 = vmatmul.mubr.bf16.gmra.mrb[8].mxu0 %v13080_v32  ;;  %9664 = vmatprep.mubr.bf16.mxu1 %v13129_v55 }
 0x14b   : > { %10272 = vmatprep.mubr.bf16.mxu0 %v13133_v56  ;;  %10301 = vmatpush3.bf16.msra.mxu0 %v11629_v59 }
 0x14c   : > { %10302 = vmatprep.subr.bf16.mxu0 %v11631_v46 }
 0x14f   : > { %10303 = vmatpush3.bf16.msra.mxu0 %v11631_v46 }
 0x150   : > { %10304 = vmatprep.subr.bf16.mxu0 %v11633_v31 }
 0x151   : > { %9665 = vmatmul.mubr.bf16.gmra.mrb[28].mxu1 %v13321_v14 }
 0x152   : > { %10273 = vmatmul.mubr.bf16.gmra.mrb[12].mxu0 %v13135_v2  ;;  %9684 = vmatprep.mubr.bf16.mxu1 %v14860_v40  ;;  %v14630_v40 = vshrl.u32 %v13333_v10, 16 }
 0x153   : > { %10276 = vmatprep.mubr.bf16.mxu0 %v13193_v19  ;;  %10305 = vmatpush3.bf16.msra.mxu0 %v11633_v31  ;;  %v5597_v31 = vor.u32 %v5596_v48, %v5595_v26 }
 0x154   : > { %10306 = vmatprep.subr.bf16.mxu0 %v11635_v35 }
 0x157   : > { %10307 = vmatpush3.bf16.msra.mxu0 %v11635_v35 }
 0x158   : > { %10340 = vmatprep.subr.bf16.mxu0 %v13327_v61 }
 0x159   : > { %9685 = vmatmul.mubr.bf16.vlgmr.msra.gmra.mrb[0].mxu1 %v14863_v38  ;;  %v14627_v38 = vshrl.u32 %v13340_v11, 16 }
 0x15a   : > { %10277 = vmatmul.mubr.bf16.gmra.mrb[16].mxu0 %v13195_v41  ;;  %9717 = vmatpush3.bf16.msra.mxu1 %v11628_v42 }
 0x15b   : > { %9688 = vmatprep.mubr.bf16.mxu1 %v14869_v39  ;;  %10280 = vmatprep.mubr.bf16.mxu0 %v13260_v25  ;;  %v5584_v39 = vrot.slane %v14630_v40, 5  ;;  %v5588_v47 = vrot.slane %v14627_v38, 5  ;;  %v14908_v40 = vld [vmem:[#allocation61_spill] sm:$0xff] }
 0x15c   : > { %9718 = vmatprep.subr.bf16.mxu1 %v11630_v30 }
 0x15d   : > { %v5586_v52 = vor.u32 %v5585_v60, %v5584_v39  ;;  %v5590_v42 = vor.u32 %v5589_v51, %v5588_v47  ;;  %v11639_v39 = vld [vmem:[#allocation2 + $0x488] sm:$0xff]  }
 0x15e   : > { %9719 = vmatpush3.bf16.msra.mxu1 %v11630_v30  ;;  %v11640_v30 = vld [vmem:[#allocation2 + $0x70] sm:$0xff]  }
 0x15f   : > { %9720 = vmatprep.subr.bf16.mxu1 %v11632_v49  ;;  %v5587_v59 = vrot.slane %v5586_v52, 4  ;;  %v5592_v46 = vrot.slane %v5590_v42, 4 }
 0x161   : > { %9689 = vmatmul.mubr.bf16.gmra.mrb[4].mxu1 %v12257_v50  ;;  %v11638_v50 = vld [vmem:[#allocation2 + $0x68] sm:$0xff]   ;;  %v5598_v35 = vsel %vm12419_vm5, %v5592_v46, %v5597_v31 }
 0x162   : > { %10281 = vmatmul.mubr.bf16.gmra.mrb[20].mxu0 %v13265_v4  ;;  %9692 = vmatprep.mubr.bf16.mxu1 %v12269_v63  ;;  %v5591_v63 = vsel %vm12419_vm5, %v5587_v59, %v5590_v42  ;;  %v14880_v59 = vld [vmem:[#allocation51_spill] sm:$0xff] }
 0x163   : > { %10284 = vmatprep.mubr.bf16.mxu0 %v13282_v22  ;;  %9721 = vmatpush3.bf16.msra.mxu1 %v11632_v49  ;;  %v13371_v49 = vcombine.low %v5591_v63, %v5598_v35  ;;  %v14881_v46 = vshll.u32 %v14880_v59, 16  ;;  %v14882_v63 = vld [vmem:[#allocation12_spill] sm:$0xff] }
 0x164   : > { %9722 = vmatprep.subr.bf16.mxu1 %v11634_v17  ;;  %v14883_v35 = vshrl.u32 %v14882_v63, 16 }
 0x165   : > { %v1658_v31 = vrot.slane %v14881_v46, 5 }
 0x167   : > { %9723 = vmatpush3.bf16.msra.mxu1 %v11634_v17  ;;  %v14878_v17 = vshll.u32 %v14877_v9, 16 }
 0x168   : > { %9724 = vmatprep.subr.bf16.mxu1 %v11636_v8 }
 0x169   : > { %9693 = vmatmul.mubr.bf16.gmra.mrb[8].mxu1 %v12273_v3  ;;  %v11643_v3 = vld [vmem:[#allocation2 + $0x78] sm:$0xff]   ;;  %v1648_v52 = vrot.slane %v14878_v17, 5 }
 0x16a   : > { %10285 = vmatmul.mubr.bf16.gmra.mrb[24].mxu0 %v13284_v27  ;;  %9696 = vmatprep.mubr.bf16.mxu1 %v14809_v13  ;;  %v13377_v13 = vld [vmem:[#allocation2 + $0x180] sm:$0xff]  }
 0x16b   : > { %10288 = vmatprep.mubr.bf16.mxu0 %v13294_v23  ;;  %9725 = vmatpush3.bf16.msra.mxu1 %v11636_v8 }
 0x16c   : > { %9726 = vmatprep.subr.bf16.mxu1 %v11638_v50 }
 0x16f   : > { %9727 = vmatpush3.bf16.msra.mxu1 %v11638_v50  ;;  %v11646_v50 = vld [vmem:[#allocation2 + $0x4a0] sm:$0xff]  }
 0x170   : > { %9728 = vmatprep.subr.bf16.mxu1 %v11640_v30 }
 0x171   : > { %9697 = vmatmul.mubr.bf16.gmra.mrb[12].mxu1 %v14813_v6  ;;  %v14874_v6 = vld [vmem:[#allocation32_spill] sm:$0xff] }
 0x172   : > { %10289 = vmatmul.mubr.bf16.gmra.mrb[28].mxu0 %v13371_v49  ;;  %9700 = vmatprep.mubr.bf16.mxu1 %v14815_v34  ;;  %v14875_v34 = vshrl.u32 %v14874_v6, 16  ;;  %v14876_v47 = vshll.u32 %v14874_v6, 16  ;;  %v14886_v6 = vld [vmem:[#allocation52_spill] sm:$0xff] }
 0x173   : > { %10308 = vmatprep.mubr.bf16.mxu0 %v13000_v53  ;;  %9729 = vmatpush3.bf16.msra.mxu1 %v11640_v30  ;;  %v11641_v53 = vld [vmem:[#allocation2 + $0x490] sm:$0xff]   ;;  %v1687_v30 = vrot.slane %v14883_v35, 4 }
 0x174   : > { %9730 = vmatprep.subr.bf16.mxu1 %v11643_v3  ;;  %v1639_v60 = vrot.slane %v14875_v34, 4  ;;  %v1642_v51 = vrot.slane %v14876_v47, 5  ;;  %v14887_v34 = vshll.u32 %v14886_v6, 16 }
 0x177   : > { %9731 = vmatpush3.bf16.msra.mxu1 %v11643_v3  ;;  %v14884_v3 = vld [vmem:[#allocation48_spill] sm:$0xff] }
 0x178   : > { %9764 = vmatprep.subr.bf16.mxu1 %v13377_v13 }
 0x179   : > { %9701 = vmatmul.mubr.bf16.gmra.mrb[16].mxu1 %v14824_v43  ;;  %v14879_v43 = vshrl.u32 %v14877_v9, 16  ;;  %v11648_v9 = vld [vmem:[#allocation2 + $0x4a8] sm:$0xff]  }
 0x17a   : > { %10309 = vmatmul.mubr.bf16.vlgmr.msra.gmra.mrb[0].mxu0 %v13040_v20  ;;  %9704 = vmatprep.mubr.bf16.mxu1 %v14825_v57  ;;  %v11644_v57 = vld [vmem:[#allocation2 + $0x498] sm:$0xff]  }
 0x17b   : > { %10341 = vmatpush3.bf16.msra.mxu0 %v13327_v61  ;;  %10312 = vmatprep.mubr.bf16.mxu0 %v13042_v37  ;;  %v1652_v42 = vrot.slane %v14879_v43, 4  ;;  %v1643_v61 = vor.u32 %v1642_v51, %v1639_v60  ;;  %v1696_v60 = vrot.slane %v14887_v34, 5  ;;  %v14889_v43 = vld [vmem:[#allocation53_spill] sm:$0xff] }
 0x17c   : > { %10342 = vmatprep.subr.bf16.mxu0 %v11639_v39 }
 0x17d   : > { %v1653_v26 = vor.u32 %v1652_v42, %v1648_v52  ;;  %v1644_v48 = vrot.slane %v1643_v61, 4  ;;  %v14890_v42 = vshrl.u32 %v14889_v43, 16 }
 0x17f   : > { %10343 = vmatpush3.bf16.msra.mxu0 %v11639_v39  ;;  %v1654_v8 = vrot.slane %v1653_v26, 4  ;;  %v14885_v39 = vshll.u32 %v14884_v3, 16  ;;  %v1711_v61 = vrot.slane %v14890_v42, 4  ;;  %v14891_v26 = vshll.u32 %v14889_v43, 16  ;;  %v13439_v43 = vld [vmem:[%s12145_s5 + $0xe8] sm:$0xf] }
 0x180   : > { %10344 = vmatprep.subr.bf16.mxu0 %v11641_v53  ;;  %14902 = vst [vmem:[#allocation31_spill] sm:$0xff] %v13439_v43 }
 0x181   : > { %9705 = vmatmul.mubr.bf16.gmra.mrb[20].mxu1 %v12371_v58  ;;  %v1690_v58 = vrot.slane %v14885_v39, 5  ;;  %v1659_v51 = vsel %vm13187_vm8, %v1654_v8, %v1658_v31  ;;  %v1714_v59 = vrot.slane %v14891_v26, 5  ;;  %v14895_v8 = vld [vmem:[#allocation56_spill] sm:$0xff]  ;;  %v14898_v39 = vld [vmem:[#allocation57_spill] sm:$0xff] }
 0x182   : > { %10313 = vmatmul.mubr.bf16.gmra.mrb[4].mxu0 %v13078_v54  ;;  %9708 = vmatprep.mubr.bf16.mxu1 %v14831_v24  ;;  %v14888_v24 = vshrl.u32 %v14886_v6, 16  ;;  %v14896_v31 = vshrl.u32 %v14895_v8, 16 }
 0x183   : > { %10316 = vmatprep.mubr.bf16.mxu0 %v13080_v32  ;;  %10345 = vmatpush3.bf16.msra.mxu0 %v11641_v53  ;;  %v1649_v53 = vsel %vm13187_vm8, %v1644_v48, %v1648_v52  ;;  %v1691_v17 = vor.u32 %v1690_v58, %v1687_v30  ;;  %v14897_v30 = vshll.u32 %v14895_v8, 16  ;;  %v14899_v58 = vshll.u32 %v14898_v39, 16 }
 0x184   : > { %10346 = vmatprep.subr.bf16.mxu0 %v11644_v57  ;;  %v1700_v47 = vrot.slane %v14888_v24, 4  ;;  %v1735_v35 = vrot.slane %v14896_v31, 4  ;;  %v11650_v24 = vld [vmem:[#allocation2 + $0x4b0] sm:$0xff]   ;;  %v8588_v26 = vcombine.low %v1649_v53, %v1659_v51  ;;  %v14909_v53 = vshll.u32 %v14908_v40, 16 }
 0x185   : > { %v1738_v3 = vrot.slane %v14897_v30, 5  ;;  %v13431_v6 = vrot.slane %v14899_v58, 5  ;;  %v1692_v8 = vrot.slane %v1691_v17, 4 }
 0x186   : > { %v1701_v52 = vor.u32 %v1700_v47, %v1696_v60  ;;  %v13436_v47 = vld [vmem:[%s12145_s5 + $0xe4] sm:$0xf]  ;;  %v13453_v51 = vrot.slane %v14909_v53, 5  ;;  %v14915_v53 = vld [vmem:[#allocation66_spill] sm:$0xff] }
 0x187   : > { %10347 = vmatpush3.bf16.msra.mxu0 %v11644_v57  ;;  %v14892_v57 = vld [vmem:[#allocation54_spill] sm:$0xff]  ;;  %14901 = vst [vmem:[#allocation29_spill] sm:$0xff] %v13436_v47  ;;  %v8579_v42 = vcombine.low %v13436_v47, %v13439_v43  ;;  %v1739_v58 = vor.u32 %v1738_v3, %v1735_v35 }
 0x188   : > { %10348 = vmatprep.subr.bf16.mxu0 %v11646_v50  ;;  %v14893_v46 = vshll.u32 %v14892_v57, 16  ;;  %v1702_v31 = vrot.slane %v1701_v52, 4 }
 0x189   : > { %9709 = vmatmul.mubr.bf16.gmra.mrb[24].mxu1 %v13129_v55  ;;  %v14894_v55 = vshrl.u32 %v14892_v57, 16  ;;  %v14903_v57 = vld [vmem:[#allocation55_spill] sm:$0xff] }
 0x18a   : > { %v13418_v63 = vrot.slane %v14893_v46, 5  ;;  %10317 = vmatmul.mubr.bf16.gmra.mrb[8].mxu0 %v13133_v56  ;;  %9712 = vmatprep.mubr.bf16.mxu1 %v13321_v14  ;;  %v14900_v14 = vshrl.u32 %v14898_v39, 16  ;;  %v14904_v46 = vshll.u32 %v14903_v57, 16  ;;  %v14905_v39 = vld [vmem:[#allocation60_spill] sm:$0xff]  ;;  %v1740_v57 = vrot.slane %v1739_v58, 4 }
 0x18b   : > { %v1724_v48 = vrot.slane %v14894_v55, 4  ;;  %10320 = vmatprep.mubr.bf16.mxu0 %v13135_v2  ;;  %10349 = vmatpush3.bf16.msra.mxu0 %v11646_v50  ;;  %v1715_v55 = vor.u32 %v1714_v59, %v1711_v61  ;;  %v14907_v38 = vshll.u32 %v14905_v39, 16  ;;  %v14910_v61 = vshrl.u32 %v14908_v40, 16  ;;  %v11652_v59 = vld [vmem:[#allocation2 + $0x4b8] sm:$0xff]  }
 0x18c   : > { %10350 = vmatprep.subr.bf16.mxu0 %v11648_v9  ;;  %v1748_v34 = vrot.slane %v14900_v14, 4  ;;  %v1706_v50 = vrot.slane %v14904_v46, 5  ;;  %v14906_v14 = vshrl.u32 %v14905_v39, 16  ;;  %v14913_v40 = vld [vmem:[#allocation62_spill] sm:$0xff] }
 0x18d   : > { %v1725_v30 = vor.u32 %v1724_v48, %v13418_v63  ;;  %v1762_v29 = vrot.slane %v14907_v38, 5  ;;  %v1772_v17 = vrot.slane %v14910_v61, 4  ;;  %v1716_v52 = vrot.slane %v1715_v55, 4 }
 0x18e   : > { %v1759_v15 = vrot.slane %v14906_v14, 4  ;;  %v1749_v12 = vor.u32 %v1748_v34, %v13431_v6  ;;  %v1697_v38 = vsel %vm13187_vm8, %v1692_v8, %v1696_v60  ;;  %v1707_v3 = vsel %vm13187_vm8, %v1702_v31, %v1706_v50  ;;  %v13472_v50 = vld [vmem:[#allocation2 + $0x5c0] sm:$0xff]  }
 0x18f   : > { %10351 = vmatpush3.bf16.msra.mxu0 %v11648_v9  ;;  %v14911_v9 = vld [vmem:[#allocation58_spill] sm:$0xff]  ;;  %v1726_v34 = vrot.slane %v1725_v30, 4  ;;  %v14914_v46 = vshll.u32 %v14913_v40, 16  ;;  %v1773_v14 = vor.u32 %v1772_v17, %v13453_v51  ;;  %v14917_v60 = vshll.u32 %v14915_v53, 16 }
 0x190   : > { %10352 = vmatprep.subr.bf16.mxu0 %v11650_v24  ;;  %v14912_v48 = vshll.u32 %v14911_v9, 16  ;;  %v1763_v55 = vor.u32 %v1762_v29, %v1759_v15  ;;  %v1750_v39 = vrot.slane %v1749_v12, 4  ;;  %v13474_v31 = vcombine.low %v1697_v38, %v1707_v3  ;;  %v14918_v29 = vld [vmem:[#allocation67_spill] sm:$0xff] }
 0x191   : > { %9713 = vmatmul.mubr.bf16.gmra.mrb[28].mxu1 %v8579_v42  ;;  %v1754_v42 = vrot.slane %v14914_v46, 5  ;;  %v1786_v8 = vrot.slane %v14917_v60, 5  ;;  %v1721_v30 = vsel %vm13187_vm8, %v1716_v52, %v13418_v63  ;;  %v14919_v15 = vshll.u32 %v14918_v29, 16 }
 0x192   : > { %v1730_v35 = vrot.slane %v14912_v48, 5  ;;  %10321 = vmatmul.mubr.bf16.gmra.mrb[12].mxu0 %v13193_v19  ;;  %9732 = vmatprep.mubr.bf16.mxu1 %v8588_v26  ;;  %v14916_v26 = vshrl.u32 %v14915_v53, 16  ;;  %v1745_v9 = vsel %vm13187_vm8, %v1740_v57, %v13431_v6  ;;  %v14921_v48 = vld [vmem:[#allocation65_spill] sm:$0xff]  ;;  %v14632_v40 = vshrl.u32 %v13125_v7, 16  ;;  %v14923_v57 = vld [vmem:[#allocation71_spill] sm:$0xff] }
 0x193   : > { %10324 = vmatprep.mubr.bf16.mxu0 %v13195_v41  ;;  %10353 = vmatpush3.bf16.msra.mxu0 %v11650_v24  ;;  %v13481_v12 = vrot.slane %v14919_v15, 5  ;;  %v14920_v24 = vshrl.u32 %v14918_v29, 16  ;;  %v14922_v38 = vshll.u32 %v14921_v48, 16  ;;  %v1764_v63 = vrot.slane %v1763_v55, 4  ;;  %v14926_v48 = vld [vmem:[#allocation74_spill] sm:$0xff] }
 0x194   : > { %v1783_v61 = vrot.slane %v14916_v26, 4  ;;  %10354 = vmatprep.subr.bf16.mxu0 %v11652_v59  ;;  %v1731_v17 = vsel %vm13187_vm8, %v1726_v34, %v1730_v35  ;;  %v14631_v52 = vshll.u32 %v13125_v7, 16  ;;  %v14636_v46 = vshll.u32 %v13122_v1, 16  ;;  %v11647_v26 = vld [vmem:[#allocation2 + $0x188] sm:$0xff]  }
 0x195   : > { %v1796_v58 = vrot.slane %v14920_v24, 4  ;;  %v1778_v3 = vrot.slane %v14922_v38, 5  ;;  %v14633_v53 = vshrl.u32 %v13122_v1, 16  ;;  %v1755_v35 = vsel %vm13187_vm8, %v1750_v39, %v1754_v42  ;;  %v14932_v1 = vld [vmem:[#allocation75_spill] sm:$0xff] }
 0x196   : > { %v1774_v34 = vrot.slane %v1773_v14, 4  ;;  %v1787_v6 = vor.u32 %v1786_v8, %v1783_v61  ;;  %v14924_v60 = vshrl.u32 %v14923_v57, 16  ;;  %v14925_v15 = vshll.u32 %v14923_v57, 16  ;;  %v13516_v61 = vld [vmem:[%s12145_s5 + $0xd4] sm:$0x3] }
 0x197   : > { %10355 = vmatpush3.bf16.msra.mxu0 %v11652_v59  ;;  %v1797_v55 = vor.u32 %v1796_v58, %v13481_v12  ;;  %v14927_v59 = vshll.u32 %v14926_v48, 16  ;;  %v14928_v42 = vshrl.u32 %v14926_v48, 16  ;;  %v13513_v14 = vcombine.low %v1721_v30, %v1731_v17  ;;  %14929 = vst [vmem:[#allocation77_spill] sm:$0xff] %v13516_v61  ;;  %v11649_v57 = vld [vmem:[#allocation2 + $0x190] sm:$0xff]  }
 0x198   : > { %v1807_v29 = vrot.slane %v14924_v60, 4  ;;  %10388 = vmatprep.subr.bf16.mxu0 %v13472_v50  ;;  %v1810_v24 = vrot.slane %v14925_v15, 5  ;;  %v5861_v58 = vrot.slane %v14632_v40, 5  ;;  %v5862_v60 = vrot.slane %v14631_v52, 6 }
 0x199   : > { %9733 = vmatmul.mubr.bf16.vlgmr.msra.gmra.mrb[0].mxu1 %v13220_v62  ;;  %v13507_v38 = vrot.slane %v14927_v59, 5  ;;  %v1820_v39 = vrot.slane %v14928_v42, 4  ;;  %v5866_v30 = vrot.slane %v14636_v46, 6  ;;  %v5870_v17 = vshrl.u32 %v13516_v61, 16  ;;  %v14930_v42 = vld [vmem:[#allocation73_spill] sm:$0xff] }
 0x19a   : > { %10325 = vmatmul.mubr.bf16.gmra.mrb[16].mxu0 %v13260_v25  ;;  %9765 = vmatpush3.bf16.msra.mxu1 %v13377_v13  ;;  %v5865_v13 = vrot.slane %v14633_v53, 5  ;;  %v13530_v15 = vcombine.low %v1745_v9, %v1755_v35  ;;  %v1769_v48 = vsel %vm13187_vm8, %v1764_v63, %v13453_v51  ;;  %v1779_v59 = vsel %vm13187_vm8, %v1774_v34, %v1778_v3 }
 0x19b   : > { %9736 = vmatprep.mubr.bf16.mxu1 %v13474_v31  ;;  %10328 = vmatprep.mubr.bf16.mxu0 %v13265_v4  ;;  %v14931_v52 = vshll.u32 %v14930_v42, 16  ;;  %v1788_v8 = vrot.slane %v1787_v6, 4  ;;  %v1798_v53 = vrot.slane %v1797_v55, 4  ;;  %v1811_v7 = vor.u32 %v1810_v24, %v1807_v29  ;;  %v11651_v24 = vld [vmem:[#allocation2 + $0x198] sm:$0xff]  }
 0x19c   : > { %9766 = vmatprep.subr.bf16.mxu1 %v11647_v26  ;;  %v1821_v46 = vor.u32 %v1820_v39, %v13507_v38  ;;  %v14933_v43 = vshrl.u32 %v14932_v1, 16  ;;  %v14934_v35 = vshll.u32 %v14932_v1, 16  ;;  %v14936_v51 = vshll.u32 %v14935_v21, 16  ;;  %v14939_v39 = vld [vmem:[#allocation78_spill] sm:$0xff] }
 0x19d   : > { %v1802_v40 = vrot.slane %v14931_v52, 5  ;;  %v14937_v3 = vshrl.u32 %v14935_v21, 16  ;;  %v5863_v52 = vor.u32 %v5862_v60, %v5861_v58  ;;  %v5867_v6 = vor.u32 %v5866_v30, %v5865_v13 }
 0x19e   : > { %9767 = vmatpush3.bf16.msra.mxu1 %v11647_v26  ;;  %v1831_v9 = vrot.slane %v14933_v43, 4  ;;  %v1834_v47 = vrot.slane %v14934_v35, 5  ;;  %v13546_v63 = vrot.slane %v14936_v51, 5  ;;  %v5872_v29 = vrot.slane %v5870_v17, 5 }
 0x19f   : > { %v1844_v34 = vrot.slane %v14937_v3, 4  ;;  %9768 = vmatprep.subr.bf16.mxu1 %v11649_v57  ;;  %v14938_v55 = vshll.u32 %v13516_v61, 16  ;;  %v13553_v43 = vcombine.low %v1769_v48, %v1779_v59  ;;  %v1793_v1 = vsel %vm13187_vm8, %v1788_v8, %v13481_v12  ;;  %v14941_v59 = vld [vmem:[#allocation82_spill] sm:$0xff] }
 0x1a0   : > { %v14940_v42 = vshll.u32 %v14939_v39, 16  ;;  %v1803_v58 = vsel %vm13187_vm8, %v1798_v53, %v1802_v40  ;;  %v1812_v60 = vrot.slane %v1811_v7, 4  ;;  %v1835_v13 = vor.u32 %v1834_v47, %v1831_v9  ;;  %v14944_v39 = vld [vmem:[#allocation84_spill] sm:$0xff] }
 0x1a1   : > { %v5873_v26 = vrot.slane %v14938_v55, 6  ;;  %9737 = vmatmul.mubr.bf16.gmra.mrb[4].mxu1 %v13513_v14  ;;  %v1845_v30 = vor.u32 %v1844_v34, %v13546_v63  ;;  %v1822_v17 = vrot.slane %v1821_v46, 4  ;;  %v5864_v48 = vrot.slane %v5863_v52, 4  ;;  %v11653_v9 = vld [vmem:[#allocation2 + $0x1a0] sm:$0xff]  }
 0x1a2   : > { %v1826_v21 = vrot.slane %v14940_v42, 5  ;;  %10329 = vmatmul.mubr.bf16.gmra.mrb[20].mxu0 %v13282_v22  ;;  %9740 = vmatprep.mubr.bf16.mxu1 %v13530_v15  ;;  %v5869_v12 = vrot.slane %v5867_v6, 4  ;;  %v14942_v35 = vshrl.u32 %v14941_v59, 16  ;;  %v14943_v3 = vshll.u32 %v14941_v59, 16 }
 0x1a3   : > { %10332 = vmatprep.mubr.bf16.mxu0 %v13284_v27  ;;  %9769 = vmatpush3.bf16.msra.mxu1 %v11649_v57  ;;  %v5874_v8 = vor.u32 %v5873_v26, %v5872_v29  ;;  %v14945_v40 = vshll.u32 %v14944_v39, 16  ;;  %v14946_v47 = vshrl.u32 %v14944_v39, 16  ;;  %v14947_v57 = vld [vmem:[#allocation85_spill] sm:$0xff]  ;;  %v14950_v26 = vld [vmem:[#allocation86_spill] sm:$0xff]  ;;  %v13586_v61 = vcombine.low %v1793_v1, %v1803_v58  ;;  %v14953_v39 = vld [vmem:[#allocation80_spill] sm:$0xff] }
 0x1a4   : > { %9770 = vmatprep.subr.bf16.mxu1 %v11651_v24  ;;  %v1855_v51 = vrot.slane %v14942_v35, 4  ;;  %v1858_v55 = vrot.slane %v14943_v3, 5  ;;  %v14948_v46 = vshrl.u32 %v14947_v57, 16  ;;  %v14949_v52 = vshll.u32 %v14947_v57, 16 }
 0x1a5   : > { %v13572_v7 = vrot.slane %v14945_v40, 5  ;;  %v1868_v53 = vrot.slane %v14946_v47, 4  ;;  %v14951_v42 = vshll.u32 %v14950_v26, 16  ;;  %v14952_v59 = vshrl.u32 %v14950_v26, 16 }
 0x1a6   : > { %v1879_v34 = vrot.slane %v14948_v46, 4  ;;  %v1882_v29 = vrot.slane %v14949_v52, 5  ;;  %v1836_v40 = vrot.slane %v1835_v13, 4  ;;  %v1846_v11 = vrot.slane %v1845_v30, 4  ;;  %v11655_v30 = vld [vmem:[#allocation2 + $0x1a8] sm:$0xff]  }
 0x1a7   : > { %v13582_v35 = vrot.slane %v14951_v42, 5  ;;  %v1892_v3 = vrot.slane %v14952_v59, 4  ;;  %v14954_v47 = vshll.u32 %v14953_v39, 16  ;;  %v1817_v46 = vsel %vm13187_vm8, %v1812_v60, %v13507_v38  ;;  %9771 = vmatpush3.bf16.msra.mxu1 %v11651_v24 }
 0x1a8   : > { %v1827_v57 = vsel %vm13187_vm8, %v1822_v17, %v1826_v21  ;;  %v5868_v52 = vsel %vm12419_vm5, %v5864_v48, %v5867_v6  ;;  %v5875_v1 = vsel %vm12419_vm5, %v5869_v12, %v5874_v8  ;;  %v1859_v58 = vor.u32 %v1858_v55, %v1855_v51  ;;  %9772 = vmatprep.subr.bf16.mxu1 %v11653_v9  ;;  %v14956_v12 = vld [vmem:[#allocation88_spill] sm:$0xff] }
 0x1a9   : > { %v1850_v10 = vrot.slane %v14954_v47, 5  ;;  %v1869_v13 = vor.u32 %v1868_v53, %v13572_v7  ;;  %9741 = vmatmul.mubr.bf16.gmra.mrb[8].mxu1 %v13553_v43  ;;  %v1883_v26 = vor.u32 %v1882_v29, %v1879_v34  ;;  %v1893_v38 = vor.u32 %v1892_v3, %v13582_v35  ;;  %v14959_v29 = vld [vmem:[#allocation89_spill] sm:$0xff] }
 0x1aa   : > { %10333 = vmatmul.mubr.bf16.gmra.mrb[24].mxu0 %v13294_v23  ;;  %9744 = vmatprep.mubr.bf16.mxu1 %v13586_v61  ;;  %v13604_v24 = vcombine.low %v1817_v46, %v1827_v57  ;;  %v1841_v6 = vsel %vm13187_vm8, %v1836_v40, %v13546_v63  ;;  %v13612_v60 = vcombine.low %v5868_v52, %v5875_v1  ;;  %v14955_v17 = vshll.u32 %v12855_v18, 16  ;;  %v11657_v18 = vld [vmem:[#allocation2 + $0x1b0] sm:$0xff]  }
 0x1ab   : > { %v1851_v21 = vsel %vm13187_vm8, %v1846_v11, %v1850_v10  ;;  %10336 = vmatprep.mubr.bf16.mxu0 %v13371_v49  ;;  %9773 = vmatpush3.bf16.msra.mxu1 %v11653_v9  ;;  %v14957_v8 = vshrl.u32 %v14956_v12, 16  ;;  %v14958_v55 = vshll.u32 %v14956_v12, 16  ;;  %v1860_v34 = vrot.slane %v1859_v58, 4  ;;  %v14964_v46 = vld [vmem:[#allocation90_spill] sm:$0xff] }
 0x1ac   : > { %v1874_v48 = vrot.slane %v14955_v17, 5  ;;  %v1870_v63 = vrot.slane %v1869_v13, 4  ;;  %v14960_v42 = vshll.u32 %v14959_v29, 16  ;;  %v14961_v11 = vshrl.u32 %v14959_v29, 16  ;;  %9774 = vmatprep.subr.bf16.mxu1 %v11655_v30  ;;  %v14967_v13 = vld [vmem:[#allocation91_spill] sm:$0xff] }
 0x1ad   : > { %v1903_v51 = vrot.slane %v14957_v8, 4  ;;  %v1906_v53 = vrot.slane %v14958_v55, 5  ;;  %v13626_v3 = vcombine.low %v1841_v6, %v1851_v21  ;;  %v1884_v9 = vrot.slane %v1883_v26, 4  ;;  %v13641_v21 = vld [vmem:[%s12145_s5 + $0x10] sm:$0xf] }
 0x1ae   : > { %v13622_v10 = vrot.slane %v14960_v42, 5  ;;  %v1916_v59 = vrot.slane %v14961_v11, 4  ;;  %v1894_v40 = vrot.slane %v1893_v38, 4  ;;  %v14963_v39 = vshll.u32 %v12355_v45, 16  ;;  %14970 = vst [vmem:[#allocation79_spill] sm:$0xff] %v13641_v21  ;;  %v11659_v42 = vld [vmem:[#allocation2 + $0x1b8] sm:$0xff]  }
 0x1af   : > { %14962 = vst [vmem:[#allocation34_spill] sm:$0xff] %v13626_v3  ;;  %v14965_v57 = vshrl.u32 %v14964_v46, 16  ;;  %v14966_v1 = vshll.u32 %v14964_v46, 16  ;;  %v14968_v17 = vshll.u32 %v14967_v13, 16  ;;  %v14969_v8 = vshrl.u32 %v14967_v13, 16  ;;  %9775 = vmatpush3.bf16.msra.mxu1 %v11655_v30  ;;  %v14974_v46 = vld [vmem:[#allocation92_spill] sm:$0xff] }
 0x1b0   : > { %v1898_v47 = vrot.slane %v14963_v39, 5  ;;  %v6704_v26 = vrot.slane %v13641_v21, 6  ;;  %v1907_v38 = vor.u32 %v1906_v53, %v1903_v51  ;;  %v1865_v45 = vsel %vm13187_vm8, %v1860_v34, %v13572_v7  ;;  %9776 = vmatprep.subr.bf16.mxu1 %v11657_v18  ;;  %v13651_v11 = vld [vmem:[%s12145_s5 + $0xc] sm:$0xf] }
 0x1b1   : > { %v1927_v52 = vrot.slane %v14965_v57, 4  ;;  %v1930_v58 = vrot.slane %v14966_v1, 5  ;;  %v13636_v12 = vrot.slane %v14968_v17, 5  ;;  %v1940_v6 = vrot.slane %v14969_v8, 4  ;;  %14971 = vst [vmem:[#allocation81_spill] sm:$0xff] %v13651_v11  ;;  %9745 = vmatmul.mubr.bf16.gmra.mrb[12].mxu1 %v13604_v24  ;;  %v14976_v1 = vld [vmem:[#allocation26_spill] sm:$0xff] }
 0x1b2   : > { %v1875_v55 = vsel %vm13187_vm8, %v1870_v63, %v1874_v48  ;;  %v1917_v29 = vor.u32 %v1916_v59, %v13622_v10  ;;  %v8789_v39 = vrot.slane %v13651_v11, 10  ;;  %v1889_v30 = vsel %vm13187_vm8, %v1884_v9, %v13582_v35  ;;  %10337 = vmatmul.mubr.bf16.gmra.mrb[28].mxu0 %v13612_v60  ;;  %9748 = vmatprep.mubr.bf16.mxu1 %v13626_v3  ;;  %v14972_v35 = vld [vmem:[#allocation30_spill] sm:$0xff]  ;;  %v13674_v17 = vld [vmem:[#allocation2 + $0x2c0] sm:$0xff]  }
 0x1b3   : > { %v1899_v7 = vsel %vm13187_vm8, %v1894_v40, %v1898_v47  ;;  %v1931_v48 = vor.u32 %v1930_v58, %v1927_v52  ;;  %v1941_v51 = vor.u32 %v1940_v6, %v13636_v12  ;;  %v6706_v53 = vrot.slane %v6704_v26, 4  ;;  %10356 = vmatprep.mubr.bf16.mxu0 %v13040_v20  ;;  %9777 = vmatpush3.bf16.msra.mxu1 %v11657_v18  ;;  %v14981_v18 = vld [vmem:[#allocation69_spill] sm:$0xff] }
 0x1b4   : > { %v13664_v34 = vcombine.low %v1865_v45, %v1875_v55  ;;  %v1908_v63 = vrot.slane %v1907_v38, 4  ;;  %v14973_v59 = vshll.u32 %v14972_v35, 16  ;;  %v13668_v40 = vcombine.low %v1889_v30, %v1899_v7  ;;  %9778 = vmatprep.subr.bf16.mxu1 %v11659_v42  ;;  %v13687_v30 = vld [vmem:[%s12145_s5 + $0x14] sm:$0x3] }
 0x1b5   : > { %v1918_v47 = vrot.slane %v1917_v29, 4  ;;  %v14975_v57 = vshll.u32 %v14974_v46, 16  ;;  %v14977_v58 = vshrl.u32 %v14976_v1, 16  ;;  %v14980_v8 = vshll.u32 %v14976_v1, 16  ;;  %v14984_v46 = vld [vmem:[#allocation27_spill] sm:$0xff] }
 0x1b6   : > { %v1922_v9 = vrot.slane %v14973_v59, 5  ;;  %v14982_v38 = vshll.u32 %v14981_v18, 16  ;;  %v14983_v55 = vshrl.u32 %v14981_v18, 16  ;;  %v6707_v7 = vrot.slane %v13687_v30, 6  ;;  %v14987_v1 = vld [vmem:[#allocation59_spill] sm:$0xff] }
 0x1b7   : > { %v1946_v52 = vrot.slane %v14975_v57, 5  ;;  %v1951_v13 = vrot.slane %v14977_v58, 4  ;;  %v1954_v6 = vrot.slane %v14980_v8, 5  ;;  %v1932_v35 = vrot.slane %v1931_v48, 4  ;;  %9779 = vmatpush3.bf16.msra.mxu1 %v11659_v42 }
 0x1b8   : > { %v1960_v45 = vrot.slane %v14982_v38, 5  ;;  %v1964_v29 = vrot.slane %v14983_v55, 4  ;;  %v1942_v59 = vrot.slane %v1941_v51, 4  ;;  %v14985_v57 = vshrl.u32 %v14984_v46, 16  ;;  %v11656_v51 = vld [vmem:[#allocation2 + $0x5c8] sm:$0xff]   ;;  %9812 = vmatprep.subr.bf16.mxu1 %v13674_v17 }
 0x1b9   : > { %v14986_v11 = vshll.u32 %v14984_v46, 16  ;;  %v14988_v8 = vshll.u32 %v14987_v1, 16  ;;  %v14989_v38 = vshrl.u32 %v14987_v1, 16  ;;  %v6705_v18 = vsel %vm13676_vm11, %v8789_v39, %v6704_v26  ;;  %9749 = vmatmul.mubr.bf16.gmra.mrb[16].mxu1 %v13664_v34 }
 0x1ba   : > { %v1975_v58 = vrot.slane %v14985_v57, 4  ;;  %v6708_v48 = vsel %vm13676_vm11, %v6706_v53, %v6707_v7  ;;  %v1923_v42 = vsel %vm13187_vm8, %v1918_v47, %v1922_v9  ;;  %v1955_v46 = vor.u32 %v1954_v6, %v1951_v13  ;;  %10357 = vmatmul.mubr.bf16.vlgmr.msra.gmra.mrb[0].mxu0 %v13042_v37  ;;  %9752 = vmatprep.mubr.bf16.mxu1 %v13668_v40  ;;  %v11658_v9 = vld [vmem:[#allocation2 + $0x5d0] sm:$0xff]  }
 0x1bb   : > { %v1978_v21 = vrot.slane %v14986_v11, 5  ;;  %v1984_v3 = vrot.slane %v14988_v8, 5  ;;  %v1988_v28 = vrot.slane %v14989_v38, 4  ;;  %v13703_v55 = vcombine.low %v6705_v18, %v6708_v48  ;;  %10389 = vmatpush3.bf16.msra.mxu0 %v13472_v50  ;;  %10360 = vmatprep.mubr.bf16.mxu0 %v13078_v54  ;;  %v14996_v18 = vld [vmem:[#allocation64_spill] sm:$0xff] }
 0x1bc   : > { %v1913_v11 = vsel %vm13187_vm8, %v1908_v63, %v13622_v10  ;;  %v1965_v57 = vor.u32 %v1964_v29, %v1960_v45  ;;  %v1937_v26 = vsel %vm13187_vm8, %v1932_v35, %v13636_v12  ;;  %v1947_v39 = vsel %vm13187_vm8, %v1942_v59, %v1946_v52  ;;  %10390 = vmatprep.subr.bf16.mxu0 %v11656_v51  ;;  %v14990_v29 = vld [vmem:[#allocation70_spill] sm:$0xff] }
 0x1bd   : > { %v1979_v10 = vor.u32 %v1978_v21, %v1975_v58  ;;  %v1989_v53 = vor.u32 %v1988_v28, %v1984_v3  ;;  %v13720_v63 = vcombine.low %v1913_v11, %v1923_v42  ;;  %v13722_v47 = vcombine.low %v1937_v26, %v1947_v39  ;;  %v11660_v42 = vld [vmem:[#allocation2 + $0x5d8] sm:$0xff]  }
 0x1be   : > { %v1956_v13 = vrot.slane %v1955_v46, 4  ;;  %v1966_v6 = vrot.slane %v1965_v57, 4  ;;  %v14991_v7 = vshll.u32 %v14990_v29, 16  ;;  %v14992_v35 = vshrl.u32 %v13216_v5, 16 }
 0x1bf   : > { %v14993_v50 = vshll.u32 %v13216_v5, 16  ;;  %v14994_v21 = vshll.u32 %v13231_v44, 16  ;;  %v14995_v58 = vshrl.u32 %v13231_v44, 16  ;;  %10391 = vmatpush3.bf16.msra.mxu0 %v11656_v51  ;;  %v1980_v8 = vrot.slane %v1979_v10, 4 }
 0x1c0   : > { %v1970_v12 = vrot.slane %v14991_v7, 5  ;;  %v1999_v52 = vrot.slane %v14992_v35, 4  ;;  %v1990_v38 = vrot.slane %v1989_v53, 4  ;;  %v14997_v48 = vshll.u32 %v14996_v18, 16  ;;  %10392 = vmatprep.subr.bf16.mxu0 %v11658_v9  ;;  %v11668_v35 = vld [vmem:[#allocation2 + $0x5f8] sm:$0xff]  }
 0x1c1   : > { %v2002_v59 = vrot.slane %v14993_v50, 5  ;;  %v2008_v28 = vrot.slane %v14994_v21, 5  ;;  %v2012_v1 = vrot.slane %v14995_v58, 4  ;;  %9753 = vmatmul.mubr.bf16.gmra.mrb[20].mxu1 %v13720_v63  ;;  %v1961_v5 = vsel %vm13187_vm8, %v1956_v13, %v1960_v45  ;;  %v11662_v45 = vld [vmem:[#allocation2 + $0x5e0] sm:$0xff]   ;;  %v11663_v50 = vld [vmem:[#allocation2 + $0x2c8] sm:$0xff]  }
 0x1c2   : > { %v1994_v11 = vrot.slane %v14997_v48, 5  ;;  %10361 = vmatmul.mubr.bf16.gmra.mrb[4].mxu0 %v13080_v32  ;;  %9756 = vmatprep.mubr.bf16.mxu1 %v13722_v47  ;;  %v1971_v44 = vsel %vm13187_vm8, %v1966_v6, %v1970_v12  ;;  %v1985_v57 = vsel %vm13187_vm8, %v1980_v8, %v1984_v3  ;;  %v14998_v6 = vshll.u32 %v13251_v16, 16  ;;  %v11666_v16 = vld [vmem:[#allocation2 + $0x5f0] sm:$0xff]  }
 0x1c3   : > { %v2003_v51 = vor.u32 %v2002_v59, %v1999_v52  ;;  %v2013_v46 = vor.u32 %v2012_v1, %v2008_v28  ;;  %10364 = vmatprep.mubr.bf16.mxu0 %v13133_v56  ;;  %10393 = vmatpush3.bf16.msra.mxu0 %v11658_v9  ;;  %v13748_v39 = vcombine.low %v1961_v5, %v1971_v44  ;;  %v11664_v9 = vld [vmem:[#allocation2 + $0x5e8] sm:$0xff]   ;;  %v13768_v52 = vld [vmem:[#allocation2 + $0x100] sm:$0xff]   ;;  %v2915_v59 = vshrl.u32 %v13317_v36, 16 }
 0x1c4   : > { %v1995_v26 = vsel %vm13187_vm8, %v1990_v38, %v1994_v11  ;;  %10394 = vmatprep.subr.bf16.mxu0 %v11660_v42  ;;  %v2018_v29 = vrot.slane %v14998_v6, 5  ;;  %v2918_v21 = vshll.u32 %v13317_v36, 16  ;;  %v14661_v58 = vshrl.u32 %v13314_v33, 16  ;;  %v13781_v1 = vld [vmem:[%s12145_s5 + $0xe0] sm:$0x3] }
 0x1c5   : > { %v13750_v10 = vcombine.low %v1985_v57, %v1995_v26  ;;  %v2004_v53 = vrot.slane %v2003_v51, 4  ;;  %v2014_v13 = vrot.slane %v2013_v46, 4  ;;  %v14660_v8 = vshll.u32 %v13781_v1, 16  ;;  %v11669_v57 = vld [vmem:[#allocation2 + $0x2e0] sm:$0xff]  }
 0x1c6   : > { %v6139_v38 = vrot.slane %v2918_v21, 6  ;;  %v6142_v18 = vrot.slane %v14661_v58, 5  ;;  %v6147_v11 = vshrl.u32 %v13781_v1, 16  ;;  %v11710_v36 = vld [vmem:[#allocation2 + $0x3a0] sm:$0xff]  }
 0x1c7   : > { %10395 = vmatpush3.bf16.msra.mxu0 %v11660_v42  ;;  %v2009_v3 = vsel %vm13187_vm8, %v2004_v53, %v2008_v28  ;;  %v2019_v7 = vsel %vm13187_vm8, %v2014_v13, %v2018_v29  ;;  %v2924_v28 = vshll.u32 %v13314_v33, 16  ;;  %v11667_v42 = vld [vmem:[#allocation2 + $0x2d8] sm:$0xff]   ;;  %v6150_v46 = vrot.slane %v14660_v8, 6  ;;  %v11671_v13 = vld [vmem:[#allocation2 + $0x2e8] sm:$0xff]  }
 0x1c8   : > { %10396 = vmatprep.subr.bf16.mxu0 %v11662_v45  ;;  %v13762_v12 = vcombine.low %v2009_v3, %v2019_v7  ;;  %v6149_v51 = vrot.slane %v6147_v11, 5  ;;  %v11673_v3 = vld [vmem:[#allocation2 + $0x2f0] sm:$0xff]   ;;  %v11836_v8 = vld [vmem:[%s12145_s5 + $0x98] sm:$0x3] }
 0x1c9   : > { %9757 = vmatmul.mubr.bf16.gmra.mrb[24].mxu1 %v13748_v39  ;;  %v6143_v48 = vrot.slane %v2924_v28, 6 }
 0x1ca   : > { %10365 = vmatmul.mubr.bf16.gmra.mrb[8].mxu0 %v13135_v2  ;;  %9760 = vmatprep.mubr.bf16.mxu1 %v13750_v10  ;;  %v6151_v53 = vor.u32 %v6150_v46, %v6149_v51  ;;  %v11676_v46 = vld [vmem:[#allocation2 + $0x118] sm:$0xff]  }
 0x1cb   : > { %10368 = vmatprep.mubr.bf16.mxu0 %v13193_v19  ;;  %10397 = vmatpush3.bf16.msra.mxu0 %v11662_v45  ;;  %v6144_v44 = vor.u32 %v6143_v48, %v6142_v18 }
 0x1cc   : > { %10398 = vmatprep.subr.bf16.mxu0 %v11664_v9 }
 0x1cd   : > { %v6146_v45 = vrot.slane %v6144_v44, 4 }
 0x1cf   : > { %10399 = vmatpush3.bf16.msra.mxu0 %v11664_v9  ;;  %v6152_v9 = vsel %vm12419_vm5, %v6146_v45, %v6151_v53  ;;  %v15007_v53 = vld [vmem:[#allocation72_spill] sm:$0xff] }
 0x1d0   : > { %10400 = vmatprep.subr.bf16.mxu0 %v11666_v16 }
 0x1d1   : > { %9761 = vmatmul.mubr.bf16.gmra.mrb[28].mxu1 %v13762_v12 }
 0x1d2   : > { %10369 = vmatmul.mubr.bf16.gmra.mrb[12].mxu0 %v13195_v41  ;;  %9780 = vmatprep.mubr.bf16.mxu1 %v13220_v62  ;;  %v11665_v62 = vld [vmem:[#allocation2 + $0x2d0] sm:$0xff]  }
 0x1d3   : > { %10372 = vmatprep.mubr.bf16.mxu0 %v13260_v25  ;;  %10401 = vmatpush3.bf16.msra.mxu0 %v11666_v16  ;;  %v11675_v16 = vld [vmem:[#allocation2 + $0x2f8] sm:$0xff]  }
 0x1d4   : > { %10402 = vmatprep.subr.bf16.mxu0 %v11668_v35 }
 0x1d7   : > { %10403 = vmatpush3.bf16.msra.mxu0 %v11668_v35  ;;  %v15000_v35 = vld [vmem:[#allocation34_spill] sm:$0xff] }
 0x1d8   : > { %10436 = vmatprep.subr.bf16.mxu0 %v13768_v52 }
 0x1d9   : > { %9781 = vmatmul.mubr.bf16.vlgmr.msra.gmra.mrb[0].mxu1 %v13474_v31 }
 0x1da   : > { %10373 = vmatmul.mubr.bf16.gmra.mrb[16].mxu0 %v13265_v4  ;;  %9813 = vmatpush3.bf16.msra.mxu1 %v13674_v17  ;;  %v6138_v17 = vrot.slane %v2915_v59, 5 }
 0x1db   : > { %9784 = vmatprep.mubr.bf16.mxu1 %v13513_v14  ;;  %10376 = vmatprep.mubr.bf16.mxu0 %v13282_v22 }
 0x1dc   : > { %9814 = vmatprep.subr.bf16.mxu1 %v11663_v50  ;;  %v6140_v5 = vor.u32 %v6139_v38, %v6138_v17  ;;  %v11674_v17 = vld [vmem:[#allocation2 + $0x110] sm:$0xff]   ;;  %v15001_v38 = vld [vmem:[#allocation63_spill] sm:$0xff] }
 0x1dd   : > { %v15003_v48 = vshll.u32 %v15001_v38, 16 }
 0x1de   : > { %9815 = vmatpush3.bf16.msra.mxu1 %v11663_v50  ;;  %v6141_v26 = vrot.slane %v6140_v5, 4  ;;  %v11677_v50 = vld [vmem:[#allocation2 + $0x400] sm:$0xff]  }
 0x1df   : > { %9816 = vmatprep.subr.bf16.mxu1 %v11665_v62  ;;  %v2348_v11 = vrot.slane %v15003_v48, 5  ;;  %v13858_v48 = vld [vmem:[%s12145_s5 + $0xec] sm:$0x3] }
 0x1e0   : > { %v6145_v29 = vsel %vm12419_vm5, %v6141_v26, %v6144_v44 }
 0x1e1   : > { %9785 = vmatmul.mubr.bf16.gmra.mrb[4].mxu1 %v13530_v15  ;;  %v13807_v7 = vcombine.low %v6145_v29, %v6152_v9  ;;  %v11680_v9 = vld [vmem:[#allocation2 + $0x128] sm:$0xff]  }
 0x1e2   : > { %10377 = vmatmul.mubr.bf16.gmra.mrb[20].mxu0 %v13284_v27  ;;  %9788 = vmatprep.mubr.bf16.mxu1 %v13553_v43 }
 0x1e3   : > { %10380 = vmatprep.mubr.bf16.mxu0 %v13294_v23  ;;  %9817 = vmatpush3.bf16.msra.mxu1 %v11665_v62  ;;  %v11672_v62 = vld [vmem:[#allocation2 + $0x108] sm:$0xff]  }
 0x1e4   : > { %9818 = vmatprep.subr.bf16.mxu1 %v11667_v42 }
 0x1e7   : > { %9819 = vmatpush3.bf16.msra.mxu1 %v11667_v42  ;;  %v15004_v42 = vld [vmem:[#allocation68_spill] sm:$0xff] }
 0x1e8   : > { %9820 = vmatprep.subr.bf16.mxu1 %v11669_v57  ;;  %v15005_v5 = vshll.u32 %v15004_v42, 16  ;;  %v15006_v51 = vshrl.u32 %v15004_v42, 16 }
 0x1e9   : > { %9789 = vmatmul.mubr.bf16.gmra.mrb[8].mxu1 %v13586_v61 }
 0x1ea   : > { %10381 = vmatmul.mubr.bf16.gmra.mrb[24].mxu0 %v13371_v49  ;;  %9792 = vmatprep.mubr.bf16.mxu1 %v13604_v24  ;;  %v2354_v44 = vrot.slane %v15005_v5, 5  ;;  %v6424_v5 = vshrl.u32 %v13858_v48, 16 }
 0x1eb   : > { %10384 = vmatprep.mubr.bf16.mxu0 %v13612_v60  ;;  %9821 = vmatpush3.bf16.msra.mxu1 %v11669_v57  ;;  %v11678_v57 = vld [vmem:[#allocation2 + $0x120] sm:$0xff]  }
 0x1ec   : > { %9822 = vmatprep.subr.bf16.mxu1 %v11671_v13 }
 0x1ef   : > { %9823 = vmatpush3.bf16.msra.mxu1 %v11671_v13  ;;  %v15008_v13 = vshll.u32 %v15007_v53, 16 }
 0x1f0   : > { %9824 = vmatprep.subr.bf16.mxu1 %v11673_v3 }
 0x1f1   : > { %9793 = vmatmul.mubr.bf16.gmra.mrb[12].mxu1 %v15000_v35  ;;  %v2364_v29 = vrot.slane %v15008_v13, 5  ;;  %v13881_v13 = vld [vmem:[%s12145_s5] sm:$0xf] }
 0x1f2   : > { %10385 = vmatmul.mubr.bf16.gmra.mrb[28].mxu0 %v13807_v7  ;;  %9796 = vmatprep.mubr.bf16.mxu1 %v13664_v34 }
 0x1f3   : > { %10404 = vmatprep.mubr.bf16.mxu0 %v13042_v37  ;;  %9825 = vmatpush3.bf16.msra.mxu1 %v11673_v3  ;;  %v15002_v37 = vshrl.u32 %v15001_v38, 16  ;;  %v11682_v3 = vld [vmem:[#allocation2 + $0x130] sm:$0xff]   ;;  %v15010_v38 = vld [vmem:[#allocation31_spill] sm:$0xff] }
 0x1f4   : > { %9826 = vmatprep.subr.bf16.mxu1 %v11675_v16 }
 0x1f5   : > { %v2345_v18 = vrot.slane %v15002_v37, 4  ;;  %v14657_v37 = vshll.u32 %v15010_v38, 16 }
 0x1f7   : > { %9827 = vmatpush3.bf16.msra.mxu1 %v11675_v16  ;;  %v6420_v42 = vrot.slane %v14657_v37, 6 }
 0x1f8   : > { %9860 = vmatprep.subr.bf16.mxu1 %v11677_v50 }
 0x1f9   : > { %9797 = vmatmul.mubr.bf16.gmra.mrb[16].mxu1 %v13668_v40 }
 0x1fa   : > { %10405 = vmatmul.mubr.bf16.vlgmr.msra.gmra.mrb[0].mxu0 %v13078_v54  ;;  %9800 = vmatprep.mubr.bf16.mxu1 %v13720_v63  ;;  %v2358_v54 = vrot.slane %v15006_v51, 4 }
 0x1fb   : > { %10437 = vmatpush3.bf16.msra.mxu0 %v13768_v52  ;;  %10408 = vmatprep.mubr.bf16.mxu0 %v13080_v32  ;;  %v2349_v32 = vor.u32 %v2348_v11, %v2345_v18  ;;  %v14656_v18 = vshrl.u32 %v15010_v38, 16 }
 0x1fc   : > { %10438 = vmatprep.subr.bf16.mxu0 %v11672_v62  ;;  %v2359_v52 = vor.u32 %v2358_v54, %v2354_v44 }
 0x1fd   : > { %v2350_v26 = vrot.slane %v2349_v32, 4  ;;  %v6419_v11 = vrot.slane %v14656_v18, 5  ;;  %v11822_v18 = vld [vmem:[%s12145_s5 + $0x5c] sm:$0x3] }
 0x1fe   : > { %v2360_v45 = vrot.slane %v2359_v52, 4  ;;  %v13877_v52 = vld [vmem:[%s12145_s5 + $0x4] sm:$0xf] }
 0x1ff   : > { %10439 = vmatpush3.bf16.msra.mxu0 %v11672_v62  ;;  %v11684_v62 = vld [vmem:[#allocation2 + $0x138] sm:$0xff]   ;;  %v6421_v54 = vor.u32 %v6420_v42, %v6419_v11 }
 0x200   : > { %10440 = vmatprep.subr.bf16.mxu0 %v11674_v17  ;;  %v11805_v42 = vld [vmem:[%s12145_s5 + $0x18] sm:$0xf] }
 0x201   : > { %9801 = vmatmul.mubr.bf16.gmra.mrb[20].mxu1 %v13722_v47 }
 0x202   : > { %10409 = vmatmul.mubr.bf16.gmra.mrb[4].mxu0 %v13133_v56  ;;  %9804 = vmatprep.mubr.bf16.mxu1 %v13748_v39  ;;  %v2355_v56 = vsel %vm13187_vm8, %v2350_v26, %v2354_v44  ;;  %v11683_v44 = vld [vmem:[#allocation2 + $0x418] sm:$0xff]   ;;  %v11685_v26 = vld [vmem:[#allocation2 + $0x420] sm:$0xff]  }
 0x203   : > { %10412 = vmatprep.mubr.bf16.mxu0 %v13135_v2  ;;  %10441 = vmatpush3.bf16.msra.mxu0 %v11674_v17  ;;  %v2365_v2 = vsel %vm13187_vm8, %v2360_v45, %v2364_v29  ;;  %v15009_v17 = vld [vmem:[#allocation29_spill] sm:$0xff]  ;;  %v6423_v45 = vrot.slane %v6421_v54, 4 }
 0x204   : > { %10442 = vmatprep.subr.bf16.mxu0 %v11676_v46  ;;  %v13840_v16 = vcombine.low %v2355_v56, %v2365_v2  ;;  %v11687_v2 = vld [vmem:[#allocation2 + $0x428] sm:$0xff]  }
 0x207   : > { %10443 = vmatpush3.bf16.msra.mxu0 %v11676_v46  ;;  %v6426_v46 = vrot.slane %v6424_v5, 5  ;;  %v8790_v5 = vrot.slane %v11805_v42, 10 }
 0x208   : > { %10444 = vmatprep.subr.bf16.mxu0 %v11678_v57 }
 0x209   : > { %9805 = vmatmul.mubr.bf16.gmra.mrb[24].mxu1 %v13750_v10 }
 0x20a   : > { %10413 = vmatmul.mubr.bf16.gmra.mrb[8].mxu0 %v13193_v19  ;;  %9808 = vmatprep.mubr.bf16.mxu1 %v13762_v12  ;;  %v13846_v19 = vld [vmem:[#allocation2 + $0x240] sm:$0xff]  }
 0x20b   : > { %10416 = vmatprep.mubr.bf16.mxu0 %v13195_v41  ;;  %10445 = vmatpush3.bf16.msra.mxu0 %v11678_v57  ;;  %v11679_v41 = vld [vmem:[#allocation2 + $0x408] sm:$0xff]   ;;  %v6697_v57 = vrot.slane %v13877_v52, 6 }
 0x20c   : > { %10446 = vmatprep.subr.bf16.mxu0 %v11680_v9 }
 0x20d   : > { %v6699_v29 = vrot.slane %v6697_v57, 4 }
 0x20f   : > { %10447 = vmatpush3.bf16.msra.mxu0 %v11680_v9  ;;  %v13885_v9 = vld [vmem:[%s12145_s5 + $0x8] sm:$0x3] }
 0x210   : > { %10448 = vmatprep.subr.bf16.mxu0 %v11682_v3  ;;  %v6700_v56 = vrot.slane %v13885_v9, 6 }
 0x211   : > { %9809 = vmatmul.mubr.bf16.gmra.mrb[28].mxu1 %v13840_v16 }
 0x212   : > { %10417 = vmatmul.mubr.bf16.gmra.mrb[12].mxu0 %v13260_v25  ;;  %9828 = vmatprep.mubr.bf16.mxu1 %v13474_v31  ;;  %v14659_v25 = vshrl.u32 %v15009_v17, 16  ;;  %v14658_v31 = vshll.u32 %v15009_v17, 16 }
 0x213   : > { %10420 = vmatprep.mubr.bf16.mxu0 %v13265_v4  ;;  %10449 = vmatpush3.bf16.msra.mxu0 %v11682_v3  ;;  %v11681_v4 = vld [vmem:[#allocation2 + $0x410] sm:$0xff]  }
 0x214   : > { %10450 = vmatprep.subr.bf16.mxu0 %v11684_v62 }
 0x217   : > { %10451 = vmatpush3.bf16.msra.mxu0 %v11684_v62 }
 0x218   : > { %10484 = vmatprep.subr.bf16.mxu0 %v13846_v19 }
 0x219   : > { %9829 = vmatmul.mubr.bf16.vlgmr.msra.gmra.mrb[0].mxu1 %v13513_v14 }
 0x21a   : > { %10421 = vmatmul.mubr.bf16.gmra.mrb[16].mxu0 %v13282_v22  ;;  %9861 = vmatpush3.bf16.msra.mxu1 %v11677_v50  ;;  %v14655_v22 = vshll.u32 %v13858_v48, 16  ;;  %v6415_v50 = vrot.slane %v14659_v25, 5  ;;  %v11830_v25 = vld [vmem:[%s12145_s5 + $0x80] sm:$0x3] }
 0x21b   : > { %9832 = vmatprep.mubr.bf16.mxu1 %v13530_v15  ;;  %10424 = vmatprep.mubr.bf16.mxu0 %v13284_v27  ;;  %v6416_v27 = vrot.slane %v14658_v31, 6  ;;  %v11824_v31 = vld [vmem:[%s12145_s5 + $0x68] sm:$0x3] }
 0x21c   : > { %9862 = vmatprep.subr.bf16.mxu1 %v11679_v41  ;;  %v6427_v32 = vrot.slane %v14655_v22, 6  ;;  %v11821_v22 = vld [vmem:[%s12145_s5 + $0x54] sm:$0xf] }
 0x21d   : > { %v6417_v51 = vor.u32 %v6416_v27, %v6415_v50  ;;  %v11804_v50 = vld [vmem:[%s12145_s5 + $0x1c] sm:$0xf]  ;;  %v11689_v27 = vld [vmem:[#allocation2 + $0x430] sm:$0xff]  }
 0x21e   : > { %9863 = vmatpush3.bf16.msra.mxu1 %v11679_v41  ;;  %v6428_v53 = vor.u32 %v6427_v32, %v6426_v46  ;;  %v11807_v46 = vld [vmem:[%s12145_s5 + $0x28] sm:$0xf] }
 0x21f   : > { %9864 = vmatprep.subr.bf16.mxu1 %v11681_v4  ;;  %v6718_v32 = vrot.slane %v11807_v46, 6  ;;  %v11814_v46 = vld [vmem:[%s12145_s5 + $0x4c] sm:$0xf] }
 0x220   : > { %v6429_v62 = vsel %vm12419_vm5, %v6423_v45, %v6428_v53  ;;  %v13911_v53 = vld [vmem:[#allocation2 + $0x540] sm:$0xff]  }
 0x221   : > { %9833 = vmatmul.mubr.bf16.gmra.mrb[4].mxu1 %v13553_v43 }
 0x222   : > { %10425 = vmatmul.mubr.bf16.gmra.mrb[20].mxu0 %v13294_v23  ;;  %9836 = vmatprep.mubr.bf16.mxu1 %v13586_v61  ;;  %v6418_v23 = vrot.slane %v6417_v51, 4 }
 0x223   : > { %10428 = vmatprep.mubr.bf16.mxu0 %v13371_v49  ;;  %9865 = vmatpush3.bf16.msra.mxu1 %v11681_v4  ;;  %v8788_v49 = vrot.slane %v13881_v13, 10  ;;  %v6701_v4 = vsel %vm13676_vm11, %v6699_v29, %v6700_v56  ;;  %v6720_v56 = vrot.slane %v6718_v32, 4 }
 0x224   : > { %9866 = vmatprep.subr.bf16.mxu1 %v11683_v44  ;;  %v6422_v3 = vsel %vm12419_vm5, %v6418_v23, %v6421_v54  ;;  %v11691_v54 = vld [vmem:[#allocation2 + $0x438] sm:$0xff]   ;;  %v11808_v23 = vld [vmem:[%s12145_s5 + $0x34] sm:$0xf] }
 0x225   : > { %v6698_v41 = vsel %vm13676_vm11, %v8788_v49, %v6697_v57  ;;  %v6725_v45 = vrot.slane %v11808_v23, 6  ;;  %v11809_v49 = vld [vmem:[%s12145_s5 + $0x24] sm:$0xf] }
 0x226   : > { %v8804_v11 = vcombine.low %v6698_v41, %v6701_v4  ;;  %v8791_v29 = vrot.slane %v11809_v49, 10  ;;  %v11688_v41 = vld [vmem:[#allocation2 + $0x248] sm:$0xff]   ;;  %v11811_v4 = vld [vmem:[%s12145_s5 + $0x30] sm:$0xf] }
 0x227   : > { %9867 = vmatpush3.bf16.msra.mxu1 %v11683_v44  ;;  %v11806_v44 = vld [vmem:[%s12145_s5 + $0x20] sm:$0x3] }
 0x228   : > { %9868 = vmatprep.subr.bf16.mxu1 %v11685_v26  ;;  %v6714_v51 = vrot.slane %v11806_v44, 6 }
 0x229   : > { %9837 = vmatmul.mubr.bf16.gmra.mrb[8].mxu1 %v13604_v24 }
 0x22a   : > { %10429 = vmatmul.mubr.bf16.gmra.mrb[24].mxu0 %v13612_v60  ;;  %9840 = vmatprep.mubr.bf16.mxu1 %v15000_v35  ;;  %v6711_v60 = vrot.slane %v11804_v50, 6  ;;  %v8792_v50 = vrot.slane %v11811_v4, 10 }
 0x22b   : > { %10432 = vmatprep.mubr.bf16.mxu0 %v13807_v7  ;;  %9869 = vmatpush3.bf16.msra.mxu1 %v11685_v26  ;;  %v8779_v7 = vcombine.low %v6422_v3, %v6429_v62 }
 0x22c   : > { %9870 = vmatprep.subr.bf16.mxu1 %v11687_v2  ;;  %v6713_v6 = vrot.slane %v6711_v60, 4  ;;  %v6712_v57 = vsel %vm13676_vm11, %v8790_v5, %v6711_v60  ;;  %v6727_v60 = vrot.slane %v6725_v45, 4  ;;  %v11813_v5 = vld [vmem:[%s12145_s5 + $0x40] sm:$0xf]  ;;  %v6726_v44 = vsel %vm13676_vm11, %v8792_v50, %v6725_v45 }
 0x22e   : > { %v6715_v26 = vsel %vm13676_vm11, %v6713_v6, %v6714_v51  ;;  %v6732_v6 = vrot.slane %v11813_v5, 6  ;;  %v11817_v5 = vld [vmem:[%s12145_s5 + $0x48] sm:$0xf] }
 0x22f   : > { %9871 = vmatpush3.bf16.msra.mxu1 %v11687_v2  ;;  %v11810_v2 = vld [vmem:[%s12145_s5 + $0x2c] sm:$0x3]  ;;  %v13915_v62 = vcombine.low %v6712_v57, %v6715_v26 }
 0x230   : > { %9872 = vmatprep.subr.bf16.mxu1 %v11689_v27  ;;  %v6721_v3 = vrot.slane %v11810_v2, 6 }
 0x231   : > { %9841 = vmatmul.mubr.bf16.gmra.mrb[12].mxu1 %v13664_v34 }
 0x232   : > { %10433 = vmatmul.mubr.bf16.gmra.mrb[28].mxu0 %v8779_v7  ;;  %9844 = vmatprep.mubr.bf16.mxu1 %v13668_v40  ;;  %v6722_v42 = vsel %vm13676_vm11, %v6720_v56, %v6721_v3  ;;  %v15014_v56 = vld [vmem:[#allocation41_spill] sm:$0xff] }
 0x233   : > { %10452 = vmatprep.mubr.bf16.mxu0 %v8804_v11  ;;  %9873 = vmatpush3.bf16.msra.mxu1 %v11689_v27  ;;  %v11812_v27 = vld [vmem:[%s12145_s5 + $0x38] sm:$0x3]  ;;  %v6719_v11 = vsel %vm13676_vm11, %v8791_v29, %v6718_v32  ;;  %v6739_v32 = vrot.slane %v11814_v46, 6  ;;  %v15015_v2 = vshll.u32 %v15014_v56, 16  ;;  %v15016_v45 = vshrl.u32 %v15014_v56, 16 }
 0x234   : > { %9874 = vmatprep.subr.bf16.mxu1 %v11691_v54  ;;  %v6728_v7 = vrot.slane %v11812_v27, 6  ;;  %v13935_v57 = vcombine.low %v6719_v11, %v6722_v42  ;;  %v11816_v11 = vld [vmem:[%s12145_s5 + $0x44] sm:$0x3]  ;;  %v8794_v46 = vrot.slane %v11817_v5, 10 }
 0x235   : > { %v13943_v3 = vrot.slane %v15015_v2, 5  ;;  %v2644_v4 = vrot.slane %v15016_v45, 4  ;;  %v6735_v42 = vrot.slane %v11816_v11, 6  ;;  %v11692_v2 = vld [vmem:[#allocation2 + $0x258] sm:$0xff]  }
 0x236   : > { %v6729_v51 = vsel %vm13676_vm11, %v6727_v60, %v6728_v7  ;;  %v11815_v60 = vld [vmem:[%s12145_s5 + $0x3c] sm:$0xf]  ;;  %v6734_v7 = vrot.slane %v6732_v6, 4  ;;  %v11819_v45 = vld [vmem:[%s12145_s5 + $0x58] sm:$0xf]  ;;  %v6740_v11 = vsel %vm13676_vm11, %v8794_v46, %v6739_v32 }
 0x237   : > { %9875 = vmatpush3.bf16.msra.mxu1 %v11691_v54  ;;  %v11690_v54 = vld [vmem:[#allocation2 + $0x250] sm:$0xff]   ;;  %v13947_v50 = vcombine.low %v6726_v44, %v6729_v51  ;;  %v8793_v27 = vrot.slane %v11815_v60, 10  ;;  %v2645_v44 = vor.u32 %v2644_v4, %v13943_v3  ;;  %v6746_v60 = vrot.slane %v11819_v45, 6 }
 0x238   : > { %9908 = vmatprep.subr.bf16.mxu1 %v13911_v53  ;;  %v6736_v56 = vsel %vm13676_vm11, %v6734_v7, %v6735_v42 }
 0x239   : > { %9845 = vmatmul.mubr.bf16.gmra.mrb[16].mxu1 %v13720_v63  ;;  %v6733_v51 = vsel %vm13676_vm11, %v8793_v27, %v6732_v6  ;;  %v11694_v6 = vld [vmem:[#allocation2 + $0x260] sm:$0xff]   ;;  %v2646_v7 = vrot.slane %v2645_v44, 4  ;;  %v6748_v46 = vrot.slane %v6746_v60, 4  ;;  %v11825_v44 = vld [vmem:[%s12145_s5 + $0x70] sm:$0xf] }
 0x23a   : > { %10453 = vmatmul.mubr.bf16.vlgmr.msra.gmra.mrb[0].mxu0 %v13703_v55  ;;  %9848 = vmatprep.mubr.bf16.mxu1 %v13722_v47  ;;  %v13968_v27 = vcombine.low %v6733_v51, %v6736_v56  ;;  %v6756_v51 = vrot.slane %v11824_v31, 6  ;;  %v6760_v56 = vrot.slane %v11825_v44, 6 }
 0x23b   : > { %10485 = vmatpush3.bf16.msra.mxu0 %v13846_v19  ;;  %10456 = vmatprep.mubr.bf16.mxu0 %v13915_v62  ;;  %v15011_v19 = vld [vmem:[#allocation28_spill] sm:$0xff] }
 0x23c   : > { %10486 = vmatprep.subr.bf16.mxu0 %v11688_v41  ;;  %v15012_v26 = vshrl.u32 %v15011_v19, 16  ;;  %v15013_v49 = vshll.u32 %v15011_v19, 16  ;;  %v6741_v19 = vrot.slane %v6739_v32, 4  ;;  %v8795_v32 = vrot.slane %v11821_v22, 10 }
 0x23e   : > { %v2631_v23 = vrot.slane %v15012_v26, 4  ;;  %v2634_v29 = vrot.slane %v15013_v49, 5  ;;  %v11818_v26 = vld [vmem:[%s12145_s5 + $0x50] sm:$0x3]  ;;  %v6747_v31 = vsel %vm13676_vm11, %v8795_v32, %v6746_v60  ;;  %v15019_v60 = vld [vmem:[#allocation79_spill] sm:$0xff] }
 0x23f   : > { %10487 = vmatpush3.bf16.msra.mxu0 %v11688_v41  ;;  %v6742_v49 = vrot.slane %v11818_v26, 6  ;;  %v11827_v32 = vld [vmem:[%s12145_s5 + $0x6c] sm:$0xf] }
 0x240   : > { %10488 = vmatprep.subr.bf16.mxu0 %v11690_v54  ;;  %v2635_v41 = vor.u32 %v2634_v29, %v2631_v23  ;;  %v11820_v29 = vld [vmem:[%s12145_s5 + $0x64] sm:$0xf] }
 0x241   : > { %9849 = vmatmul.mubr.bf16.gmra.mrb[20].mxu1 %v13748_v39  ;;  %v6743_v23 = vsel %vm13676_vm11, %v6741_v19, %v6742_v49  ;;  %v6753_v4 = vrot.slane %v11820_v29, 6  ;;  %v6749_v19 = vrot.slane %v11822_v18, 6  ;;  %v11823_v49 = vld [vmem:[%s12145_s5 + $0x60] sm:$0xf] }
 0x242   : > { %10457 = vmatmul.mubr.bf16.gmra.mrb[4].mxu0 %v13935_v57  ;;  %9852 = vmatprep.mubr.bf16.mxu1 %v13750_v10  ;;  %v2636_v5 = vrot.slane %v2635_v41, 4  ;;  %v13972_v45 = vcombine.low %v6740_v11, %v6743_v23  ;;  %v8796_v29 = vrot.slane %v11823_v49, 10  ;;  %v11696_v41 = vld [vmem:[#allocation2 + $0x268] sm:$0xff]   ;;  %v11826_v23 = vld [vmem:[%s12145_s5 + $0x7c] sm:$0xf]  ;;  %v6762_v49 = vrot.slane %v6760_v56, 4 }
 0x243   : > { %10460 = vmatprep.mubr.bf16.mxu0 %v13947_v50  ;;  %10489 = vmatpush3.bf16.msra.mxu0 %v11690_v54  ;;  %v15017_v54 = vld [vmem:[#allocation77_spill] sm:$0xff]  ;;  %v6755_v37 = vrot.slane %v6753_v4, 4 }
 0x244   : > { %10490 = vmatprep.subr.bf16.mxu0 %v11692_v2  ;;  %v15018_v42 = vshll.u32 %v15017_v54, 16  ;;  %v2641_v18 = vsel %vm13187_vm8, %v2636_v5, %v13943_v3  ;;  %v6754_v11 = vsel %vm13676_vm11, %v8796_v29, %v6753_v4  ;;  %v6767_v5 = vrot.slane %v11826_v23, 6 }
 0x245   : > { %v6757_v3 = vsel %vm13676_vm11, %v6755_v37, %v6756_v51  ;;  %v3514_v54 = vrot.slane %v15019_v60, 5  ;;  %v11828_v37 = vld [vmem:[%s12145_s5 + $0x74] sm:$0x3]  ;;  %v11829_v51 = vld [vmem:[%s12145_s5 + $0x78] sm:$0xf]  ;;  %v6770_v60 = vrot.slane %v11830_v25, 6 }
 0x246   : > { %v2650_v26 = vrot.slane %v15018_v42, 5  ;;  %v14004_v4 = vcombine.low %v6754_v11, %v6757_v3  ;;  %v6763_v29 = vrot.slane %v11828_v37, 6  ;;  %v8798_v44 = vrot.slane %v11829_v51, 10  ;;  %v11831_v25 = vld [vmem:[%s12145_s5 + $0x88] sm:$0xf] }
 0x247   : > { %10491 = vmatpush3.bf16.msra.mxu0 %v11692_v2  ;;  %v6750_v2 = vsel %vm13676_vm11, %v6748_v46, %v6749_v19  ;;  %v15020_v46 = vld [vmem:[#allocation81_spill] sm:$0xff]  ;;  %v6769_v23 = vrot.slane %v6767_v5, 4 }
 0x248   : > { %10492 = vmatprep.subr.bf16.mxu0 %v11694_v6  ;;  %v2651_v22 = vsel %vm13187_vm8, %v2646_v7, %v2650_v26  ;;  %v11698_v7 = vld [vmem:[#allocation2 + $0x270] sm:$0xff]   ;;  %v14000_v26 = vcombine.low %v6747_v31, %v6750_v2  ;;  %v8649_v19 = vrot.slane %v15020_v46, 9  ;;  %v6774_v2 = vrot.slane %v11831_v25, 6  ;;  %v11834_v51 = vld [vmem:[%s12145_s5 + $0x8c] sm:$0x3] }
 0x249   : > { %9853 = vmatmul.mubr.bf16.gmra.mrb[24].mxu1 %v13762_v12  ;;  %v13998_v42 = vcombine.low %v2641_v18, %v2651_v22  ;;  %v11700_v18 = vld [vmem:[#allocation2 + $0x278] sm:$0xff]   ;;  %v3516_v22 = vrot.slane %v3514_v54, 4  ;;  %v11727_v11 = vld [vmem:[#allocation2 + $0x1c8] sm:$0xff]  }
 0x24a   : > { %10461 = vmatmul.mubr.bf16.gmra.mrb[8].mxu0 %v13968_v27  ;;  %9856 = vmatprep.mubr.bf16.mxu1 %v13840_v16  ;;  %v3515_v3 = vsel %vm12163_vm2, %v8649_v19, %v3514_v54 }
 0x24b   : > { %10464 = vmatprep.mubr.bf16.mxu0 %v13972_v45  ;;  %10493 = vmatpush3.bf16.msra.mxu0 %v11694_v6  ;;  %v8797_v6 = vrot.slane %v11827_v32, 10  ;;  %v3517_v32 = vrot.slane %v13687_v30, 5 }
 0x24c   : > { %10494 = vmatprep.subr.bf16.mxu0 %v11696_v41 }
 0x24d   : > { %v6761_v31 = vsel %vm13676_vm11, %v8797_v6, %v6760_v56  ;;  %v6771_v56 = vsel %vm13676_vm11, %v6769_v23, %v6770_v60  ;;  %v11832_v6 = vld [vmem:[%s12145_s5 + $0x94] sm:$0xf]  ;;  %v11695_v23 = vld [vmem:[#allocation2 + $0x548] sm:$0xff]   ;;  %v11835_v60 = vld [vmem:[%s12145_s5 + $0x90] sm:$0xf] }
 0x24e   : > { %v6781_v46 = vrot.slane %v11832_v6, 6  ;;  %v8800_v25 = vrot.slane %v11835_v60, 10  ;;  %v11841_v60 = vld [vmem:[%s12145_s5 + $0xa8] sm:$0xf] }
 0x24f   : > { %10495 = vmatpush3.bf16.msra.mxu0 %v11696_v41  ;;  %v6764_v41 = vsel %vm13676_vm11, %v6762_v49, %v6763_v29  ;;  %v14026_v49 = vld [vmem:[#allocation2 + $0x380] sm:$0xff]   ;;  %v6776_v29 = vrot.slane %v6774_v2, 4 }
 0x250   : > { %10496 = vmatprep.subr.bf16.mxu0 %v11698_v7  ;;  %v14030_v37 = vcombine.low %v6761_v31, %v6764_v41  ;;  %v6783_v6 = vrot.slane %v6781_v46, 4  ;;  %v11837_v41 = vld [vmem:[%s12145_s5 + $0xa0] sm:$0xf] }
 0x251   : > { %9857 = vmatmul.mubr.bf16.gmra.mrb[28].mxu1 %v13998_v42 }
 0x252   : > { %10465 = vmatmul.mubr.bf16.gmra.mrb[12].mxu0 %v14000_v26  ;;  %9876 = vmatprep.mubr.bf16.mxu1 %v13513_v14  ;;  %v6768_v14 = vsel %vm13676_vm11, %v8798_v44, %v6767_v5  ;;  %v11833_v5 = vld [vmem:[%s12145_s5 + $0x84] sm:$0xf]  ;;  %v6777_v44 = vrot.slane %v11834_v51, 6 }
 0x253   : > { %10468 = vmatprep.mubr.bf16.mxu0 %v14004_v4  ;;  %10497 = vmatpush3.bf16.msra.mxu0 %v11698_v7  ;;  %v3518_v7 = vsel %vm12163_vm2, %v3516_v22, %v3517_v32  ;;  %v14034_v30 = vcombine.low %v6768_v14, %v6771_v56  ;;  %v8799_v19 = vrot.slane %v11833_v5, 10  ;;  %v6784_v22 = vrot.slane %v11836_v8, 6  ;;  %v11697_v8 = vld [vmem:[#allocation2 + $0x550] sm:$0xff]   ;;  %v11838_v14 = vld [vmem:[%s12145_s5 + $0xac] sm:$0xf] }
 0x254   : > { %10498 = vmatprep.subr.bf16.mxu0 %v11700_v18  ;;  %v14032_v54 = vcombine.low %v3515_v3, %v3518_v7  ;;  %v6778_v31 = vsel %vm13676_vm11, %v6776_v29, %v6777_v44  ;;  %v6788_v3 = vrot.slane %v11837_v41, 6  ;;  %v6795_v56 = vrot.slane %v11838_v14, 6  ;;  %v11839_v5 = vld [vmem:[%s12145_s5 + $0x9c] sm:$0xf]  ;;  %v11840_v51 = vld [vmem:[%s12145_s5 + $0xa4] sm:$0x3] }
 0x255   : > { %v6785_v32 = vsel %vm13676_vm11, %v6783_v6, %v6784_v22  ;;  %v6791_v44 = vrot.slane %v11840_v51, 6  ;;  %v11842_v41 = vld [vmem:[%s12145_s5 + $0xb0] sm:$0x3]  ;;  %v11699_v6 = vld [vmem:[#allocation2 + $0x558] sm:$0xff]   ;;  %v11701_v14 = vld [vmem:[#allocation2 + $0x560] sm:$0xff]  }
 0x256   : > { %v6790_v29 = vrot.slane %v6788_v3, 4  ;;  %v6798_v58 = vrot.slane %v11842_v41, 6  ;;  %v11845_v41 = vld [vmem:[%s12145_s5 + $0xbc] sm:$0x3] }
 0x257   : > { %10499 = vmatpush3.bf16.msra.mxu0 %v11700_v18  ;;  %v6775_v18 = vsel %vm13676_vm11, %v8799_v19, %v6774_v2  ;;  %v8801_v19 = vrot.slane %v11839_v5, 10 }
 0x258   : > { %10532 = vmatprep.subr.bf16.mxu0 %v14026_v49  ;;  %v14056_v7 = vcombine.low %v6775_v18, %v6778_v31  ;;  %v6792_v22 = vsel %vm13676_vm11, %v6790_v29, %v6791_v44  ;;  %v11843_v18 = vld [vmem:[%s12145_s5 + $0xb8] sm:$0xf]  ;;  %v6805_v29 = vrot.slane %v11845_v41, 6  ;;  %v11705_v44 = vld [vmem:[#allocation2 + $0x570] sm:$0xff]  }
 0x259   : > { %9877 = vmatmul.mubr.bf16.vlgmr.msra.gmra.mrb[0].mxu1 %v13530_v15  ;;  %v6802_v31 = vrot.slane %v11843_v18, 6  ;;  %v2920_v18 = vrot.slane %v2918_v21, 5 }
 0x25a   : > { %10469 = vmatmul.mubr.bf16.gmra.mrb[16].mxu0 %v14030_v37  ;;  %9909 = vmatpush3.bf16.msra.mxu1 %v13911_v53  ;;  %v6782_v53 = vsel %vm13676_vm11, %v8800_v25, %v6781_v46  ;;  %v8802_v46 = vrot.slane %v11841_v60, 10  ;;  %v6797_v25 = vrot.slane %v6795_v56, 4  ;;  %v11844_v60 = vld [vmem:[%s12145_s5 + $0xb4] sm:$0xf] }
 0x25b   : > { %9880 = vmatprep.mubr.bf16.mxu1 %v13553_v43  ;;  %10472 = vmatprep.mubr.bf16.mxu0 %v14034_v30  ;;  %v14058_v2 = vcombine.low %v6782_v53, %v6785_v32 }
 0x25c   : > { %9910 = vmatprep.subr.bf16.mxu1 %v11695_v23  ;;  %v6796_v53 = vsel %vm13676_vm11, %v8802_v46, %v6795_v56  ;;  %v6799_v32 = vsel %vm13676_vm11, %v6797_v25, %v6798_v58  ;;  %v11707_v25 = vld [vmem:[#allocation2 + $0x578] sm:$0xff]  }
 0x25d   : > { %v14079_v51 = vcombine.low %v6796_v53, %v6799_v32  ;;  %v15022_v53 = vshrl.u32 %v13314_v33, 16  ;;  %v15023_v33 = vshll.u32 %v13781_v1, 16  ;;  %v11714_v1 = vld [vmem:[#allocation2 + $0x3b0] sm:$0xff]  }
 0x25e   : > { %9911 = vmatpush3.bf16.msra.mxu1 %v11695_v23  ;;  %v6789_v23 = vsel %vm13676_vm11, %v8801_v19, %v6788_v3  ;;  %v8803_v3 = vrot.slane %v11844_v60, 10  ;;  %v6804_v19 = vrot.slane %v6802_v31, 4 }
 0x25f   : > { %9912 = vmatprep.subr.bf16.mxu1 %v11697_v8  ;;  %v14077_v5 = vcombine.low %v6789_v23, %v6792_v22  ;;  %v11704_v23 = vld [vmem:[#allocation2 + $0x388] sm:$0xff]   ;;  %v11706_v22 = vld [vmem:[#allocation2 + $0x390] sm:$0xff]   ;;  %v2930_v32 = vrot.slane %v15022_v53, 4  ;;  %v2936_v60 = vrot.slane %v15023_v33, 5 }
 0x260   : > { %v6803_v58 = vsel %vm13676_vm11, %v8803_v3, %v6802_v31  ;;  %v6806_v56 = vsel %vm13676_vm11, %v6804_v19, %v6805_v29  ;;  %v2926_v31 = vrot.slane %v2924_v28, 5  ;;  %v11712_v3 = vld [vmem:[#allocation2 + $0x3a8] sm:$0xff]   ;;  %v11721_v53 = vld [vmem:[#allocation2 + $0xb0] sm:$0xff]  }
 0x261   : > { %9881 = vmatmul.mubr.bf16.gmra.mrb[4].mxu1 %v13586_v61  ;;  %v14091_v46 = vcombine.low %v6803_v58, %v6806_v56  ;;  %v11718_v58 = vld [vmem:[#allocation2 + $0x4c0] sm:$0xff]   ;;  %v11711_v56 = vld [vmem:[#allocation2 + $0x88] sm:$0xff]  }
 0x262   : > { %10473 = vmatmul.mubr.bf16.gmra.mrb[20].mxu0 %v14056_v7  ;;  %9884 = vmatprep.mubr.bf16.mxu1 %v13604_v24 }
 0x263   : > { %10476 = vmatprep.mubr.bf16.mxu0 %v14058_v2  ;;  %9913 = vmatpush3.bf16.msra.mxu1 %v11697_v8  ;;  %v11703_v8 = vld [vmem:[#allocation2 + $0x568] sm:$0xff]  }
 0x264   : > { %9914 = vmatprep.subr.bf16.mxu1 %v11699_v6 }
 0x267   : > { %9915 = vmatpush3.bf16.msra.mxu1 %v11699_v6  ;;  %v11709_v6 = vld [vmem:[#allocation2 + $0x80] sm:$0xff]  }
 0x268   : > { %9916 = vmatprep.subr.bf16.mxu1 %v11701_v14 }
 0x269   : > { %9885 = vmatmul.mubr.bf16.gmra.mrb[8].mxu1 %v15000_v35 }
 0x26a   : > { %10477 = vmatmul.mubr.bf16.gmra.mrb[24].mxu0 %v14077_v5  ;;  %9888 = vmatprep.mubr.bf16.mxu1 %v13664_v34 }
 0x26b   : > { %10480 = vmatprep.mubr.bf16.mxu0 %v14079_v51  ;;  %9917 = vmatpush3.bf16.msra.mxu1 %v11701_v14  ;;  %v11708_v14 = vld [vmem:[#allocation2 + $0x398] sm:$0xff]  }
 0x26c   : > { %9918 = vmatprep.subr.bf16.mxu1 %v11703_v8 }
 0x26f   : > { %9919 = vmatpush3.bf16.msra.mxu1 %v11703_v8  ;;  %v11716_v8 = vld [vmem:[#allocation2 + $0x3b8] sm:$0xff]  }
 0x270   : > { %9920 = vmatprep.subr.bf16.mxu1 %v11705_v44 }
 0x271   : > { %9889 = vmatmul.mubr.bf16.gmra.mrb[12].mxu1 %v13668_v40 }
 0x272   : > { %10481 = vmatmul.mubr.bf16.gmra.mrb[28].mxu0 %v14091_v46  ;;  %9892 = vmatprep.mubr.bf16.mxu1 %v13720_v63 }
 0x273   : > { %10500 = vmatprep.mubr.bf16.mxu0 %v13703_v55  ;;  %9921 = vmatpush3.bf16.msra.mxu1 %v11705_v44  ;;  %v2917_v55 = vrot.slane %v2915_v59, 4  ;;  %v2931_v59 = vor.u32 %v2930_v32, %v2926_v31  ;;  %v11715_v44 = vld [vmem:[#allocation2 + $0x98] sm:$0xff]  }
 0x274   : > { %9922 = vmatprep.subr.bf16.mxu1 %v11707_v25 }
 0x275   : > { %v2932_v28 = vrot.slane %v2931_v59, 4 }
 0x277   : > { %9923 = vmatpush3.bf16.msra.mxu1 %v11707_v25  ;;  %v2937_v41 = vsel %vm13187_vm8, %v2932_v28, %v2936_v60  ;;  %v11717_v25 = vld [vmem:[#allocation2 + $0xa0] sm:$0xff]  }
 0x278   : > { %9956 = vmatprep.subr.bf16.mxu1 %v11709_v6 }
 0x279   : > { %9893 = vmatmul.mubr.bf16.gmra.mrb[16].mxu1 %v13722_v47 }
 0x27a   : > { %10501 = vmatmul.mubr.bf16.vlgmr.msra.gmra.mrb[0].mxu0 %v13915_v62  ;;  %9896 = vmatprep.mubr.bf16.mxu1 %v13748_v39 }
 0x27b   : > { %10533 = vmatpush3.bf16.msra.mxu0 %v14026_v49  ;;  %10504 = vmatprep.mubr.bf16.mxu0 %v13935_v57  ;;  %v2921_v49 = vor.u32 %v2920_v18, %v2917_v55  ;;  %v11848_v55 = vld [vmem:[%s12145_s5 + $0xc8] sm:$0x3] }
 0x27c   : > { %10534 = vmatprep.subr.bf16.mxu0 %v11704_v23  ;;  %v7134_v18 = vrot.slane %v11848_v55, 6  ;;  %v11733_v55 = vld [vmem:[#allocation2 + $0x1e0] sm:$0xff]  }
 0x27d   : > { %v2922_v21 = vrot.slane %v2921_v49, 4  ;;  %v15025_v49 = vshll.u32 %v15009_v17, 16 }
 0x27f   : > { %10535 = vmatpush3.bf16.msra.mxu0 %v11704_v23  ;;  %v2927_v19 = vsel %vm13187_vm8, %v2922_v21, %v2926_v31  ;;  %v11719_v31 = vld [vmem:[#allocation2 + $0xa8] sm:$0xff]   ;;  %v3206_v59 = vrot.slane %v15025_v49, 5 }
 0x280   : > { %10536 = vmatprep.subr.bf16.mxu0 %v11706_v22  ;;  %v14124_v29 = vcombine.low %v2927_v19, %v2937_v41  ;;  %v15028_v41 = vshll.u32 %v13858_v48, 16 }
 0x281   : > { %9897 = vmatmul.mubr.bf16.gmra.mrb[20].mxu1 %v13750_v10 }
 0x282   : > { %10505 = vmatmul.mubr.bf16.gmra.mrb[4].mxu0 %v13947_v50  ;;  %9900 = vmatprep.mubr.bf16.mxu1 %v13762_v12 }
 0x283   : > { %10508 = vmatprep.mubr.bf16.mxu0 %v13968_v27  ;;  %10537 = vmatpush3.bf16.msra.mxu0 %v11706_v22 }
 0x284   : > { %10538 = vmatprep.subr.bf16.mxu0 %v11708_v14 }
 0x287   : > { %10539 = vmatpush3.bf16.msra.mxu0 %v11708_v14  ;;  %v11720_v14 = vld [vmem:[#allocation2 + $0x4c8] sm:$0xff]  }
 0x288   : > { %10540 = vmatprep.subr.bf16.mxu0 %v11710_v36 }
 0x289   : > { %9901 = vmatmul.mubr.bf16.gmra.mrb[24].mxu1 %v13840_v16 }
 0x28a   : > { %10509 = vmatmul.mubr.bf16.gmra.mrb[8].mxu0 %v13972_v45  ;;  %9904 = vmatprep.mubr.bf16.mxu1 %v13998_v42 }
 0x28b   : > { %10512 = vmatprep.mubr.bf16.mxu0 %v14000_v26  ;;  %10541 = vmatpush3.bf16.msra.mxu0 %v11710_v36  ;;  %v15026_v36 = vshll.u32 %v15010_v38, 16 }
 0x28c   : > { %10542 = vmatprep.subr.bf16.mxu0 %v11712_v3 }
 0x28d   : > { %v3212_v21 = vrot.slane %v15026_v36, 5  ;;  %v15034_v36 = vld [vmem:[#allocation23_spill] sm:$0xff] }
 0x28f   : > { %10543 = vmatpush3.bf16.msra.mxu0 %v11712_v3  ;;  %v11726_v3 = vld [vmem:[#allocation2 + $0x4e0] sm:$0xff]  }
 0x290   : > { %10544 = vmatprep.subr.bf16.mxu0 %v11714_v1 }
 0x291   : > { %9905 = vmatmul.mubr.bf16.gmra.mrb[28].mxu1 %v14124_v29 }
 0x292   : > { %10513 = vmatmul.mubr.bf16.gmra.mrb[12].mxu0 %v14004_v4  ;;  %9924 = vmatprep.mubr.bf16.mxu1 %v13530_v15  ;;  %v11713_v15 = vld [vmem:[#allocation2 + $0x90] sm:$0xff]  }
 0x293   : > { %10516 = vmatprep.mubr.bf16.mxu0 %v14030_v37  ;;  %10545 = vmatpush3.bf16.msra.mxu0 %v11714_v1  ;;  %v3222_v1 = vrot.slane %v15028_v41, 5  ;;  %v15040_v41 = vld [vmem:[#allocation40_spill] sm:$0xff] }
 0x294   : > { %10546 = vmatprep.subr.bf16.mxu0 %v11716_v8 }
 0x297   : > { %10547 = vmatpush3.bf16.msra.mxu0 %v11716_v8 }
 0x298   : > { %10580 = vmatprep.subr.bf16.mxu0 %v11718_v58 }
 0x299   : > { %9925 = vmatmul.mubr.bf16.vlgmr.msra.gmra.mrb[0].mxu1 %v13553_v43  ;;  %v11846_v43 = vld [vmem:[%s12145_s5 + $0xc4] sm:$0xf] }
 0x29a   : > { %10517 = vmatmul.mubr.bf16.gmra.mrb[16].mxu0 %v14034_v30  ;;  %9957 = vmatpush3.bf16.msra.mxu1 %v11709_v6  ;;  %v11847_v6 = vld [vmem:[%s12145_s5 + $0xc0] sm:$0xf] }
 0x29b   : > { %9928 = vmatprep.mubr.bf16.mxu1 %v13586_v61  ;;  %10520 = vmatprep.mubr.bf16.mxu0 %v14056_v7  ;;  %v7131_v61 = vrot.slane %v11846_v43, 6  ;;  %v8828_v23 = vrot.slane %v11847_v6, 10  ;;  %v11729_v43 = vld [vmem:[#allocation2 + $0x1d0] sm:$0xff]  }
 0x29c   : > { %9958 = vmatprep.subr.bf16.mxu1 %v11711_v56  ;;  %v15031_v6 = vld [vmem:[#allocation17_spill] sm:$0xff] }
 0x29d   : > { %v7133_v22 = vrot.slane %v7131_v61, 4 }
 0x29e   : > { %9959 = vmatpush3.bf16.msra.mxu1 %v11711_v56 }
 0x29f   : > { %9960 = vmatprep.subr.bf16.mxu1 %v11713_v15 }
 0x2a1   : > { %9929 = vmatmul.mubr.bf16.gmra.mrb[4].mxu1 %v13604_v24  ;;  %v7132_v24 = vsel %vm13676_vm11, %v8828_v23, %v7131_v61  ;;  %v11731_v61 = vld [vmem:[#allocation2 + $0x1d8] sm:$0xff]   ;;  %v11849_v23 = vld [vmem:[%s12145_s5 + $0xd0] sm:$0xf] }
 0x2a2   : > { %10521 = vmatmul.mubr.bf16.gmra.mrb[20].mxu0 %v14058_v2  ;;  %9932 = vmatprep.mubr.bf16.mxu1 %v15000_v35  ;;  %v7135_v35 = vsel %vm13676_vm11, %v7133_v22, %v7134_v18  ;;  %v7400_v22 = vrot.slane %v11849_v23, 6  ;;  %v11850_v18 = vld [vmem:[%s12145_s5 + $0xcc] sm:$0xf] }
 0x2a3   : > { %10524 = vmatprep.mubr.bf16.mxu0 %v14077_v5  ;;  %9961 = vmatpush3.bf16.msra.mxu1 %v11713_v15  ;;  %v14149_v32 = vcombine.low %v7132_v24, %v7135_v35  ;;  %v11851_v35 = vld [vmem:[%s12145_s5 + $0xd4] sm:$0x3] }
 0x2a4   : > { %9962 = vmatprep.subr.bf16.mxu1 %v11715_v44  ;;  %v7402_v24 = vrot.slane %v7400_v22, 4 }
 0x2a7   : > { %9963 = vmatpush3.bf16.msra.mxu1 %v11715_v44  ;;  %v15029_v44 = vld [vmem:[#allocation14_spill] sm:$0xff] }
 0x2a8   : > { %9964 = vmatprep.subr.bf16.mxu1 %v11717_v25 }
 0x2a9   : > { %9933 = vmatmul.mubr.bf16.gmra.mrb[8].mxu1 %v13664_v34  ;;  %v11723_v34 = vld [vmem:[#allocation2 + $0xb8] sm:$0xff]  }
 0x2aa   : > { %10525 = vmatmul.mubr.bf16.gmra.mrb[24].mxu0 %v14079_v51  ;;  %9936 = vmatprep.mubr.bf16.mxu1 %v13668_v40  ;;  %v14155_v40 = vld [vmem:[#allocation2 + $0x1c0] sm:$0xff]  }
 0x2ab   : > { %10528 = vmatprep.mubr.bf16.mxu0 %v14091_v46  ;;  %9965 = vmatpush3.bf16.msra.mxu1 %v11717_v25  ;;  %v15030_v25 = vld [vmem:[#allocation15_spill] sm:$0xff] }
 0x2ac   : > { %9966 = vmatprep.subr.bf16.mxu1 %v11719_v31 }
 0x2af   : > { %9967 = vmatpush3.bf16.msra.mxu1 %v11719_v31  ;;  %v8838_v31 = vrot.slane %v11850_v18, 10 }
 0x2b0   : > { %9968 = vmatprep.subr.bf16.mxu1 %v11721_v53 }
 0x2b1   : > { %9937 = vmatmul.mubr.bf16.gmra.mrb[12].mxu1 %v13720_v63  ;;  %v11722_v63 = vld [vmem:[#allocation2 + $0x4d0] sm:$0xff]  }
 0x2b2   : > { %10529 = vmatmul.mubr.bf16.gmra.mrb[28].mxu0 %v14149_v32  ;;  %9940 = vmatprep.mubr.bf16.mxu1 %v13722_v47  ;;  %v15024_v47 = vshrl.u32 %v15009_v17, 16  ;;  %v3507_v17 = vrot.slane %v13877_v52, 5 }
 0x2b3   : > { %10548 = vmatprep.mubr.bf16.mxu0 %v13915_v62  ;;  %9969 = vmatpush3.bf16.msra.mxu1 %v11721_v53  ;;  %v7403_v53 = vrot.slane %v11851_v35, 6 }
 0x2b4   : > { %9970 = vmatprep.subr.bf16.mxu1 %v11723_v34  ;;  %v3203_v62 = vrot.slane %v15024_v47, 4  ;;  %v3509_v8 = vrot.slane %v3507_v17, 4 }
 0x2b5   : > { %v7404_v47 = vsel %vm13676_vm11, %v7402_v24, %v7403_v53 }
 0x2b6   : > { %v3207_v33 = vor.u32 %v3206_v59, %v3203_v62  ;;  %v11737_v62 = vld [vmem:[#allocation2 + $0x1f0] sm:$0xff]   ;;  %v11739_v59 = vld [vmem:[#allocation2 + $0x1f8] sm:$0xff]  }
 0x2b7   : > { %9971 = vmatpush3.bf16.msra.mxu1 %v11723_v34  ;;  %v11735_v34 = vld [vmem:[#allocation2 + $0x1e8] sm:$0xff]  }
 0x2b8   : > { %10004 = vmatprep.subr.bf16.mxu1 %v14155_v40 }
 0x2b9   : > { %9941 = vmatmul.mubr.bf16.gmra.mrb[16].mxu1 %v13748_v39  ;;  %v15027_v39 = vshrl.u32 %v15010_v38, 16  ;;  %v3208_v38 = vrot.slane %v3207_v33, 4  ;;  %v15037_v33 = vld [vmem:[#allocation35_spill] sm:$0xff] }
 0x2ba   : > { %10549 = vmatmul.mubr.bf16.vlgmr.msra.gmra.mrb[0].mxu0 %v13935_v57  ;;  %9944 = vmatprep.mubr.bf16.mxu1 %v13750_v10  ;;  %v11724_v10 = vld [vmem:[#allocation2 + $0x4d8] sm:$0xff]  }
 0x2bb   : > { %10581 = vmatpush3.bf16.msra.mxu0 %v11718_v58  ;;  %10552 = vmatprep.mubr.bf16.mxu0 %v13947_v50  ;;  %v3216_v28 = vrot.slane %v15027_v39, 4  ;;  %v11728_v58 = vld [vmem:[#allocation2 + $0x4e8] sm:$0xff]   ;;  %v3213_v52 = vsel %vm13187_vm8, %v3208_v38, %v3212_v21  ;;  %v11741_v38 = vld [vmem:[#allocation2 + $0x620] sm:$0xff]  }
 0x2bc   : > { %10582 = vmatprep.subr.bf16.mxu0 %v11720_v14  ;;  %v11736_v39 = vld [vmem:[#allocation2 + $0x608] sm:$0xff]  }
 0x2bd   : > { %v3217_v60 = vor.u32 %v3216_v28, %v3212_v21  ;;  %v15035_v21 = vld [vmem:[#allocation24_spill] sm:$0xff] }
 0x2be   : > { %v11852_v28 = vld [vmem:[#allocation2 + $0x300] sm:$0xff]  }
 0x2bf   : > { %10583 = vmatpush3.bf16.msra.mxu0 %v11720_v14  ;;  %v3218_v19 = vrot.slane %v3217_v60, 4  ;;  %v15033_v14 = vld [vmem:[#allocation21_spill] sm:$0xff] }
 0x2c0   : > { %10584 = vmatprep.subr.bf16.mxu0 %v11722_v63  ;;  %v11738_v60 = vld [vmem:[#allocation2 + $0x610] sm:$0xff]  }
 0x2c1   : > { %9945 = vmatmul.mubr.bf16.gmra.mrb[20].mxu1 %v13762_v12  ;;  %v8648_v12 = vrot.slane %v13881_v13, 9  ;;  %v3223_v48 = vsel %vm13187_vm8, %v3218_v19, %v3222_v1  ;;  %v11742_v19 = vld [vmem:[#allocation2 + $0x628] sm:$0xff]   ;;  %v15041_v1 = vld [vmem:[#allocation42_spill] sm:$0xff] }
 0x2c2   : > { %10553 = vmatmul.mubr.bf16.gmra.mrb[4].mxu0 %v13968_v27  ;;  %9948 = vmatprep.mubr.bf16.mxu1 %v13840_v16  ;;  %v3510_v16 = vrot.slane %v13885_v9, 5  ;;  %v8639_v56 = vcombine.low %v3213_v52, %v3223_v48  ;;  %v11855_v52 = vld [vmem:[%s12145_s5 + $0xdc] sm:$0xf] }
 0x2c3   : > { %10556 = vmatprep.mubr.bf16.mxu0 %v13972_v45  ;;  %10585 = vmatpush3.bf16.msra.mxu0 %v11722_v63  ;;  %v3508_v13 = vsel %vm12163_vm2, %v8648_v12, %v3507_v17  ;;  %v7401_v63 = vsel %vm13676_vm11, %v8838_v31, %v7400_v22  ;;  %v15038_v17 = vld [vmem:[#allocation36_spill] sm:$0xff]  ;;  %v11743_v12 = vld [vmem:[#allocation2 + $0x630] sm:$0xff]   ;;  %v7669_v48 = vrot.slane %v11855_v52, 6 }
 0x2c4   : > { %10586 = vmatprep.subr.bf16.mxu0 %v11724_v10  ;;  %v3511_v9 = vsel %vm12163_vm2, %v3509_v8, %v3510_v16  ;;  %v14213_v49 = vcombine.low %v7401_v63, %v7404_v47  ;;  %v11744_v8 = vld [vmem:[#allocation2 + $0x638] sm:$0xff]  }
 0x2c5   : > { %v8664_v15 = vcombine.low %v3508_v13, %v3511_v9  ;;  %v15042_v16 = vld [vmem:[#allocation43_spill] sm:$0xff]  ;;  %v11857_v9 = vld [vmem:[%s12145_s5 + $0xd8] sm:$0xf] }
 0x2c6   : > { %v11856_v13 = vld [vmem:[#allocation2 + $0x318] sm:$0xff]  }
 0x2c7   : > { %10587 = vmatpush3.bf16.msra.mxu0 %v11724_v10  ;;  %v15036_v10 = vld [vmem:[#allocation25_spill] sm:$0xff] }
 0x2c8   : > { %10588 = vmatprep.subr.bf16.mxu0 %v11726_v3 }
 0x2c9   : > { %9949 = vmatmul.mubr.bf16.gmra.mrb[24].mxu1 %v13998_v42  ;;  %v11730_v42 = vld [vmem:[#allocation2 + $0x4f0] sm:$0xff]  }
 0x2ca   : > { %10557 = vmatmul.mubr.bf16.gmra.mrb[8].mxu0 %v14000_v26  ;;  %9952 = vmatprep.mubr.bf16.mxu1 %v14124_v29  ;;  %v11732_v29 = vld [vmem:[#allocation2 + $0x4f8] sm:$0xff]  }
 0x2cb   : > { %10560 = vmatprep.mubr.bf16.mxu0 %v14004_v4  ;;  %10589 = vmatpush3.bf16.msra.mxu0 %v11726_v3  ;;  %v15039_v3 = vld [vmem:[#allocation39_spill] sm:$0xff] }
 0x2cc   : > { %10590 = vmatprep.subr.bf16.mxu0 %v11728_v58 }
 0x2cf   : > { %10591 = vmatpush3.bf16.msra.mxu0 %v11728_v58  ;;  %v11853_v58 = vld [vmem:[#allocation2 + $0x308] sm:$0xff]  }
 0x2d0   : > { %10592 = vmatprep.subr.bf16.mxu0 %v11730_v42 }
 0x2d1   : > { %9953 = vmatmul.mubr.bf16.gmra.mrb[28].mxu1 %v8639_v56  ;;  %v7671_v56 = vrot.slane %v7669_v48, 4 }
 0x2d2   : > { %10561 = vmatmul.mubr.bf16.gmra.mrb[12].mxu0 %v14030_v37  ;;  %9972 = vmatprep.mubr.bf16.mxu1 %v8664_v15  ;;  %v11858_v15 = vld [vmem:[%s12145_s5 + $0xe0] sm:$0x3] }
 0x2d3   : > { %10564 = vmatprep.mubr.bf16.mxu0 %v14034_v30  ;;  %10593 = vmatpush3.bf16.msra.mxu0 %v11730_v42  ;;  %v8848_v42 = vrot.slane %v11857_v9, 10 }
 0x2d4   : > { %10594 = vmatprep.subr.bf16.mxu0 %v11732_v29 }
 0x2d7   : > { %10595 = vmatpush3.bf16.msra.mxu0 %v11732_v29  ;;  %v7672_v29 = vrot.slane %v11858_v15, 6 }
 0x2d8   : > { %10628 = vmatprep.subr.bf16.mxu0 %v11734_v0 }
 0x2d9   : > { %9973 = vmatmul.mubr.bf16.vlgmr.msra.gmra.mrb[0].mxu1 %v14032_v54 }
 0x2da   : > { %10565 = vmatmul.mubr.bf16.gmra.mrb[16].mxu0 %v14056_v7  ;;  %10005 = vmatpush3.bf16.msra.mxu1 %v14155_v40  ;;  %v15032_v40 = vld [vmem:[#allocation19_spill] sm:$0xff] }
 0x2db   : > { %9976 = vmatprep.mubr.bf16.mxu1 %v15029_v44  ;;  %10568 = vmatprep.mubr.bf16.mxu0 %v14058_v2 }
 0x2dc   : > { %10006 = vmatprep.subr.bf16.mxu1 %v11727_v11 }
 0x2de   : > { %10007 = vmatpush3.bf16.msra.mxu1 %v11727_v11  ;;  %v7670_v11 = vsel %vm13676_vm11, %v8848_v42, %v7669_v48 }
 0x2df   : > { %10008 = vmatprep.subr.bf16.mxu1 %v11729_v43 }
 0x2e1   : > { %9977 = vmatmul.mubr.bf16.gmra.mrb[4].mxu1 %v15030_v25 }
 0x2e2   : > { %10569 = vmatmul.mubr.bf16.gmra.mrb[20].mxu0 %v14077_v5  ;;  %9980 = vmatprep.mubr.bf16.mxu1 %v15031_v6 }
 0x2e3   : > { %10572 = vmatprep.mubr.bf16.mxu0 %v14079_v51  ;;  %10009 = vmatpush3.bf16.msra.mxu1 %v11729_v43  ;;  %v11860_v43 = vld [vmem:[#allocation2 + $0x328] sm:$0xff]  }
 0x2e4   : > { %10010 = vmatprep.subr.bf16.mxu1 %v11731_v61 }
 0x2e7   : > { %10011 = vmatpush3.bf16.msra.mxu1 %v11731_v61 }
 0x2e8   : > { %10012 = vmatprep.subr.bf16.mxu1 %v11733_v55 }
 0x2e9   : > { %9981 = vmatmul.mubr.bf16.gmra.mrb[8].mxu1 %v15032_v40 }
 0x2ea   : > { %10573 = vmatmul.mubr.bf16.gmra.mrb[24].mxu0 %v14091_v46  ;;  %9984 = vmatprep.mubr.bf16.mxu1 %v15033_v14 }
 0x2eb   : > { %10576 = vmatprep.mubr.bf16.mxu0 %v14149_v32  ;;  %10013 = vmatpush3.bf16.msra.mxu1 %v11733_v55 }
 0x2ec   : > { %10014 = vmatprep.subr.bf16.mxu1 %v11735_v34 }
 0x2ef   : > { %10015 = vmatpush3.bf16.msra.mxu1 %v11735_v34 }
 0x2f0   : > { %10016 = vmatprep.subr.bf16.mxu1 %v11737_v62 }
 0x2f1   : > { %9985 = vmatmul.mubr.bf16.gmra.mrb[12].mxu1 %v15034_v36 }
 0x2f2   : > { %10577 = vmatmul.mubr.bf16.gmra.mrb[28].mxu0 %v14213_v49  ;;  %9988 = vmatprep.mubr.bf16.mxu1 %v15035_v21 }
 0x2f3   : > { %10596 = vmatprep.mubr.bf16.mxu0 %v13935_v57  ;;  %10017 = vmatpush3.bf16.msra.mxu1 %v11737_v62  ;;  %v11740_v57 = vld [vmem:[#allocation2 + $0x618] sm:$0xff]  }
 0x2f4   : > { %10018 = vmatprep.subr.bf16.mxu1 %v11739_v59 }
 0x2f7   : > { %10019 = vmatpush3.bf16.msra.mxu1 %v11739_v59 }
 0x2f8   : > { %10676 = vmatprep.subr.bf16.mxu1 %v11852_v28 }
 0x2f9   : > { %9989 = vmatmul.mubr.bf16.gmra.mrb[16].mxu1 %v15036_v10 }
 0x2fa   : > { %10597 = vmatmul.mubr.bf16.vlgmr.msra.gmra.mrb[0].mxu0 %v13947_v50  ;;  %9992 = vmatprep.mubr.bf16.mxu1 %v15037_v33 }
 0x2fb   : > { %10629 = vmatpush3.bf16.msra.mxu0 %v11734_v0  ;;  %10600 = vmatprep.mubr.bf16.mxu0 %v13968_v27  ;;  %v11859_v0 = vld [vmem:[#allocation2 + $0x320] sm:$0xff]  }
 0x2fc   : > { %10630 = vmatprep.subr.bf16.mxu0 %v11736_v39 }
 0x2ff   : > { %10631 = vmatpush3.bf16.msra.mxu0 %v11736_v39 }
 0x300   : > { %10632 = vmatprep.subr.bf16.mxu0 %v11738_v60 }
 0x301   : > { %9993 = vmatmul.mubr.bf16.gmra.mrb[20].mxu1 %v15038_v17 }
 0x302   : > { %10601 = vmatmul.mubr.bf16.gmra.mrb[4].mxu0 %v13972_v45  ;;  %9996 = vmatprep.mubr.bf16.mxu1 %v15039_v3 }
 0x303   : > { %10604 = vmatprep.mubr.bf16.mxu0 %v14000_v26  ;;  %10633 = vmatpush3.bf16.msra.mxu0 %v11738_v60 }
 0x304   : > { %10634 = vmatprep.subr.bf16.mxu0 %v11740_v57 }
 0x307   : > { %10635 = vmatpush3.bf16.msra.mxu0 %v11740_v57 }
 0x308   : > { %10636 = vmatprep.subr.bf16.mxu0 %v11741_v38 }
 0x309   : > { %9997 = vmatmul.mubr.bf16.gmra.mrb[24].mxu1 %v15040_v41 }
 0x30a   : > { %10605 = vmatmul.mubr.bf16.gmra.mrb[8].mxu0 %v14004_v4  ;;  %10000 = vmatprep.mubr.bf16.mxu1 %v15041_v1 }
 0x30b   : > { %10608 = vmatprep.mubr.bf16.mxu0 %v14030_v37  ;;  %10637 = vmatpush3.bf16.msra.mxu0 %v11741_v38 }
 0x30c   : > { %10638 = vmatprep.subr.bf16.mxu0 %v11742_v19 }
 0x30f   : > { %10639 = vmatpush3.bf16.msra.mxu0 %v11742_v19 }
 0x310   : > { %10640 = vmatprep.subr.bf16.mxu0 %v11743_v12 }
 0x311   : > { %10001 = vmatmul.mubr.bf16.gmra.mrb[28].mxu1 %v15042_v16 }
 0x312   : > { %10609 = vmatmul.mubr.bf16.gmra.mrb[12].mxu0 %v14034_v30  ;;  %10020 = vmatprep.mubr.bf16.mxu1 %v14032_v54  ;;  %v11854_v54 = vld [vmem:[#allocation2 + $0x310] sm:$0xff]  }
 0x313   : > { %10612 = vmatprep.mubr.bf16.mxu0 %v14056_v7  ;;  %10641 = vmatpush3.bf16.msra.mxu0 %v11743_v12 }
 0x314   : > { %10642 = vmatprep.subr.bf16.mxu0 %v11744_v8 }
 0x317   : > { %10643 = vmatpush3.bf16.msra.mxu0 %v11744_v8 }
 0x319   : > { %10021 = vmatmul.mubr.bf16.vlgmr.msra.gmra.mrb[0].mxu1 %v15029_v44  ;;  %v7673_v44 = vsel %vm13676_vm11, %v7671_v56, %v7672_v29 }
 0x31a   : > { %10613 = vmatmul.mubr.bf16.gmra.mrb[16].mxu0 %v14058_v2  ;;  %10684 = vmatpush3.bf16.msra.mxu1 %v11852_v28  ;;  %v8849_v61 = vcombine.low %v7670_v11, %v7673_v44 }
 0x31b   : > { %10024 = vmatprep.mubr.bf16.mxu1 %v15030_v25  ;;  %10616 = vmatprep.mubr.bf16.mxu0 %v14077_v5  ;;  %v11861_v25 = vld [vmem:[#allocation2 + $0x330] sm:$0xff]  }
 0x31c   : > { %10677 = vmatprep.subr.bf16.mxu1 %v11853_v58 }
 0x31e   : > { %10685 = vmatpush3.bf16.msra.mxu1 %v11853_v58 }
 0x31f   : > { %10678 = vmatprep.subr.bf16.mxu1 %v11854_v54 }
 0x321   : > { %10025 = vmatmul.mubr.bf16.gmra.mrb[4].mxu1 %v15031_v6  ;;  %v11862_v6 = vld [vmem:[#allocation2 + $0x338] sm:$0xff]  }
 0x322   : > { %10617 = vmatmul.mubr.bf16.gmra.mrb[20].mxu0 %v14079_v51  ;;  %10028 = vmatprep.mubr.bf16.mxu1 %v15032_v40 }
 0x323   : > { %10620 = vmatprep.mubr.bf16.mxu0 %v14091_v46  ;;  %10686 = vmatpush3.bf16.msra.mxu1 %v11854_v54 }
 0x324   : > { %10679 = vmatprep.subr.bf16.mxu1 %v11856_v13 }
 0x327   : > { %10687 = vmatpush3.bf16.msra.mxu1 %v11856_v13 }
 0x328   : > { %10680 = vmatprep.subr.bf16.mxu1 %v11859_v0 }
 0x329   : > { %10029 = vmatmul.mubr.bf16.gmra.mrb[8].mxu1 %v15033_v14 }
 0x32a   : > { %10621 = vmatmul.mubr.bf16.gmra.mrb[24].mxu0 %v14149_v32  ;;  %10032 = vmatprep.mubr.bf16.mxu1 %v15034_v36 }
 0x32b   : > { %10624 = vmatprep.mubr.bf16.mxu0 %v14213_v49  ;;  %10688 = vmatpush3.bf16.msra.mxu1 %v11859_v0 }
 0x32c   : > { %10681 = vmatprep.subr.bf16.mxu1 %v11860_v43 }
 0x32f   : > { %10689 = vmatpush3.bf16.msra.mxu1 %v11860_v43 }
 0x330   : > { %10682 = vmatprep.subr.bf16.mxu1 %v11861_v25 }
 0x331   : > { %10033 = vmatmul.mubr.bf16.gmra.mrb[12].mxu1 %v15035_v21 }
 0x332   : > { %10625 = vmatmul.mubr.bf16.gmra.mrb[28].mxu0 %v8849_v61  ;;  %10036 = vmatprep.mubr.bf16.mxu1 %v15036_v10 }
 0x333   : > { %10644 = vmatprep.mubr.bf16.mxu0 %v13947_v50  ;;  %10690 = vmatpush3.bf16.msra.mxu1 %v11861_v25  ;;  %v15043_v50 = vld [vmem:[#allocation44_spill] sm:$0xff] }
 0x334   : > { %10683 = vmatprep.subr.bf16.mxu1 %v11862_v6 }
 0x337   : > { %10691 = vmatpush3.bf16.msra.mxu1 %v11862_v6 }
 0x339   : > { %10037 = vmatmul.mubr.bf16.gmra.mrb[16].mxu1 %v15037_v33 }
 0x33a   : > { %10645 = vmatmul.mubr.bf16.vlgmr.msra.gmra.mrb[0].mxu0 %v13968_v27  ;;  %10040 = vmatprep.mubr.bf16.mxu1 %v15038_v17  ;;  %v11863_v27 = vld [vmem:[%s12145_s5 + $0xe8] sm:$0xf] }
 0x33b   : > { %10648 = vmatprep.mubr.bf16.mxu0 %v13972_v45  ;;  %v7938_v45 = vrot.slane %v11863_v27, 6 }
 0x341   : > { %10041 = vmatmul.mubr.bf16.gmra.mrb[20].mxu1 %v15039_v3 }
 0x342   : > { %10649 = vmatmul.mubr.bf16.gmra.mrb[4].mxu0 %v14000_v26  ;;  %10044 = vmatprep.mubr.bf16.mxu1 %v15040_v41  ;;  %v11864_v26 = vld [vmem:[%s12145_s5 + $0xe4] sm:$0xf] }
 0x343   : > { %10652 = vmatprep.mubr.bf16.mxu0 %v14004_v4  ;;  %v8858_v4 = vrot.slane %v11864_v26, 10 }
 0x349   : > { %10045 = vmatmul.mubr.bf16.gmra.mrb[24].mxu1 %v15041_v1 }
 0x34a   : > { %10653 = vmatmul.mubr.bf16.gmra.mrb[8].mxu0 %v14030_v37  ;;  %10048 = vmatprep.mubr.bf16.mxu1 %v15042_v16  ;;  %v7940_v37 = vrot.slane %v7938_v45, 4 }
 0x34b   : > { %10656 = vmatprep.mubr.bf16.mxu0 %v14034_v30  ;;  %v11865_v30 = vld [vmem:[%s12145_s5 + $0xec] sm:$0x3] }
 0x351   : > { %10049 = vmatmul.mubr.bf16.gmra.mrb[28].mxu1 %v15043_v50 }
 0x352   : > { %10657 = vmatmul.mubr.bf16.gmra.mrb[12].mxu0 %v14056_v7  ;;  %10084 = vmatprep.mubr.bf16.mxu1 %v15037_v33  ;;  %v7941_v7 = vrot.slane %v11865_v30, 6 }
 0x353   : > { %10660 = vmatprep.mubr.bf16.mxu0 %v14058_v2  ;;  %v7939_v2 = vsel %vm13676_vm11, %v8858_v4, %v7938_v45 }
 0x359   : > { %10085 = vmatmul.mubr.bf16.vlgmr.msra.gmra.mrb[16].mxu1 %v15038_v17 }
 0x35a   : > { %10661 = vmatmul.mubr.bf16.gmra.mrb[16].mxu0 %v14077_v5  ;;  %10088 = vmatprep.mubr.bf16.mxu1 %v15039_v3  ;;  %v7942_v5 = vsel %vm13676_vm11, %v7940_v37, %v7941_v7 }
 0x35b   : > { %10664 = vmatprep.mubr.bf16.mxu0 %v14079_v51  ;;  %v8859_v51 = vcombine.low %v7939_v2, %v7942_v5 }
 0x361   : > { %10089 = vmatmul.mubr.bf16.gmra.mrb[20].mxu1 %v15040_v41 }
 0x362   : > { %10665 = vmatmul.mubr.bf16.gmra.mrb[20].mxu0 %v14091_v46  ;;  %10092 = vmatprep.mubr.bf16.mxu1 %v15041_v1  ;;  %v15044_v46 = vld [vmem:[#allocation45_spill] sm:$0xff] }
 0x363   : > { %10668 = vmatprep.mubr.bf16.mxu0 %v14149_v32 }
 0x369   : > { %10093 = vmatmul.mubr.bf16.gmra.mrb[24].mxu1 %v15042_v16 }
 0x36a   : > { %10669 = vmatmul.mubr.bf16.gmra.mrb[24].mxu0 %v14213_v49  ;;  %10096 = vmatprep.mubr.bf16.mxu1 %v15043_v50 }
 0x36b   : > { %10672 = vmatprep.mubr.bf16.mxu0 %v8849_v61 }
 0x371   : > { %10097 = vmatmul.mubr.bf16.gmra.mrb[28].mxu1 %v15044_v46 }
 0x372   : > { %10673 = vmatmul.mubr.bf16.gmra.mrb[28].mxu0 %v8859_v51 }
 0x3ec   : > { %v10022_v32 = vpop.f32.mrb[0].mxu1 }
 0x3ed   : > { %v4050_v23 = vpop.f32.mrb[1].mxu1 }
 0x3ee   : > { %v10023_v22 = vpop.f32.mrb[2].mxu1 }
 0x3ef   : > { %v4053_v55 = vpop.f32.mrb[3].mxu1 }
 0x3f4   : > { %v10026_v18 = vpop.f32.mrb[4].mxu1 }
 0x3f5   : > { %v4066_v31 = vpop.f32.mrb[5].mxu1 }
 0x3f6   : > { %v10027_v24 = vpop.f32.mrb[6].mxu1 }
 0x3f7   : > { %v4069_v35 = vpop.f32.mrb[7].mxu1 }
 0x3fc   : > { %v10030_v53 = vpop.f32.mrb[8].mxu1 }
 0x3fd   : > { %v4082_v34 = vpop.f32.mrb[9].mxu1 }
 0x3fe   : > { %v10031_v40 = vpop.f32.mrb[10].mxu1 }
 0x3ff   : > { %v14292_v14 = vpop.f32.mrb[11].mxu1 }
 0x404   : > { %v14294_v20 = vpop.f32.mrb[12].mxu1 }
 0x405   : > { %v14296_v63 = vpop.f32.mrb[13].mxu1 }
 0x406   : > { %v14298_v47 = vpop.f32.mrb[14].mxu1 }
 0x407   : > { %v14300_v62 = vpop.f32.mrb[15].mxu1 }
 0x40d   : > { %v10646_v49 = vpop.f32.mrb[0].mxu0 }
 0x40e   : > { %v10692_v59 = vadd.f32 %v10646_v49, %v10022_v32  ;;  %v8046_v36 = vpop.f32.mrb[1].mxu0 }
 0x40f   : > { %v10693_v21 = vadd.f32 %v8046_v36, %v4050_v23  ;;  %v10647_v39 = vpop.f32.mrb[2].mxu0 }
 0x410   : > { %8207 = vst [vmem:[%s14306_s8 + $0x10] sm:$0xff] %v10692_v59  ;;  %v10694_v28 = vadd.f32 %v10647_v39, %v10023_v22  ;;  %v8049_v10 = vpop.f32.mrb[3].mxu0  ;;  %v8277_v3 = vmul.f32 %v10692_v59, %v10692_v59 }
 0x411   : > { %8205 = vst [vmem:[%s14306_s8] sm:$0xff] %v10693_v21  ;;  %v10695_v33 = vadd.f32 %v8049_v10, %v4053_v55  ;;  %v8275_v60 = vmul.f32 %v10693_v21, %v10693_v21 }
 0x412   : > { %8208 = vst [vmem:[%s14306_s8 + $0x18] sm:$0xff] %v10694_v28  ;;  %v8278_v8 = vmul.f32 %v10694_v28, %v10694_v28 }
 0x413   : > { %8206 = vst [vmem:[%s14306_s8 + $0x8] sm:$0xff] %v10695_v33  ;;  %v8237_v57 = vadd.f32 %v10695_v33, %v10693_v21  ;;  %v8276_v17 = vmul.f32 %v10695_v33, %v10695_v33 }
 0x415   : > { %v8238_v38 = vadd.f32 %v10692_v59, %v8237_v57  ;;  %v8307_v19 = vadd.f32 %v8276_v17, %v8275_v60  ;;  %v10650_v41 = vpop.f32.mrb[4].mxu0 }
 0x416   : > { %v10696_v1 = vadd.f32 %v10650_v41, %v10026_v18  ;;  %v8062_v12 = vpop.f32.mrb[5].mxu0 }
 0x417   : > { %v8308_v16 = vadd.f32 %v8307_v19, %v8277_v3  ;;  %v10697_v58 = vadd.f32 %v8062_v12, %v4066_v31  ;;  %v8239_v54 = vadd.f32 %v10694_v28, %v8238_v38  ;;  %v10651_v52 = vpop.f32.mrb[6].mxu0 }
 0x418   : > { %8211 = vst [vmem:[%s14306_s8 + $0x30] sm:$0xff] %v10696_v1  ;;  %v10698_v48 = vadd.f32 %v10651_v52, %v10027_v24  ;;  %v8065_v13 = vpop.f32.mrb[7].mxu0  ;;  %v8281_v44 = vmul.f32 %v10696_v1, %v10696_v1 }
 0x419   : > { %8209 = vst [vmem:[%s14306_s8 + $0x20] sm:$0xff] %v10697_v58  ;;  %v8240_v9 = vadd.f32 %v10697_v58, %v8239_v54  ;;  %v8279_v42 = vmul.f32 %v10697_v58, %v10697_v58  ;;  %v8309_v56 = vadd.f32 %v8308_v16, %v8278_v8  ;;  %v10699_v15 = vadd.f32 %v8065_v13, %v4069_v35 }
 0x41a   : > { %8212 = vst [vmem:[%s14306_s8 + $0x38] sm:$0xff] %v10698_v48  ;;  %v8282_v27 = vmul.f32 %v10698_v48, %v10698_v48 }
 0x41b   : > { %v8310_v29 = vadd.f32 %v8309_v56, %v8279_v42  ;;  %8210 = vst [vmem:[%s14306_s8 + $0x28] sm:$0xff] %v10699_v15  ;;  %v8241_v0 = vadd.f32 %v10699_v15, %v8240_v9  ;;  %v8280_v11 = vmul.f32 %v10699_v15, %v10699_v15 }
 0x41d   : > { %v8242_v43 = vadd.f32 %v10696_v1, %v8241_v0  ;;  %v8311_v61 = vadd.f32 %v8310_v29, %v8280_v11  ;;  %v10654_v25 = vpop.f32.mrb[8].mxu0 }
 0x41e   : > { %v10700_v6 = vadd.f32 %v10654_v25, %v10030_v53  ;;  %v8078_v50 = vpop.f32.mrb[9].mxu0 }
 0x41f   : > { %v8312_v45 = vadd.f32 %v8311_v61, %v8281_v44  ;;  %v10701_v26 = vadd.f32 %v8078_v50, %v4082_v34  ;;  %v8243_v4 = vadd.f32 %v10698_v48, %v8242_v43  ;;  %v10655_v37 = vpop.f32.mrb[10].mxu0 }
 0x420   : > { %8215 = vst [vmem:[%s14306_s8 + $0x50] sm:$0xff] %v10700_v6  ;;  %v10702_v30 = vadd.f32 %v10655_v37, %v10031_v40  ;;  %v8081_v7 = vpop.f32.mrb[11].mxu0  ;;  %v8285_v55 = vmul.f32 %v10700_v6, %v10700_v6 }
 0x421   : > { %8213 = vst [vmem:[%s14306_s8 + $0x40] sm:$0xff] %v10701_v26  ;;  %v8244_v2 = vadd.f32 %v10701_v26, %v8243_v4  ;;  %v8283_v5 = vmul.f32 %v10701_v26, %v10701_v26  ;;  %v8313_v51 = vadd.f32 %v8312_v45, %v8282_v27  ;;  %v10703_v46 = vadd.f32 %v8081_v7, %v14292_v14 }
 0x422   : > { %8216 = vst [vmem:[%s14306_s8 + $0x58] sm:$0xff] %v10702_v30  ;;  %v8286_v34 = vmul.f32 %v10702_v30, %v10702_v30 }
 0x423   : > { %v8314_v32 = vadd.f32 %v8313_v51, %v8283_v5  ;;  %8214 = vst [vmem:[%s14306_s8 + $0x48] sm:$0xff] %v10703_v46  ;;  %v8245_v23 = vadd.f32 %v10703_v46, %v8244_v2  ;;  %v8284_v22 = vmul.f32 %v10703_v46, %v10703_v46 }
 0x425   : > { %v8246_v18 = vadd.f32 %v10700_v6, %v8245_v23  ;;  %v8315_v31 = vadd.f32 %v8314_v32, %v8284_v22  ;;  %v10658_v24 = vpop.f32.mrb[12].mxu0 }
 0x426   : > { %v10704_v35 = vadd.f32 %v10658_v24, %v14294_v20  ;;  %v8094_v53 = vpop.f32.mrb[13].mxu0 }
 0x427   : > { %v8316_v40 = vadd.f32 %v8315_v31, %v8285_v55  ;;  %v10705_v14 = vadd.f32 %v8094_v53, %v14296_v63  ;;  %v8247_v49 = vadd.f32 %v10702_v30, %v8246_v18  ;;  %v10659_v59 = vpop.f32.mrb[14].mxu0 }
 0x428   : > { %8219 = vst [vmem:[%s14306_s8 + $0x70] sm:$0xff] %v10704_v35  ;;  %v10706_v36 = vadd.f32 %v10659_v59, %v14298_v47  ;;  %v8097_v21 = vpop.f32.mrb[15].mxu0  ;;  %v8289_v63 = vmul.f32 %v10704_v35, %v10704_v35 }
 0x429   : > { %8217 = vst [vmem:[%s14306_s8 + $0x60] sm:$0xff] %v10705_v14  ;;  %v8248_v39 = vadd.f32 %v10705_v14, %v8247_v49  ;;  %v8287_v28 = vmul.f32 %v10705_v14, %v10705_v14  ;;  %v8317_v10 = vadd.f32 %v8316_v40, %v8286_v34  ;;  %v10707_v33 = vadd.f32 %v8097_v21, %v14300_v62 }
 0x42a   : > { %8220 = vst [vmem:[%s14306_s8 + $0x78] sm:$0xff] %v10706_v36  ;;  %v8290_v8 = vmul.f32 %v10706_v36, %v10706_v36 }
 0x42b   : > { %v8318_v20 = vadd.f32 %v8317_v10, %v8287_v28  ;;  %8218 = vst [vmem:[%s14306_s8 + $0x68] sm:$0xff] %v10707_v33  ;;  %v8249_v60 = vadd.f32 %v10707_v33, %v8248_v39  ;;  %v8288_v57 = vmul.f32 %v10707_v33, %v10707_v33 }
 0x42c   : > { %v10086_v17 = vpop.f32.mrb[16].mxu1 }
 0x42d   : > { %v8250_v3 = vadd.f32 %v10704_v35, %v8249_v60  ;;  %v8319_v38 = vadd.f32 %v8318_v20, %v8288_v57  ;;  %v10662_v19 = vpop.f32.mrb[16].mxu0  ;;  %v4384_v47 = vpop.f32.mrb[17].mxu1 }
 0x42e   : > { %v10708_v41 = vadd.f32 %v10662_v19, %v10086_v17  ;;  %v8110_v1 = vpop.f32.mrb[17].mxu0  ;;  %v10087_v12 = vpop.f32.mrb[18].mxu1 }
 0x42f   : > { %v8320_v62 = vadd.f32 %v8319_v38, %v8289_v63  ;;  %v10709_v16 = vadd.f32 %v8110_v1, %v4384_v47  ;;  %v8251_v58 = vadd.f32 %v10706_v36, %v8250_v3  ;;  %v10663_v54 = vpop.f32.mrb[18].mxu0  ;;  %v4387_v52 = vpop.f32.mrb[19].mxu1 }
 0x430   : > { %8223 = vst [vmem:[%s14306_s8 + $0x90] sm:$0xff] %v10708_v41  ;;  %v10710_v48 = vadd.f32 %v10663_v54, %v10087_v12  ;;  %v8113_v13 = vpop.f32.mrb[19].mxu0  ;;  %v8293_v43 = vmul.f32 %v10708_v41, %v10708_v41 }
 0x431   : > { %8221 = vst [vmem:[%s14306_s8 + $0x80] sm:$0xff] %v10709_v16  ;;  %v8252_v9 = vadd.f32 %v10709_v16, %v8251_v58  ;;  %v8291_v42 = vmul.f32 %v10709_v16, %v10709_v16  ;;  %v8321_v56 = vadd.f32 %v8320_v62, %v8290_v8  ;;  %v10711_v15 = vadd.f32 %v8113_v13, %v4387_v52 }
 0x432   : > { %8224 = vst [vmem:[%s14306_s8 + $0x98] sm:$0xff] %v10710_v48  ;;  %v8294_v4 = vmul.f32 %v10710_v48, %v10710_v48 }
 0x433   : > { %v8322_v29 = vadd.f32 %v8321_v56, %v8291_v42  ;;  %8222 = vst [vmem:[%s14306_s8 + $0x88] sm:$0xff] %v10711_v15  ;;  %v8253_v0 = vadd.f32 %v10711_v15, %v8252_v9  ;;  %v8292_v11 = vmul.f32 %v10711_v15, %v10711_v15 }
 0x434   : > { %v10090_v44 = vpop.f32.mrb[20].mxu1 }
 0x435   : > { %v8254_v61 = vadd.f32 %v10708_v41, %v8253_v0  ;;  %v8323_v25 = vadd.f32 %v8322_v29, %v8292_v11  ;;  %v10666_v6 = vpop.f32.mrb[20].mxu0  ;;  %v4400_v50 = vpop.f32.mrb[21].mxu1 }
 0x436   : > { %v10712_v27 = vadd.f32 %v10666_v6, %v10090_v44  ;;  %v8126_v45 = vpop.f32.mrb[21].mxu0  ;;  %v10091_v26 = vpop.f32.mrb[22].mxu1 }
 0x437   : > { %v8324_v37 = vadd.f32 %v8323_v25, %v8293_v43  ;;  %v10713_v30 = vadd.f32 %v8126_v45, %v4400_v50  ;;  %v8255_v7 = vadd.f32 %v10710_v48, %v8254_v61  ;;  %v10667_v2 = vpop.f32.mrb[22].mxu0  ;;  %v4403_v5 = vpop.f32.mrb[23].mxu1 }
 0x438   : > { %8227 = vst [vmem:[%s14306_s8 + $0xb0] sm:$0xff] %v10712_v27  ;;  %v10714_v51 = vadd.f32 %v10667_v2, %v10091_v26  ;;  %v8129_v46 = vpop.f32.mrb[23].mxu0  ;;  %v8297_v53 = vmul.f32 %v10712_v27, %v10712_v27 }
 0x439   : > { %8225 = vst [vmem:[%s14306_s8 + $0xa0] sm:$0xff] %v10713_v30  ;;  %v8256_v32 = vadd.f32 %v10713_v30, %v8255_v7  ;;  %v8295_v23 = vmul.f32 %v10713_v30, %v10713_v30  ;;  %v8325_v22 = vadd.f32 %v8324_v37, %v8294_v4  ;;  %v10715_v55 = vadd.f32 %v8129_v46, %v4403_v5 }
 0x43a   : > { %8228 = vst [vmem:[%s14306_s8 + $0xb8] sm:$0xff] %v10714_v51  ;;  %v8298_v39 = vmul.f32 %v10714_v51, %v10714_v51 }
 0x43b   : > { %v8326_v18 = vadd.f32 %v8325_v22, %v8295_v23  ;;  %8226 = vst [vmem:[%s14306_s8 + $0xa8] sm:$0xff] %v10715_v55  ;;  %v8257_v31 = vadd.f32 %v10715_v55, %v8256_v32  ;;  %v8296_v24 = vmul.f32 %v10715_v55, %v10715_v55 }
 0x43c   : > { %v10094_v35 = vpop.f32.mrb[24].mxu1 }
 0x43d   : > { %v8258_v34 = vadd.f32 %v10712_v27, %v8257_v31  ;;  %v8327_v40 = vadd.f32 %v8326_v18, %v8296_v24  ;;  %v10670_v14 = vpop.f32.mrb[24].mxu0  ;;  %v4416_v49 = vpop.f32.mrb[25].mxu1 }
 0x43e   : > { %v10716_v59 = vadd.f32 %v10670_v14, %v10094_v35  ;;  %v8142_v36 = vpop.f32.mrb[25].mxu0  ;;  %v10095_v21 = vpop.f32.mrb[26].mxu1 }
 0x43f   : > { %v8328_v28 = vadd.f32 %v8327_v40, %v8297_v53  ;;  %v10717_v10 = vadd.f32 %v8142_v36, %v4416_v49  ;;  %v8259_v33 = vadd.f32 %v10714_v51, %v8258_v34  ;;  %v10671_v20 = vpop.f32.mrb[26].mxu0  ;;  %v4419_v60 = vpop.f32.mrb[27].mxu1 }
 0x440   : > { %8231 = vst [vmem:[%s14306_s8 + $0xd0] sm:$0xff] %v10716_v59  ;;  %v10718_v57 = vadd.f32 %v10671_v20, %v10095_v21  ;;  %v8145_v17 = vpop.f32.mrb[27].mxu0  ;;  %v8301_v8 = vmul.f32 %v10716_v59, %v10716_v59 }
 0x441   : > { %8229 = vst [vmem:[%s14306_s8 + $0xc0] sm:$0xff] %v10717_v10  ;;  %v8260_v63 = vadd.f32 %v10717_v10, %v8259_v33  ;;  %v8299_v3 = vmul.f32 %v10717_v10, %v10717_v10  ;;  %v8329_v38 = vadd.f32 %v8328_v28, %v8298_v39  ;;  %v10719_v19 = vadd.f32 %v8145_v17, %v4419_v60 }
 0x442   : > { %8232 = vst [vmem:[%s14306_s8 + $0xd8] sm:$0xff] %v10718_v57  ;;  %v8302_v9 = vmul.f32 %v10718_v57, %v10718_v57 }
 0x443   : > { %v8330_v47 = vadd.f32 %v8329_v38, %v8299_v3  ;;  %8230 = vst [vmem:[%s14306_s8 + $0xc8] sm:$0xff] %v10719_v19  ;;  %v8261_v41 = vadd.f32 %v10719_v19, %v8260_v63  ;;  %v8300_v1 = vmul.f32 %v10719_v19, %v10719_v19 }
 0x444   : > { %v10098_v12 = vpop.f32.mrb[28].mxu1 }
 0x445   : > { %v8262_v62 = vadd.f32 %v10716_v59, %v8261_v41  ;;  %v8331_v16 = vadd.f32 %v8330_v47, %v8300_v1  ;;  %v10674_v58 = vpop.f32.mrb[28].mxu0  ;;  %v4432_v54 = vpop.f32.mrb[29].mxu1 }
 0x446   : > { %v10720_v52 = vadd.f32 %v10674_v58, %v10098_v12  ;;  %v8158_v48 = vpop.f32.mrb[29].mxu0  ;;  %v10099_v13 = vpop.f32.mrb[30].mxu1 }
 0x447   : > { %v8332_v42 = vadd.f32 %v8331_v16, %v8301_v8  ;;  %v10721_v56 = vadd.f32 %v8158_v48, %v4432_v54  ;;  %v8263_v15 = vadd.f32 %v10718_v57, %v8262_v62  ;;  %v10675_v29 = vpop.f32.mrb[30].mxu0  ;;  %v4435_v0 = vpop.f32.mrb[31].mxu1 }
 0x448   : > { %8235 = vst [vmem:[%s14306_s8 + $0xf0] sm:$0xff] %v10720_v52  ;;  %v10722_v11 = vadd.f32 %v10675_v29, %v10099_v13  ;;  %v8161_v44 = vpop.f32.mrb[31].mxu0 }
 0x449   : > { %8233 = vst [vmem:[%s14306_s8 + $0xe0] sm:$0xff] %v10721_v56  ;;  %v8264_v43 = vadd.f32 %v10721_v56, %v8263_v15  ;;  %v8303_v61 = vmul.f32 %v10721_v56, %v10721_v56  ;;  %v8333_v25 = vadd.f32 %v8332_v42, %v8302_v9  ;;  %v10723_v6 = vadd.f32 %v8161_v44, %v4435_v0 }
 0x44a   : > { %8236 = vst [vmem:[%s14306_s8 + $0xf8] sm:$0xff] %v10722_v11 }
 0x44b   : > { %v8334_v50 = vadd.f32 %v8333_v25, %v8303_v61  ;;  %8234 = vst [vmem:[%s14306_s8 + $0xe8] sm:$0xff] %v10723_v6  ;;  %v8265_v27 = vadd.f32 %v10723_v6, %v8264_v43  ;;  %v8304_v45 = vmul.f32 %v10723_v6, %v10723_v6 }
 0x44c   : > { %11907 = shalt.err (!%p11904_p7)
}
 0x44d   : > { %s11908_s29 = scalar_lea.hbm %s14347_s13, 4096  ;;  %s11912_s7 = scalar_lea.hbm %s14467_s2, 8192 }
 0x44e   : > { %p11909_p8 = scmp.ne.s32.totalorder %s14347_s13, %s11908_s29  ;;  %p11913_p1 = scmp.lt.u32.totalorder %s14347_s13, %s14467_s2 }
 0x44f   : > { %p11914_p0 = scmp.lt.u32.totalorder %s11912_s7, %s11908_s29  ;;  %p11916_p6 = scmp.lt.u32.totalorder %s11908_s29, %s14347_s13 }
 0x450   : > { %p11910_p11 = pnand %p11909_p8, %p15045_p9 }
 0x451   : > { %p11915_p5 = por %p11914_p0, %p11913_p1 }
 0x452   : > { %p11911_p13 = pneg %p11910_p11 }
 0x453   : > { %p11917_p10 = por %p11916_p6, %p11915_p5 }
 0x455   : > { %p11918_p12 = pnand %p11917_p10, %p11911_p13 }
 0x457   : > { %11921 = shalt.err (!%p11918_p12)
}
 0x458   : > { %s12026_s11 = smov 128   ;;  %s12027_s12 = smov 8   ;;  %v8305_v26 = vmul.f32 %v10720_v52, %v10720_v52  ;;  %v8266_v4 = vadd.f32 %v10720_v52, %v8265_v27  ;;  %v8335_v37 = vadd.f32 %v8334_v50, %v8304_v45  ;;  %v8306_v30 = vmul.f32 %v10722_v11, %v10722_v11 }
 0x459   : > { %11465 = dma.vmem_to_hbm [thread:$0]  (%p15045_p9), %s14349_s10, 4096, %s14347_s13, %s8346_s14, %s12026_s11, %s12026_s11, %s12027_s12  }
 0x45a   : > { %v8267_v7 = vadd.f32 %v10722_v11, %v8266_v4  ;;  %v8336_v2 = vadd.f32 %v8335_v37, %v8305_v26  ;;  %s8350_s22 = sand.u32 1, %s12076_s19   ;;  %s8871_s10 = sshll.u32 %s12076_s19, 4 }
 0x45b   : > { %s215_s13 = scalar_lea.vmem [#allocation6], %s14303_s6  ;;  %s221_s23 = scalar_lea.vmem [#allocation8], %s14303_s6 }
 0x45c   : > { %v8268_v5 = vrot.slane %v8267_v7, 4  ;;  %v8337_v51 = vadd.f32 %v8336_v2, %v8306_v30  ;;  %s8383_s14 = sshll.u32 %s215_s13, 4  ;;  %s8396_s27 = sshll.u32 %s221_s23, 4  ;;  %s14389_s14 = int_to_ptr.vmem [resolvable:$true] %s8383_s14  ;;  %s14396_s27 = int_to_ptr.vmem [resolvable:$true] %s8396_s27 }
 0x45d   : > { %s14387_s30 = scalar_lea.hbm %s14468_s3, %s8871_s10  ;;  %s14394_s7 = scalar_lea.hbm %s14469_s4, %s8871_s10 }
 0x45e   : > { %v8269_v46 = vadd.f32 %v8268_v5, %v8267_v7  ;;  %v8338_v32 = vrot.slane %v8337_v51, 4  ;;  %s14398_s8 = scalar_lea.sflag [#allocation7], %s8350_s22  ;;  %s11922_s9 = scalar_lea.vmem %s14389_s14, 16 }
 0x45f   : > { %p11923_p2 = scmp.ne.s32.totalorder %s14389_s14, %s11922_s9  ;;  %s12028_s11 = smov [#allocation6]  }
 0x460   : > { %v8270_v23 = vrot.slane %v8269_v46, 2  ;;  %v8339_v22 = vadd.f32 %v8338_v32, %v8337_v51  ;;  %s11926_s12 = sshll.u32 %s12028_s11, 4  ;;  %s11927_s12 = int_to_ptr.vmem [resolvable:$false] %s11926_s12 }
 0x461   : > { %p11924_p3 = pnand %p11923_p2, %p15045_p9  ;;  %s11928_s28 = scalar_lea.vmem %s11927_s12, 32 }
 0x462   : > { %v8340_v55 = vrot.slane %v8339_v22, 2  ;;  %v8271_v18 = vadd.f32 %v8270_v23, %v8269_v46  ;;  %p11929_p7 = scmp.lt.s32.totalorder %s14389_s14, %s11927_s12  ;;  %p11930_p8 = scmp.lt.s32.totalorder %s11928_s28, %s11922_s9 }
 0x463   : > { %p11925_p4 = pneg %p11924_p3 }
 0x464   : > { %v8272_v31 = vrot.slane %v8271_v18, 1  ;;  %v8341_v24 = vadd.f32 %v8340_v55, %v8339_v22  ;;  %p11931_p11 = por %p11930_p8, %p11929_p7 }
 0x466   : > { %v8273_v35 = vadd.f32 %v8272_v31, %v8271_v18  ;;  %v8342_v53 = vrot.slane %v8341_v24, 1  ;;  %p11932_p13 = pnand %p11931_p11, %p11925_p4 }
 0x468   : > { %8274 = vst [vmem:[%s215_s13] sm:$0x1] %v8273_v35  ;;  %v8343_v34 = vadd.f32 %v8342_v53, %v8341_v24 }
 0x469   : > { %11935 = shalt.err (!%p11932_p13)
}
 0x46a   : > { %s11936_s22 = scalar_lea.hbm %s14387_s30, 16  ;;  %s11940_s29 = scalar_lea.hbm %s14468_s3, 32 }
 0x46b   : > { %p11937_p1 = scmp.ne.s32.totalorder %s14387_s30, %s11936_s22  ;;  %p11941_p6 = scmp.lt.u32.totalorder %s14387_s30, %s14468_s3 }
 0x46c   : > { %p11942_p10 = scmp.lt.u32.totalorder %s11940_s29, %s11936_s22  ;;  %p11944_p2 = scmp.lt.u32.totalorder %s11936_s22, %s14387_s30 }
 0x46d   : > { %p11938_p0 = pnand %p11937_p1, %p15045_p9 }
 0x46e   : > { %p11943_p12 = por %p11942_p10, %p11941_p6 }
 0x46f   : > { %p11939_p5 = pneg %p11938_p0 }
 0x470   : > { %p11945_p3 = por %p11944_p2, %p11943_p12 }
 0x472   : > { %p11946_p4 = pnand %p11945_p3, %p11939_p5 }
 0x474   : > { %11949 = shalt.err (!%p11946_p4)
}
 0x475   : > { %11466 = dma.vmem_to_hbm [thread:$0]  (%p15045_p9), %s14389_s14, 16, %s14387_s30, %s14398_s8   ;;  %8344 = vst [vmem:[%s221_s23] sm:$0x1] %v8343_v34 }
 0x476   : > { %s11950_s9 = scalar_lea.vmem %s14396_s27, 16  ;;  %s12029_s11 = smov [#allocation8]  }
 0x477   : > { %p11951_p7 = scmp.ne.s32.totalorder %s14396_s27, %s11950_s9  ;;  %s11954_s12 = sshll.u32 %s12029_s11, 4  ;;  %s11955_s12 = int_to_ptr.vmem [resolvable:$false] %s11954_s12 }
 0x478   : > { %s11956_s28 = scalar_lea.vmem %s11955_s12, 32  ;;  %p11957_p13 = scmp.lt.s32.totalorder %s14396_s27, %s11955_s12 }
 0x479   : > { %p11952_p8 = pnand %p11951_p7, %p15045_p9  ;;  %p11958_p1 = scmp.lt.s32.totalorder %s11956_s28, %s11950_s9 }
 0x47b   : > { %p11953_p11 = pneg %p11952_p8  ;;  %p11959_p0 = por %p11958_p1, %p11957_p13 }
 0x47d   : > { %p11960_p5 = pnand %p11959_p0, %p11953_p11 }
 0x47f   : > { %11963 = shalt.err (!%p11960_p5)
}
 0x480   : > { %s11964_s6 = scalar_lea.hbm %s14394_s7, 16  ;;  %s11968_s30 = scalar_lea.hbm %s14469_s4, 32 }
 0x481   : > { %p11965_p6 = scmp.ne.s32.totalorder %s14394_s7, %s11964_s6  ;;  %p11969_p2 = scmp.lt.u32.totalorder %s14394_s7, %s14469_s4 }
 0x482   : > { %p11970_p3 = scmp.lt.u32.totalorder %s11968_s30, %s11964_s6  ;;  %p11972_p7 = scmp.lt.u32.totalorder %s11964_s6, %s14394_s7 }
 0x483   : > { %p11966_p10 = pnand %p11965_p6, %p15045_p9 }
 0x484   : > { %p11971_p4 = por %p11970_p3, %p11969_p2 }
 0x485   : > { %p11967_p12 = pneg %p11966_p10 }
 0x486   : > { %p11973_p8 = por %p11972_p7, %p11971_p4 }
 0x488   : > { %p11974_p11 = pnand %p11973_p8, %p11967_p12 }
 0x48a   : > { %11977 = shalt.err (!%p11974_p11)
}
 0x48b   : > { %11467 = dma.vmem_to_hbm [thread:$0]  (%p15045_p9), %s14396_s27, 16, %s14394_s7, %s14398_s8  }
 0x48c PF: > { %p11487_p13 = scmp.ge.s32.totalorder %s12020_s18, 2  ;;  %s8408_s13 = sand.u32 1, %s12008_s15  }
 0x48d   : > { %p15046_p1 = scmp.ne.s32.totalorder %s14663_s26, 0  ;;  %s8409_s29 = scalar_lea.sflag [#allocation4], %s8408_s13 }
 0x48f   : > { %p11476_p0 = pnand %p11487_p13, %p15046_p1 }
 0x491   : > { %11999 = dma.done.wait (!%p11476_p0), %s8409_s29, 4096  }
 0x492   : > { %12001 = vsyncadd (!%p11476_p0), %s8409_s29, 4294963200  ;;  %s8417_s19 = sand.u32 1, %s8520_s20  }
 0x493   : > { %s8418_s5 = scalar_lea.sflag [#allocation7], %s8417_s19 }
 0x494   : > { %12003 = dma.done.wait (!%p11476_p0), %s8418_s5, 32  }
 0x495   : > { %12005 = vsyncadd (!%p11476_p0), %s8418_s5, 4294967264  ;;  %p19_p9 = scmp.ge.s32.totalorder %s12080_s21, 4   ;;  %s15047_s15 = smov %s12012_s16 }
 0x496   : > { %s15048_s16 = smov %s12016_s17  ;;  %s15049_s17 = smov %s12093_s24 }
 0x497   : > { %s15050_s18 = smov %s12080_s21  ;;  %21 = sbr.rel (!%p19_p9) target bundleno = 6 (0x6), region = 124 }
 0x49e   :  { %8430 = vsyncpa [#allocation3], 1 }
 0x49f   :  { %8432 = vsyncpa [#allocation3 + $0x1], 1 }
 0x4a0   :  { %8433 = vsyncpa [#allocation4], 1 }
 0x4a1   :  { %8435 = vsyncpa [#allocation4 + $0x1], 1 }
 0x4a2   :  { %8436 = vsyncpa [#allocation7], 1 }
 0x4a3   :  { %8438 = vsyncpa [#allocation7 + $0x1], 1 }

</bundles_post_ra>
